<compile_context>
chip_gen: v5e
topology: v5e:2x2
jax: 0.10.0
libtpu: 0.0.40
codegen_flags: <defaults>
</compile_context>

<pallas_src>
import numpy as np

import jax
import jax.numpy as jnp
from jax import lax
from jax.experimental import pallas as pl
from jax.experimental.pallas import tpu as pltpu

# ----- synthetic Config (small shapes) -----
LATENT_DIM = 16
NGF = 8
CHANNELS = 3
BN_EPS = 1e-5
KSIZE = 4
CPAD_LAST = 4                                   # pad final Cout 3 -> 4 lanes

C1, C2, C3, C4 = NGF * 8, NGF * 4, NGF * 2, NGF  # 64, 32, 16, 8
ROWW = 256                                      # W*Cin == 2W*Cout == 256 for every layer
HS = (4, 8, 16, 32)                             # input heights of the stride-2 layers


# =======================================================================================
# Fused generator kernel (one grid step == one batch element)
# =======================================================================================
def _generator_kernel(z_ref, w1_ref, b1_ref, w2_ref, b2_ref, w3_ref, b3_ref,
                      w4_ref, b4_ref, w5_ref, o_ref, xp2, xp3, xp4, xp5):
    # Padded activation scratches: rows 0 and H+1 are the zero padding, rows 1..H hold the
    # activation with (width, channel) flattened into 256 lanes.  Re-zero every grid step
    # (under megacore a core may never see program_id == 0).  ~70 KiB total -> negligible.
    for buf in (xp2, xp3, xp4, xp5):
        buf[...] = jnp.zeros_like(buf)

    # ---- layer 1: ConvT(latent -> 64, k4, s1, p0) on a 1x1 input == plain matmul ----
    y1 = jnp.dot(z_ref[0].astype(jnp.bfloat16), w1_ref[...],
                 preferred_element_type=jnp.float32)               # (1, 16*C1)
    y1 = jnp.maximum(y1 + b1_ref[...], 0.0)                        # folded BN + ReLU
    for r in range(4):                                             # image row r -> xp2 row r+1
        xp2[r + 1:r + 2, :] = y1[:, r * ROWW:(r + 1) * ROWW]       # lane-tile aligned slices

    # ---- layers 2..5: ConvT(k4, s2, p1) (+ folded BN, activation) as banded row-matmuls ----
    def up_layer(xin, w_ref, b_ref, h, relu):
        """Returns [y0, y1]: y[py][r, ox*Cout + co] = output image row 2r+py."""
        bias = None if b_ref is None else b_ref[...]               # hoisted, loaded once
        outs = []
        for py in (0, 1):                                          # output-row parity
            a = xin[py:py + h, :].astype(jnp.bfloat16)             # padded rows r+py
            b = xin[py + 1:py + 1 + h, :].astype(jnp.bfloat16)     # padded rows r+py+1
            y = (jnp.dot(a, w_ref[py, 0], preferred_element_type=jnp.float32)
                 + jnp.dot(b, w_ref[py, 1], preferred_element_type=jnp.float32))
            if bias is not None:
                y = y + bias
            y = jnp.maximum(y, 0.0) if relu else jnp.tanh(y)
            outs.append(y)
        return outs

    def interleave_store(xout, y, h):
        # output image row 2r+py -> padded scratch row 2r+py+1 (row widths match exactly)
        for r in range(h):
            xout[2 * r + 1:2 * r + 2, :] = y[0][r:r + 1]
            xout[2 * r + 2:2 * r + 3, :] = y[1][r:r + 1]

    interleave_store(xp3, up_layer(xp2, w2_ref, b2_ref, 4, True), 4)      # 4x4x64  -> 8x8x32
    interleave_store(xp4, up_layer(xp3, w3_ref, b3_ref, 8, True), 8)      # 8x8x32  -> 16x16x16
    interleave_store(xp5, up_layer(xp4, w4_ref, b4_ref, 16, True), 16)    # 16x16x16-> 32x32x8

    y5 = up_layer(xp5, w5_ref, None, 32, False)                           # 32x32x8 -> 64x64x4, tanh
    o_ref[0, 0, :, :] = y5[0]                                             # even output rows
    o_ref[0, 1, :, :] = y5[1]                                             # odd  output rows


# =======================================================================================
# Host-side weight packing (runs once): BN(eval) fold, spatial tap -> banded matrices
# =======================================================================================
def _fold_bn(p):
    cout = p["w"].shape[1]
    if p["gamma"] is None:
        return np.ones((cout,), np.float32), np.zeros((cout,), np.float32)
    scale = np.asarray(p["gamma"]) / np.sqrt(np.asarray(p["rvar"]) + BN_EPS)
    bias = np.asarray(p["beta"]) - np.asarray(p["rmean"]) * scale
    return scale.astype(np.float32), bias.astype(np.float32)


def _prep_l1(w, scale, bias):
    """(Cin,Cout,4,4) -> (Cin, 16*Cout) bf16 (BN scale folded) + (1,16*Cout) f32 bias.
    Column order (kh, kw, co) so the kernel's per-row lane slices are the 4x4 image rows."""
    w = np.asarray(w)
    cin, cout = w.shape[:2]
    wm = (np.transpose(w, (0, 2, 3, 1)) * scale).reshape(cin, 16 * cout)
    bm = np.tile(bias, 16).reshape(1, 16 * cout)
    return jnp.asarray(wm, jnp.bfloat16), jnp.asarray(bm, jnp.float32)


def _prep_rowband(w, scale, bias, w_in, cpad):
    """(Cin,Cout,4,4) -> banded row-matmul weights (2 parity, 2 row-tap, W*Cin, 2W*cpad) bf16.
    wr[py, d, wi*Cin+ci, ox*cpad+co] = scale[co] * w[ci, co, 3-py-2d, ox+1-2*wi]
    (zero where kw = ox+1-2*wi is outside [0,4) or co >= Cout)."""
    w = np.asarray(w).astype(np.float32)
    cin, cout = w.shape[:2]
    wf = w * scale[None, :, None, None]
    n = 2 * w_in * cpad
    wr = np.zeros((2, 2, w_in * cin, n), np.float32)
    for py in range(2):
        for d in range(2):
            kh = 3 - py - 2 * d
            for wi in range(w_in):
                for kw in range(KSIZE):
                    ox = 2 * wi + kw - 1
                    if 0 <= ox < 2 * w_in:
                        wr[py, d, wi * cin:(wi + 1) * cin,
                           ox * cpad:ox * cpad + cout] = wf[:, :, kh, kw]
    br = np.tile(np.pad(bias, (0, cpad - cout)), 2 * w_in).reshape(1, n)
    return jnp.asarray(wr, jnp.bfloat16), jnp.asarray(br, jnp.float32)


def prepare_generator(params):
    s1, bv1 = _fold_bn(params[0]); w1, b1 = _prep_l1(params[0]["w"], s1, bv1)
    s2, bv2 = _fold_bn(params[1]); w2, b2 = _prep_rowband(params[1]["w"], s2, bv2, 4, C2)
    s3, bv3 = _fold_bn(params[2]); w3, b3 = _prep_rowband(params[2]["w"], s3, bv3, 8, C3)
    s4, bv4 = _fold_bn(params[3]); w4, b4 = _prep_rowband(params[3]["w"], s4, bv4, 16, C4)
    s5, _ = _fold_bn(params[4]);   w5, _ = _prep_rowband(params[4]["w"], s5, np.zeros((CHANNELS,), np.float32),
                                                         32, CPAD_LAST)
    return dict(w1=w1, b1=b1, w2=w2, b2=b2, w3=w3, b3=b3, w4=w4, b4=b4, w5=w5)


# =======================================================================================
# Forward pass (one fused pallas_call)
# =======================================================================================
def generator_forward(prepped, z_nchw):
    B = z_nchw.shape[0]
    z3 = z_nchw.reshape(B, 1, LATENT_DIM).astype(jnp.float32)
    w1, b1 = prepped["w1"], prepped["b1"]
    w2, b2 = prepped["w2"], prepped["b2"]
    w3, b3 = prepped["w3"], prepped["b3"]
    w4, b4 = prepped["w4"], prepped["b4"]
    w5 = prepped["w5"]

    flops = 2 * B * (LATENT_DIM * 16 * C1
                     + sum(2 * 2 * h * ROWW * ROWW for h in HS))
    bytes_acc = int(sum(x.size * x.dtype.itemsize
                        for x in (z3, w1, b1, w2, b2, w3, b3, w4, b4, w5))
                    + B * 2 * 32 * ROWW * 4)

    full = lambda a: pl.BlockSpec(a.shape, lambda b, _r=a.ndim: (0,) * _r)

    out = pl.pallas_call(
        _generator_kernel,
        out_shape=jax.ShapeDtypeStruct((B, 2, 32, ROWW), jnp.float32),
        grid=(B,),
        in_specs=[
            pl.BlockSpec((1, 1, LATENT_DIM), lambda b: (b, 0, 0)),
            full(w1), full(b1),
            full(w2), full(b2),
            full(w3), full(b3),
            full(w4), full(b4),
            full(w5),
        ],
        out_specs=pl.BlockSpec((1, 2, 32, ROWW), lambda b: (b, 0, 0, 0)),
        scratch_shapes=[
            pltpu.VMEM((4 + 2, ROWW), jnp.float32),     # padded 4x4x64
            pltpu.VMEM((8 + 2, ROWW), jnp.float32),     # padded 8x8x32
            pltpu.VMEM((16 + 2, ROWW), jnp.float32),    # padded 16x16x16
            pltpu.VMEM((32 + 2, ROWW), jnp.float32),    # padded 32x32x8
        ],
        compiler_params=pltpu.CompilerParams(dimension_semantics=("parallel",)),
        cost_estimate=pl.CostEstimate(flops=flops,
                                      transcendentals=B * 2 * 32 * ROWW,
                                      bytes_accessed=bytes_acc),
    )(z3, w1, b1, w2, b2, w3, b3, w4, b4, w5)

    # (B, parity, r, ox*4+co) -> (B, CHANNELS, 64, 64); tiny, fused by XLA.
    y = out.reshape(B, 2, 32, 64, CPAD_LAST)[..., :CHANNELS]
    return jnp.transpose(y, (0, 4, 2, 1, 3)).reshape(B, CHANNELS, 64, 64)


# =======================================================================================
# Deterministic synthetic parameters + pure-JAX reference (for a loose parity check)
# =======================================================================================
def init_generator_params(key):
    specs = [
        (LATENT_DIM, NGF * 8),   # ConvT 4,1,0 + BN + ReLU
        (NGF * 8, NGF * 4),      # ConvT 4,2,1 + BN + ReLU
        (NGF * 4, NGF * 2),      # ConvT 4,2,1 + BN + ReLU
        (NGF * 2, NGF),          # ConvT 4,2,1 + BN + ReLU
        (NGF, CHANNELS),         # ConvT 4,2,1 + Tanh
    ]
    params = []
    for i, (cin, cout) in enumerate(specs):
        key, kw_, kg, kb, km, kv = jax.random.split(key, 6)
        w = 0.02 * jax.random.normal(kw_, (cin, cout, KSIZE, KSIZE), jnp.float32)
        if i < 4:
            gamma = 1.0 + 0.1 * jax.random.normal(kg, (cout,), jnp.float32)
            beta = 0.1 * jax.random.normal(kb, (cout,), jnp.float32)
            rmean = 0.1 * jax.random.normal(km, (cout,), jnp.float32)
            rvar = jnp.abs(jax.random.normal(kv, (cout,), jnp.float32)) + 0.5
        else:
            gamma = beta = rmean = rvar = None
        params.append(dict(w=w, gamma=gamma, beta=beta, rmean=rmean, rvar=rvar))
    return params


def _ref_generator(params, z_nchw):
    x = z_nchw.astype(jnp.float32)
    for i, p in enumerate(params):
        stride, pad = (1, 0) if i == 0 else (2, 1)
        kern = jnp.transpose(jnp.flip(p["w"], (2, 3)), (1, 0, 2, 3))   # OIHW, flipped
        x = lax.conv_general_dilated(
            x, kern, window_strides=(1, 1),
            padding=[(KSIZE - 1 - pad, KSIZE - 1 - pad)] * 2,
            lhs_dilation=(stride, stride),
            dimension_numbers=("NCHW", "OIHW", "NCHW"),
            precision=lax.Precision.HIGHEST)
        if p["gamma"] is not None:
            inv = (p["gamma"] / jnp.sqrt(p["rvar"] + BN_EPS))[None, :, None, None]
            x = (x - p["rmean"][None, :, None, None]) * inv + p["beta"][None, :, None, None]
            x = jnp.maximum(x, 0.0)
        else:
            x = jnp.tanh(x)
    return x


if __name__ == "__main__":
    key = jax.random.PRNGKey(0)
    kp, kz = jax.random.split(key)
    params = init_generator_params(kp)
    prepped = prepare_generator(params)
    z = jax.random.normal(kz, (2, LATENT_DIM, 1, 1), jnp.float32)

    fwd = jax.jit(generator_forward)
    out = jax.block_until_ready(fwd(prepped, z))

    assert out.shape == (2, CHANNELS, 64, 64), out.shape
    assert bool(jnp.all(jnp.isfinite(out)))
    assert float(jnp.max(jnp.abs(out))) <= 1.0 + 1e-5          # tanh range

    ref = _ref_generator(params, z)                            # f32 reference (eval-mode BN)
    err = float(jnp.max(jnp.abs(out - ref)))
    assert err < 3e-2, f"max |kernel - reference| = {err}"
    print("KERNEL_OK")
</pallas_src>

<mosaic_0001>
module attributes {stable_mosaic.version = 11 : i64} {
  func.func @_generator_kernel(%arg0: i32, %arg1: memref<1x1x16xf32, #tpu.memory_space<vmem>>, %arg2: memref<16x1024xbf16, #tpu.memory_space<vmem>>, %arg3: memref<1x1024xf32, #tpu.memory_space<vmem>>, %arg4: memref<2x2x256x256xbf16, #tpu.memory_space<vmem>>, %arg5: memref<1x256xf32, #tpu.memory_space<vmem>>, %arg6: memref<2x2x256x256xbf16, #tpu.memory_space<vmem>>, %arg7: memref<1x256xf32, #tpu.memory_space<vmem>>, %arg8: memref<2x2x256x256xbf16, #tpu.memory_space<vmem>>, %arg9: memref<1x256xf32, #tpu.memory_space<vmem>>, %arg10: memref<2x2x256x256xbf16, #tpu.memory_space<vmem>>, %arg11: memref<1x2x32x256xf32, #tpu.memory_space<vmem>>, %arg12: memref<6x256xf32, #tpu.memory_space<vmem>>, %arg13: memref<10x256xf32, #tpu.memory_space<vmem>>, %arg14: memref<18x256xf32, #tpu.memory_space<vmem>>, %arg15: memref<34x256xf32, #tpu.memory_space<vmem>>) attributes {dimension_semantics = [#tpu.dimension_semantics<parallel>], iteration_bounds = array<i64: 2>, scalar_prefetch = 0 : i64, scratch_operands = 4 : i64, tpu.core_type = #tpu.core_type<tc>, window_params = [{transform_indices = @transform_0, window_bounds = array<i64: 1, 1, 16>}, {pipeline_mode = #tpu.pipeline_mode<synchronous>, transform_indices = @transform_1, window_bounds = array<i64: 16, 1024>}, {pipeline_mode = #tpu.pipeline_mode<synchronous>, transform_indices = @transform_2, window_bounds = array<i64: 1, 1024>}, {pipeline_mode = #tpu.pipeline_mode<synchronous>, transform_indices = @transform_3, window_bounds = array<i64: 2, 2, 256, 256>}, {pipeline_mode = #tpu.pipeline_mode<synchronous>, transform_indices = @transform_4, window_bounds = array<i64: 1, 256>}, {pipeline_mode = #tpu.pipeline_mode<synchronous>, transform_indices = @transform_5, window_bounds = array<i64: 2, 2, 256, 256>}, {pipeline_mode = #tpu.pipeline_mode<synchronous>, transform_indices = @transform_6, window_bounds = array<i64: 1, 256>}, {pipeline_mode = #tpu.pipeline_mode<synchronous>, transform_indices = @transform_7, window_bounds = array<i64: 2, 2, 256, 256>}, {pipeline_mode = #tpu.pipeline_mode<synchronous>, transform_indices = @transform_8, window_bounds = array<i64: 1, 256>}, {pipeline_mode = #tpu.pipeline_mode<synchronous>, transform_indices = @transform_9, window_bounds = array<i64: 2, 2, 256, 256>}, {transform_indices = @transform_10, window_bounds = array<i64: 1, 2, 32, 256>}]} {
    %cst = arith.constant 0.000000e+00 : f32
    %0 = vector.broadcast %cst : f32 to vector<6x256xf32>
    %c0 = arith.constant 0 : index
    %c0_0 = arith.constant 0 : index
    %1 = vector.load %arg12[%c0, %c0_0] : memref<6x256xf32, #tpu.memory_space<vmem>>, vector<6x256xf32>
    tpu.vector_store %arg12[%c0, %c0_0], %0 {strides = array<i32>} : memref<6x256xf32, #tpu.memory_space<vmem>>, vector<6x256xf32>,
    %cst_1 = arith.constant 0.000000e+00 : f32
    %2 = vector.broadcast %cst_1 : f32 to vector<10x256xf32>
    %c0_2 = arith.constant 0 : index
    %c0_3 = arith.constant 0 : index
    %3 = vector.load %arg13[%c0_2, %c0_3] : memref<10x256xf32, #tpu.memory_space<vmem>>, vector<10x256xf32>
    tpu.vector_store %arg13[%c0_2, %c0_3], %2 {strides = array<i32>} : memref<10x256xf32, #tpu.memory_space<vmem>>, vector<10x256xf32>,
    %cst_4 = arith.constant 0.000000e+00 : f32
    %4 = vector.broadcast %cst_4 : f32 to vector<18x256xf32>
    %c0_5 = arith.constant 0 : index
    %c0_6 = arith.constant 0 : index
    %5 = vector.load %arg14[%c0_5, %c0_6] : memref<18x256xf32, #tpu.memory_space<vmem>>, vector<18x256xf32>
    tpu.vector_store %arg14[%c0_5, %c0_6], %4 {strides = array<i32>} : memref<18x256xf32, #tpu.memory_space<vmem>>, vector<18x256xf32>,
    %cst_7 = arith.constant 0.000000e+00 : f32
    %6 = vector.broadcast %cst_7 : f32 to vector<34x256xf32>
    %c0_8 = arith.constant 0 : index
    %c0_9 = arith.constant 0 : index
    %7 = vector.load %arg15[%c0_8, %c0_9] : memref<34x256xf32, #tpu.memory_space<vmem>>, vector<34x256xf32>
    tpu.vector_store %arg15[%c0_8, %c0_9], %6 {strides = array<i32>} : memref<34x256xf32, #tpu.memory_space<vmem>>, vector<34x256xf32>,
    %c0_10 = arith.constant 0 : index
    %c0_11 = arith.constant 0 : index
    %c0_12 = arith.constant 0 : index
    %8 = vector.load %arg1[%c0_10, %c0_11, %c0_12] : memref<1x1x16xf32, #tpu.memory_space<vmem>>, vector<1x1x16xf32>
    %9 = vector.shape_cast %8 : vector<1x1x16xf32> to vector<1x16xf32>
    %10 = arith.truncf %9 : vector<1x16xf32> to vector<1x16xbf16>
    %c0_13 = arith.constant 0 : index
    %c0_14 = arith.constant 0 : index
    %11 = vector.load %arg2[%c0_13, %c0_14] : memref<16x1024xbf16, #tpu.memory_space<vmem>>, vector<16x1024xbf16>
    %cst_15 = arith.constant dense<0.000000e+00> : vector<1x1024xf32>
    %12 = tpu.matmul %10, %11, %cst_15 {dimension_numbers = #tpu.dot_dimension_numbers<[1], [0], [0], [1], [0, 0, 1, 1], [], []>} : vector<1x16xbf16>, vector<16x1024xbf16>, vector<1x1024xf32> -> vector<1x1024xf32>
    %c0_16 = arith.constant 0 : index
    %c0_17 = arith.constant 0 : index
    %13 = vector.load %arg3[%c0_16, %c0_17] : memref<1x1024xf32, #tpu.memory_space<vmem>>, vector<1x1024xf32>
    %14 = arith.addf %12, %13 : vector<1x1024xf32>
    %cst_18 = arith.constant 0.000000e+00 : f32
    %15 = vector.broadcast %cst_18 : f32 to vector<1x1024xf32>
    %16 = arith.maximumf %14, %15 : vector<1x1024xf32>
    %17 = vector.extract_strided_slice %16 {offsets = [0, 0], sizes = [1, 256], strides = [1, 1]} : vector<1x1024xf32> to vector<1x256xf32>
    %c1 = arith.constant 1 : index
    %c0_19 = arith.constant 0 : index
    %18 = vector.load %arg12[%c1, %c0_19] : memref<6x256xf32, #tpu.memory_space<vmem>>, vector<1x256xf32>
    tpu.vector_store %arg12[%c1, %c0_19], %17 {strides = array<i32>} : memref<6x256xf32, #tpu.memory_space<vmem>>, vector<1x256xf32>,
    %19 = vector.extract_strided_slice %16 {offsets = [0, 256], sizes = [1, 256], strides = [1, 1]} : vector<1x1024xf32> to vector<1x256xf32>
    %c2 = arith.constant 2 : index
    %c0_20 = arith.constant 0 : index
    %20 = vector.load %arg12[%c2, %c0_20] : memref<6x256xf32, #tpu.memory_space<vmem>>, vector<1x256xf32>
    tpu.vector_store %arg12[%c2, %c0_20], %19 {strides = array<i32>} : memref<6x256xf32, #tpu.memory_space<vmem>>, vector<1x256xf32>,
    %21 = vector.extract_strided_slice %16 {offsets = [0, 512], sizes = [1, 256], strides = [1, 1]} : vector<1x1024xf32> to vector<1x256xf32>
    %c3 = arith.constant 3 : index
    %c0_21 = arith.constant 0 : index
    %22 = vector.load %arg12[%c3, %c0_21] : memref<6x256xf32, #tpu.memory_space<vmem>>, vector<1x256xf32>
    tpu.vector_store %arg12[%c3, %c0_21], %21 {strides = array<i32>} : memref<6x256xf32, #tpu.memory_space<vmem>>, vector<1x256xf32>,
    %23 = vector.extract_strided_slice %16 {offsets = [0, 768], sizes = [1, 256], strides = [1, 1]} : vector<1x1024xf32> to vector<1x256xf32>
    %c4 = arith.constant 4 : index
    %c0_22 = arith.constant 0 : index
    %24 = vector.load %arg12[%c4, %c0_22] : memref<6x256xf32, #tpu.memory_space<vmem>>, vector<1x256xf32>
    tpu.vector_store %arg12[%c4, %c0_22], %23 {strides = array<i32>} : memref<6x256xf32, #tpu.memory_space<vmem>>, vector<1x256xf32>,
    %c0_23 = arith.constant 0 : index
    %c0_24 = arith.constant 0 : index
    %25 = vector.load %arg5[%c0_23, %c0_24] : memref<1x256xf32, #tpu.memory_space<vmem>>, vector<1x256xf32>
    %c0_25 = arith.constant 0 : index
    %c0_26 = arith.constant 0 : index
    %26 = vector.load %arg12[%c0_25, %c0_26] : memref<6x256xf32, #tpu.memory_space<vmem>>, vector<4x256xf32>
    %27 = arith.truncf %26 : vector<4x256xf32> to vector<4x256xbf16>
    %c1_27 = arith.constant 1 : index
    %c0_28 = arith.constant 0 : index
    %28 = vector.load %arg12[%c1_27, %c0_28] : memref<6x256xf32, #tpu.memory_space<vmem>>, vector<4x256xf32>
    %29 = arith.truncf %28 : vector<4x256xf32> to vector<4x256xbf16>
    %c0_29 = arith.constant 0 : index
    %c0_30 = arith.constant 0 : index
    %c0_31 = arith.constant 0 : index
    %c0_32 = arith.constant 0 : index
    %30 = vector.load %arg4[%c0_29, %c0_30, %c0_31, %c0_32] : memref<2x2x256x256xbf16, #tpu.memory_space<vmem>>, vector<1x1x256x256xbf16>
    %31 = vector.shape_cast %30 : vector<1x1x256x256xbf16> to vector<256x256xbf16>
    %cst_33 = arith.constant dense<0.000000e+00> : vector<4x256xf32>
    %32 = tpu.matmul %27, %31, %cst_33 {dimension_numbers = #tpu.dot_dimension_numbers<[1], [0], [0], [1], [0, 0, 1, 1], [], []>} : vector<4x256xbf16>, vector<256x256xbf16>, vector<4x256xf32> -> vector<4x256xf32>
    %c0_34 = arith.constant 0 : index
    %c1_35 = arith.constant 1 : index
    %c0_36 = arith.constant 0 : index
    %c0_37 = arith.constant 0 : index
    %33 = vector.load %arg4[%c0_34, %c1_35, %c0_36, %c0_37] : memref<2x2x256x256xbf16, #tpu.memory_space<vmem>>, vector<1x1x256x256xbf16>
    %34 = vector.shape_cast %33 : vector<1x1x256x256xbf16> to vector<256x256xbf16>
    %cst_38 = arith.constant dense<0.000000e+00> : vector<4x256xf32>
    %35 = tpu.matmul %29, %34, %cst_38 {dimension_numbers = #tpu.dot_dimension_numbers<[1], [0], [0], [1], [0, 0, 1, 1], [], []>} : vector<4x256xbf16>, vector<256x256xbf16>, vector<4x256xf32> -> vector<4x256xf32>
    %36 = arith.addf %32, %35 : vector<4x256xf32>
    %37 = vector.broadcast %25 : vector<1x256xf32> to vector<4x256xf32>
    %38 = arith.addf %36, %37 : vector<4x256xf32>
    %cst_39 = arith.constant 0.000000e+00 : f32
    %39 = vector.broadcast %cst_39 : f32 to vector<4x256xf32>
    %40 = arith.maximumf %38, %39 : vector<4x256xf32>
    %c1_40 = arith.constant 1 : index
    %c0_41 = arith.constant 0 : index
    %41 = vector.load %arg12[%c1_40, %c0_41] : memref<6x256xf32, #tpu.memory_space<vmem>>, vector<4x256xf32>
    %42 = arith.truncf %41 : vector<4x256xf32> to vector<4x256xbf16>
    %c2_42 = arith.constant 2 : index
    %c0_43 = arith.constant 0 : index
    %43 = vector.load %arg12[%c2_42, %c0_43] : memref<6x256xf32, #tpu.memory_space<vmem>>, vector<4x256xf32>
    %44 = arith.truncf %43 : vector<4x256xf32> to vector<4x256xbf16>
    %c1_44 = arith.constant 1 : index
    %c0_45 = arith.constant 0 : index
    %c0_46 = arith.constant 0 : index
    %c0_47 = arith.constant 0 : index
    %45 = vector.load %arg4[%c1_44, %c0_45, %c0_46, %c0_47] : memref<2x2x256x256xbf16, #tpu.memory_space<vmem>>, vector<1x1x256x256xbf16>
    %46 = vector.shape_cast %45 : vector<1x1x256x256xbf16> to vector<256x256xbf16>
    %cst_48 = arith.constant dense<0.000000e+00> : vector<4x256xf32>
    %47 = tpu.matmul %42, %46, %cst_48 {dimension_numbers = #tpu.dot_dimension_numbers<[1], [0], [0], [1], [0, 0, 1, 1], [], []>} : vector<4x256xbf16>, vector<256x256xbf16>, vector<4x256xf32> -> vector<4x256xf32>
    %c1_49 = arith.constant 1 : index
    %c1_50 = arith.constant 1 : index
    %c0_51 = arith.constant 0 : index
    %c0_52 = arith.constant 0 : index
    %48 = vector.load %arg4[%c1_49, %c1_50, %c0_51, %c0_52] : memref<2x2x256x256xbf16, #tpu.memory_space<vmem>>, vector<1x1x256x256xbf16>
    %49 = vector.shape_cast %48 : vector<1x1x256x256xbf16> to vector<256x256xbf16>
    %cst_53 = arith.constant dense<0.000000e+00> : vector<4x256xf32>
    %50 = tpu.matmul %44, %49, %cst_53 {dimension_numbers = #tpu.dot_dimension_numbers<[1], [0], [0], [1], [0, 0, 1, 1], [], []>} : vector<4x256xbf16>, vector<256x256xbf16>, vector<4x256xf32> -> vector<4x256xf32>
    %51 = arith.addf %47, %50 : vector<4x256xf32>
    %52 = vector.broadcast %25 : vector<1x256xf32> to vector<4x256xf32>
    %53 = arith.addf %51, %52 : vector<4x256xf32>
    %cst_54 = arith.constant 0.000000e+00 : f32
    %54 = vector.broadcast %cst_54 : f32 to vector<4x256xf32>
    %55 = arith.maximumf %53, %54 : vector<4x256xf32>
    %56 = vector.extract_strided_slice %40 {offsets = [0, 0], sizes = [1, 256], strides = [1, 1]} : vector<4x256xf32> to vector<1x256xf32>
    %c1_55 = arith.constant 1 : index
    %c0_56 = arith.constant 0 : index
    %57 = vector.load %arg13[%c1_55, %c0_56] : memref<10x256xf32, #tpu.memory_space<vmem>>, vector<1x256xf32>
    tpu.vector_store %arg13[%c1_55, %c0_56], %56 {strides = array<i32>} : memref<10x256xf32, #tpu.memory_space<vmem>>, vector<1x256xf32>,
    %58 = vector.extract_strided_slice %55 {offsets = [0, 0], sizes = [1, 256], strides = [1, 1]} : vector<4x256xf32> to vector<1x256xf32>
    %c2_57 = arith.constant 2 : index
    %c0_58 = arith.constant 0 : index
    %59 = vector.load %arg13[%c2_57, %c0_58] : memref<10x256xf32, #tpu.memory_space<vmem>>, vector<1x256xf32>
    tpu.vector_store %arg13[%c2_57, %c0_58], %58 {strides = array<i32>} : memref<10x256xf32, #tpu.memory_space<vmem>>, vector<1x256xf32>,
    %60 = vector.extract_strided_slice %40 {offsets = [1, 0], sizes = [1, 256], strides = [1, 1]} : vector<4x256xf32> to vector<1x256xf32>
    %c3_59 = arith.constant 3 : index
    %c0_60 = arith.constant 0 : index
    %61 = vector.load %arg13[%c3_59, %c0_60] : memref<10x256xf32, #tpu.memory_space<vmem>>, vector<1x256xf32>
    tpu.vector_store %arg13[%c3_59, %c0_60], %60 {strides = array<i32>} : memref<10x256xf32, #tpu.memory_space<vmem>>, vector<1x256xf32>,
    %62 = vector.extract_strided_slice %55 {offsets = [1, 0], sizes = [1, 256], strides = [1, 1]} : vector<4x256xf32> to vector<1x256xf32>
    %c4_61 = arith.constant 4 : index
    %c0_62 = arith.constant 0 : index
    %63 = vector.load %arg13[%c4_61, %c0_62] : memref<10x256xf32, #tpu.memory_space<vmem>>, vector<1x256xf32>
    tpu.vector_store %arg13[%c4_61, %c0_62], %62 {strides = array<i32>} : memref<10x256xf32, #tpu.memory_space<vmem>>, vector<1x256xf32>,
    %64 = vector.extract_strided_slice %40 {offsets = [2, 0], sizes = [1, 256], strides = [1, 1]} : vector<4x256xf32> to vector<1x256xf32>
    %c5 = arith.constant 5 : index
    %c0_63 = arith.constant 0 : index
    %65 = vector.load %arg13[%c5, %c0_63] : memref<10x256xf32, #tpu.memory_space<vmem>>, vector<1x256xf32>
    tpu.vector_store %arg13[%c5, %c0_63], %64 {strides = array<i32>} : memref<10x256xf32, #tpu.memory_space<vmem>>, vector<1x256xf32>,
    %66 = vector.extract_strided_slice %55 {offsets = [2, 0], sizes = [1, 256], strides = [1, 1]} : vector<4x256xf32> to vector<1x256xf32>
    %c6 = arith.constant 6 : index
    %c0_64 = arith.constant 0 : index
    %67 = vector.load %arg13[%c6, %c0_64] : memref<10x256xf32, #tpu.memory_space<vmem>>, vector<1x256xf32>
    tpu.vector_store %arg13[%c6, %c0_64], %66 {strides = array<i32>} : memref<10x256xf32, #tpu.memory_space<vmem>>, vector<1x256xf32>,
    %68 = vector.extract_strided_slice %40 {offsets = [3, 0], sizes = [1, 256], strides = [1, 1]} : vector<4x256xf32> to vector<1x256xf32>
    %c7 = arith.constant 7 : index
    %c0_65 = arith.constant 0 : index
    %69 = vector.load %arg13[%c7, %c0_65] : memref<10x256xf32, #tpu.memory_space<vmem>>, vector<1x256xf32>
    tpu.vector_store %arg13[%c7, %c0_65], %68 {strides = array<i32>} : memref<10x256xf32, #tpu.memory_space<vmem>>, vector<1x256xf32>,
    %70 = vector.extract_strided_slice %55 {offsets = [3, 0], sizes = [1, 256], strides = [1, 1]} : vector<4x256xf32> to vector<1x256xf32>
    %c8 = arith.constant 8 : index
    %c0_66 = arith.constant 0 : index
    %71 = vector.load %arg13[%c8, %c0_66] : memref<10x256xf32, #tpu.memory_space<vmem>>, vector<1x256xf32>
    tpu.vector_store %arg13[%c8, %c0_66], %70 {strides = array<i32>} : memref<10x256xf32, #tpu.memory_space<vmem>>, vector<1x256xf32>,
    %c0_67 = arith.constant 0 : index
    %c0_68 = arith.constant 0 : index
    %72 = vector.load %arg7[%c0_67, %c0_68] : memref<1x256xf32, #tpu.memory_space<vmem>>, vector<1x256xf32>
    %c0_69 = arith.constant 0 : index
    %c0_70 = arith.constant 0 : index
    %73 = vector.load %arg13[%c0_69, %c0_70] : memref<10x256xf32, #tpu.memory_space<vmem>>, vector<8x256xf32>
    %74 = arith.truncf %73 : vector<8x256xf32> to vector<8x256xbf16>
    %c1_71 = arith.constant 1 : index
    %c0_72 = arith.constant 0 : index
    %75 = vector.load %arg13[%c1_71, %c0_72] : memref<10x256xf32, #tpu.memory_space<vmem>>, vector<8x256xf32>
    %76 = arith.truncf %75 : vector<8x256xf32> to vector<8x256xbf16>
    %c0_73 = arith.constant 0 : index
    %c0_74 = arith.constant 0 : index
    %c0_75 = arith.constant 0 : index
    %c0_76 = arith.constant 0 : index
    %77 = vector.load %arg6[%c0_73, %c0_74, %c0_75, %c0_76] : memref<2x2x256x256xbf16, #tpu.memory_space<vmem>>, vector<1x1x256x256xbf16>
    %78 = vector.shape_cast %77 : vector<1x1x256x256xbf16> to vector<256x256xbf16>
    %cst_77 = arith.constant dense<0.000000e+00> : vector<8x256xf32>
    %79 = tpu.matmul %74, %78, %cst_77 {dimension_numbers = #tpu.dot_dimension_numbers<[1], [0], [0], [1], [0, 0, 1, 1], [], []>} : vector<8x256xbf16>, vector<256x256xbf16>, vector<8x256xf32> -> vector<8x256xf32>
    %c0_78 = arith.constant 0 : index
    %c1_79 = arith.constant 1 : index
    %c0_80 = arith.constant 0 : index
    %c0_81 = arith.constant 0 : index
    %80 = vector.load %arg6[%c0_78, %c1_79, %c0_80, %c0_81] : memref<2x2x256x256xbf16, #tpu.memory_space<vmem>>, vector<1x1x256x256xbf16>
    %81 = vector.shape_cast %80 : vector<1x1x256x256xbf16> to vector<256x256xbf16>
    %cst_82 = arith.constant dense<0.000000e+00> : vector<8x256xf32>
    %82 = tpu.matmul %76, %81, %cst_82 {dimension_numbers = #tpu.dot_dimension_numbers<[1], [0], [0], [1], [0, 0, 1, 1], [], []>} : vector<8x256xbf16>, vector<256x256xbf16>, vector<8x256xf32> -> vector<8x256xf32>
    %83 = arith.addf %79, %82 : vector<8x256xf32>
    %84 = vector.broadcast %72 : vector<1x256xf32> to vector<8x256xf32>
    %85 = arith.addf %83, %84 : vector<8x256xf32>
    %cst_83 = arith.constant 0.000000e+00 : f32
    %86 = vector.broadcast %cst_83 : f32 to vector<8x256xf32>
    %87 = arith.maximumf %85, %86 : vector<8x256xf32>
    %c1_84 = arith.constant 1 : index
    %c0_85 = arith.constant 0 : index
    %88 = vector.load %arg13[%c1_84, %c0_85] : memref<10x256xf32, #tpu.memory_space<vmem>>, vector<8x256xf32>
    %89 = arith.truncf %88 : vector<8x256xf32> to vector<8x256xbf16>
    %c2_86 = arith.constant 2 : index
    %c0_87 = arith.constant 0 : index
    %90 = vector.load %arg13[%c2_86, %c0_87] : memref<10x256xf32, #tpu.memory_space<vmem>>, vector<8x256xf32>
    %91 = arith.truncf %90 : vector<8x256xf32> to vector<8x256xbf16>
    %c1_88 = arith.constant 1 : index
    %c0_89 = arith.constant 0 : index
    %c0_90 = arith.constant 0 : index
    %c0_91 = arith.constant 0 : index
    %92 = vector.load %arg6[%c1_88, %c0_89, %c0_90, %c0_91] : memref<2x2x256x256xbf16, #tpu.memory_space<vmem>>, vector<1x1x256x256xbf16>
    %93 = vector.shape_cast %92 : vector<1x1x256x256xbf16> to vector<256x256xbf16>
    %cst_92 = arith.constant dense<0.000000e+00> : vector<8x256xf32>
    %94 = tpu.matmul %89, %93, %cst_92 {dimension_numbers = #tpu.dot_dimension_numbers<[1], [0], [0], [1], [0, 0, 1, 1], [], []>} : vector<8x256xbf16>, vector<256x256xbf16>, vector<8x256xf32> -> vector<8x256xf32>
    %c1_93 = arith.constant 1 : index
    %c1_94 = arith.constant 1 : index
    %c0_95 = arith.constant 0 : index
    %c0_96 = arith.constant 0 : index
    %95 = vector.load %arg6[%c1_93, %c1_94, %c0_95, %c0_96] : memref<2x2x256x256xbf16, #tpu.memory_space<vmem>>, vector<1x1x256x256xbf16>
    %96 = vector.shape_cast %95 : vector<1x1x256x256xbf16> to vector<256x256xbf16>
    %cst_97 = arith.constant dense<0.000000e+00> : vector<8x256xf32>
    %97 = tpu.matmul %91, %96, %cst_97 {dimension_numbers = #tpu.dot_dimension_numbers<[1], [0], [0], [1], [0, 0, 1, 1], [], []>} : vector<8x256xbf16>, vector<256x256xbf16>, vector<8x256xf32> -> vector<8x256xf32>
    %98 = arith.addf %94, %97 : vector<8x256xf32>
    %99 = vector.broadcast %72 : vector<1x256xf32> to vector<8x256xf32>
    %100 = arith.addf %98, %99 : vector<8x256xf32>
    %cst_98 = arith.constant 0.000000e+00 : f32
    %101 = vector.broadcast %cst_98 : f32 to vector<8x256xf32>
    %102 = arith.maximumf %100, %101 : vector<8x256xf32>
    %103 = vector.extract_strided_slice %87 {offsets = [0, 0], sizes = [1, 256], strides = [1, 1]} : vector<8x256xf32> to vector<1x256xf32>
    %c1_99 = arith.constant 1 : index
    %c0_100 = arith.constant 0 : index
    %104 = vector.load %arg14[%c1_99, %c0_100] : memref<18x256xf32, #tpu.memory_space<vmem>>, vector<1x256xf32>
    tpu.vector_store %arg14[%c1_99, %c0_100], %103 {strides = array<i32>} : memref<18x256xf32, #tpu.memory_space<vmem>>, vector<1x256xf32>,
    %105 = vector.extract_strided_slice %102 {offsets = [0, 0], sizes = [1, 256], strides = [1, 1]} : vector<8x256xf32> to vector<1x256xf32>
    %c2_101 = arith.constant 2 : index
    %c0_102 = arith.constant 0 : index
    %106 = vector.load %arg14[%c2_101, %c0_102] : memref<18x256xf32, #tpu.memory_space<vmem>>, vector<1x256xf32>
    tpu.vector_store %arg14[%c2_101, %c0_102], %105 {strides = array<i32>} : memref<18x256xf32, #tpu.memory_space<vmem>>, vector<1x256xf32>,
    %107 = vector.extract_strided_slice %87 {offsets = [1, 0], sizes = [1, 256], strides = [1, 1]} : vector<8x256xf32> to vector<1x256xf32>
    %c3_103 = arith.constant 3 : index
    %c0_104 = arith.constant 0 : index
    %108 = vector.load %arg14[%c3_103, %c0_104] : memref<18x256xf32, #tpu.memory_space<vmem>>, vector<1x256xf32>
    tpu.vector_store %arg14[%c3_103, %c0_104], %107 {strides = array<i32>} : memref<18x256xf32, #tpu.memory_space<vmem>>, vector<1x256xf32>,
    %109 = vector.extract_strided_slice %102 {offsets = [1, 0], sizes = [1, 256], strides = [1, 1]} : vector<8x256xf32> to vector<1x256xf32>
    %c4_105 = arith.constant 4 : index
    %c0_106 = arith.constant 0 : index
    %110 = vector.load %arg14[%c4_105, %c0_106] : memref<18x256xf32, #tpu.memory_space<vmem>>, vector<1x256xf32>
    tpu.vector_store %arg14[%c4_105, %c0_106], %109 {strides = array<i32>} : memref<18x256xf32, #tpu.memory_space<vmem>>, vector<1x256xf32>,
    %111 = vector.extract_strided_slice %87 {offsets = [2, 0], sizes = [1, 256], strides = [1, 1]} : vector<8x256xf32> to vector<1x256xf32>
    %c5_107 = arith.constant 5 : index
    %c0_108 = arith.constant 0 : index
    %112 = vector.load %arg14[%c5_107, %c0_108] : memref<18x256xf32, #tpu.memory_space<vmem>>, vector<1x256xf32>
    tpu.vector_store %arg14[%c5_107, %c0_108], %111 {strides = array<i32>} : memref<18x256xf32, #tpu.memory_space<vmem>>, vector<1x256xf32>,
    %113 = vector.extract_strided_slice %102 {offsets = [2, 0], sizes = [1, 256], strides = [1, 1]} : vector<8x256xf32> to vector<1x256xf32>
    %c6_109 = arith.constant 6 : index
    %c0_110 = arith.constant 0 : index
    %114 = vector.load %arg14[%c6_109, %c0_110] : memref<18x256xf32, #tpu.memory_space<vmem>>, vector<1x256xf32>
    tpu.vector_store %arg14[%c6_109, %c0_110], %113 {strides = array<i32>} : memref<18x256xf32, #tpu.memory_space<vmem>>, vector<1x256xf32>,
    %115 = vector.extract_strided_slice %87 {offsets = [3, 0], sizes = [1, 256], strides = [1, 1]} : vector<8x256xf32> to vector<1x256xf32>
    %c7_111 = arith.constant 7 : index
    %c0_112 = arith.constant 0 : index
    %116 = vector.load %arg14[%c7_111, %c0_112] : memref<18x256xf32, #tpu.memory_space<vmem>>, vector<1x256xf32>
    tpu.vector_store %arg14[%c7_111, %c0_112], %115 {strides = array<i32>} : memref<18x256xf32, #tpu.memory_space<vmem>>, vector<1x256xf32>,
    %117 = vector.extract_strided_slice %102 {offsets = [3, 0], sizes = [1, 256], strides = [1, 1]} : vector<8x256xf32> to vector<1x256xf32>
    %c8_113 = arith.constant 8 : index
    %c0_114 = arith.constant 0 : index
    %118 = vector.load %arg14[%c8_113, %c0_114] : memref<18x256xf32, #tpu.memory_space<vmem>>, vector<1x256xf32>
    tpu.vector_store %arg14[%c8_113, %c0_114], %117 {strides = array<i32>} : memref<18x256xf32, #tpu.memory_space<vmem>>, vector<1x256xf32>,
    %119 = vector.extract_strided_slice %87 {offsets = [4, 0], sizes = [1, 256], strides = [1, 1]} : vector<8x256xf32> to vector<1x256xf32>
    %c9 = arith.constant 9 : index
    %c0_115 = arith.constant 0 : index
    %120 = vector.load %arg14[%c9, %c0_115] : memref<18x256xf32, #tpu.memory_space<vmem>>, vector<1x256xf32>
    tpu.vector_store %arg14[%c9, %c0_115], %119 {strides = array<i32>} : memref<18x256xf32, #tpu.memory_space<vmem>>, vector<1x256xf32>,
    %121 = vector.extract_strided_slice %102 {offsets = [4, 0], sizes = [1, 256], strides = [1, 1]} : vector<8x256xf32> to vector<1x256xf32>
    %c10 = arith.constant 10 : index
    %c0_116 = arith.constant 0 : index
    %122 = vector.load %arg14[%c10, %c0_116] : memref<18x256xf32, #tpu.memory_space<vmem>>, vector<1x256xf32>
    tpu.vector_store %arg14[%c10, %c0_116], %121 {strides = array<i32>} : memref<18x256xf32, #tpu.memory_space<vmem>>, vector<1x256xf32>,
    %123 = vector.extract_strided_slice %87 {offsets = [5, 0], sizes = [1, 256], strides = [1, 1]} : vector<8x256xf32> to vector<1x256xf32>
    %c11 = arith.constant 11 : index
    %c0_117 = arith.constant 0 : index
    %124 = vector.load %arg14[%c11, %c0_117] : memref<18x256xf32, #tpu.memory_space<vmem>>, vector<1x256xf32>
    tpu.vector_store %arg14[%c11, %c0_117], %123 {strides = array<i32>} : memref<18x256xf32, #tpu.memory_space<vmem>>, vector<1x256xf32>,
    %125 = vector.extract_strided_slice %102 {offsets = [5, 0], sizes = [1, 256], strides = [1, 1]} : vector<8x256xf32> to vector<1x256xf32>
    %c12 = arith.constant 12 : index
    %c0_118 = arith.constant 0 : index
    %126 = vector.load %arg14[%c12, %c0_118] : memref<18x256xf32, #tpu.memory_space<vmem>>, vector<1x256xf32>
    tpu.vector_store %arg14[%c12, %c0_118], %125 {strides = array<i32>} : memref<18x256xf32, #tpu.memory_space<vmem>>, vector<1x256xf32>,
    %127 = vector.extract_strided_slice %87 {offsets = [6, 0], sizes = [1, 256], strides = [1, 1]} : vector<8x256xf32> to vector<1x256xf32>
    %c13 = arith.constant 13 : index
    %c0_119 = arith.constant 0 : index
    %128 = vector.load %arg14[%c13, %c0_119] : memref<18x256xf32, #tpu.memory_space<vmem>>, vector<1x256xf32>
    tpu.vector_store %arg14[%c13, %c0_119], %127 {strides = array<i32>} : memref<18x256xf32, #tpu.memory_space<vmem>>, vector<1x256xf32>,
    %129 = vector.extract_strided_slice %102 {offsets = [6, 0], sizes = [1, 256], strides = [1, 1]} : vector<8x256xf32> to vector<1x256xf32>
    %c14 = arith.constant 14 : index
    %c0_120 = arith.constant 0 : index
    %130 = vector.load %arg14[%c14, %c0_120] : memref<18x256xf32, #tpu.memory_space<vmem>>, vector<1x256xf32>
    tpu.vector_store %arg14[%c14, %c0_120], %129 {strides = array<i32>} : memref<18x256xf32, #tpu.memory_space<vmem>>, vector<1x256xf32>,
    %131 = vector.extract_strided_slice %87 {offsets = [7, 0], sizes = [1, 256], strides = [1, 1]} : vector<8x256xf32> to vector<1x256xf32>
    %c15 = arith.constant 15 : index
    %c0_121 = arith.constant 0 : index
    %132 = vector.load %arg14[%c15, %c0_121] : memref<18x256xf32, #tpu.memory_space<vmem>>, vector<1x256xf32>
    tpu.vector_store %arg14[%c15, %c0_121], %131 {strides = array<i32>} : memref<18x256xf32, #tpu.memory_space<vmem>>, vector<1x256xf32>,
    %133 = vector.extract_strided_slice %102 {offsets = [7, 0], sizes = [1, 256], strides = [1, 1]} : vector<8x256xf32> to vector<1x256xf32>
    %c16 = arith.constant 16 : index
    %c0_122 = arith.constant 0 : index
    %134 = vector.load %arg14[%c16, %c0_122] : memref<18x256xf32, #tpu.memory_space<vmem>>, vector<1x256xf32>
    tpu.vector_store %arg14[%c16, %c0_122], %133 {strides = array<i32>} : memref<18x256xf32, #tpu.memory_space<vmem>>, vector<1x256xf32>,
    %c0_123 = arith.constant 0 : index
    %c0_124 = arith.constant 0 : index
    %135 = vector.load %arg9[%c0_123, %c0_124] : memref<1x256xf32, #tpu.memory_space<vmem>>, vector<1x256xf32>
    %c0_125 = arith.constant 0 : index
    %c0_126 = arith.constant 0 : index
    %136 = vector.load %arg14[%c0_125, %c0_126] : memref<18x256xf32, #tpu.memory_space<vmem>>, vector<16x256xf32>
    %137 = arith.truncf %136 : vector<16x256xf32> to vector<16x256xbf16>
    %c1_127 = arith.constant 1 : index
    %c0_128 = arith.constant 0 : index
    %138 = vector.load %arg14[%c1_127, %c0_128] : memref<18x256xf32, #tpu.memory_space<vmem>>, vector<16x256xf32>
    %139 = arith.truncf %138 : vector<16x256xf32> to vector<16x256xbf16>
    %c0_129 = arith.constant 0 : index
    %c0_130 = arith.constant 0 : index
    %c0_131 = arith.constant 0 : index
    %c0_132 = arith.constant 0 : index
    %140 = vector.load %arg8[%c0_129, %c0_130, %c0_131, %c0_132] : memref<2x2x256x256xbf16, #tpu.memory_space<vmem>>, vector<1x1x256x256xbf16>
    %141 = vector.shape_cast %140 : vector<1x1x256x256xbf16> to vector<256x256xbf16>
    %cst_133 = arith.constant dense<0.000000e+00> : vector<16x256xf32>
    %142 = tpu.matmul %137, %141, %cst_133 {dimension_numbers = #tpu.dot_dimension_numbers<[1], [0], [0], [1], [0, 0, 1, 1], [], []>} : vector<16x256xbf16>, vector<256x256xbf16>, vector<16x256xf32> -> vector<16x256xf32>
    %c0_134 = arith.constant 0 : index
    %c1_135 = arith.constant 1 : index
    %c0_136 = arith.constant 0 : index
    %c0_137 = arith.constant 0 : index
    %143 = vector.load %arg8[%c0_134, %c1_135, %c0_136, %c0_137] : memref<2x2x256x256xbf16, #tpu.memory_space<vmem>>, vector<1x1x256x256xbf16>
    %144 = vector.shape_cast %143 : vector<1x1x256x256xbf16> to vector<256x256xbf16>
    %cst_138 = arith.constant dense<0.000000e+00> : vector<16x256xf32>
    %145 = tpu.matmul %139, %144, %cst_138 {dimension_numbers = #tpu.dot_dimension_numbers<[1], [0], [0], [1], [0, 0, 1, 1], [], []>} : vector<16x256xbf16>, vector<256x256xbf16>, vector<16x256xf32> -> vector<16x256xf32>
    %146 = arith.addf %142, %145 : vector<16x256xf32>
    %147 = vector.broadcast %135 : vector<1x256xf32> to vector<16x256xf32>
    %148 = arith.addf %146, %147 : vector<16x256xf32>
    %cst_139 = arith.constant 0.000000e+00 : f32
    %149 = vector.broadcast %cst_139 : f32 to vector<16x256xf32>
    %150 = arith.maximumf %148, %149 : vector<16x256xf32>
    %c1_140 = arith.constant 1 : index
    %c0_141 = arith.constant 0 : index
    %151 = vector.load %arg14[%c1_140, %c0_141] : memref<18x256xf32, #tpu.memory_space<vmem>>, vector<16x256xf32>
    %152 = arith.truncf %151 : vector<16x256xf32> to vector<16x256xbf16>
    %c2_142 = arith.constant 2 : index
    %c0_143 = arith.constant 0 : index
    %153 = vector.load %arg14[%c2_142, %c0_143] : memref<18x256xf32, #tpu.memory_space<vmem>>, vector<16x256xf32>
    %154 = arith.truncf %153 : vector<16x256xf32> to vector<16x256xbf16>
    %c1_144 = arith.constant 1 : index
    %c0_145 = arith.constant 0 : index
    %c0_146 = arith.constant 0 : index
    %c0_147 = arith.constant 0 : index
    %155 = vector.load %arg8[%c1_144, %c0_145, %c0_146, %c0_147] : memref<2x2x256x256xbf16, #tpu.memory_space<vmem>>, vector<1x1x256x256xbf16>
    %156 = vector.shape_cast %155 : vector<1x1x256x256xbf16> to vector<256x256xbf16>
    %cst_148 = arith.constant dense<0.000000e+00> : vector<16x256xf32>
    %157 = tpu.matmul %152, %156, %cst_148 {dimension_numbers = #tpu.dot_dimension_numbers<[1], [0], [0], [1], [0, 0, 1, 1], [], []>} : vector<16x256xbf16>, vector<256x256xbf16>, vector<16x256xf32> -> vector<16x256xf32>
    %c1_149 = arith.constant 1 : index
    %c1_150 = arith.constant 1 : index
    %c0_151 = arith.constant 0 : index
    %c0_152 = arith.constant 0 : index
    %158 = vector.load %arg8[%c1_149, %c1_150, %c0_151, %c0_152] : memref<2x2x256x256xbf16, #tpu.memory_space<vmem>>, vector<1x1x256x256xbf16>
    %159 = vector.shape_cast %158 : vector<1x1x256x256xbf16> to vector<256x256xbf16>
    %cst_153 = arith.constant dense<0.000000e+00> : vector<16x256xf32>
    %160 = tpu.matmul %154, %159, %cst_153 {dimension_numbers = #tpu.dot_dimension_numbers<[1], [0], [0], [1], [0, 0, 1, 1], [], []>} : vector<16x256xbf16>, vector<256x256xbf16>, vector<16x256xf32> -> vector<16x256xf32>
    %161 = arith.addf %157, %160 : vector<16x256xf32>
    %162 = vector.broadcast %135 : vector<1x256xf32> to vector<16x256xf32>
    %163 = arith.addf %161, %162 : vector<16x256xf32>
    %cst_154 = arith.constant 0.000000e+00 : f32
    %164 = vector.broadcast %cst_154 : f32 to vector<16x256xf32>
    %165 = arith.maximumf %163, %164 : vector<16x256xf32>
    %166 = vector.extract_strided_slice %150 {offsets = [0, 0], sizes = [1, 256], strides = [1, 1]} : vector<16x256xf32> to vector<1x256xf32>
    %c1_155 = arith.constant 1 : index
    %c0_156 = arith.constant 0 : index
    %167 = vector.load %arg15[%c1_155, %c0_156] : memref<34x256xf32, #tpu.memory_space<vmem>>, vector<1x256xf32>
    tpu.vector_store %arg15[%c1_155, %c0_156], %166 {strides = array<i32>} : memref<34x256xf32, #tpu.memory_space<vmem>>, vector<1x256xf32>,
    %168 = vector.extract_strided_slice %165 {offsets = [0, 0], sizes = [1, 256], strides = [1, 1]} : vector<16x256xf32> to vector<1x256xf32>
    %c2_157 = arith.constant 2 : index
    %c0_158 = arith.constant 0 : index
    %169 = vector.load %arg15[%c2_157, %c0_158] : memref<34x256xf32, #tpu.memory_space<vmem>>, vector<1x256xf32>
    tpu.vector_store %arg15[%c2_157, %c0_158], %168 {strides = array<i32>} : memref<34x256xf32, #tpu.memory_space<vmem>>, vector<1x256xf32>,
    %170 = vector.extract_strided_slice %150 {offsets = [1, 0], sizes = [1, 256], strides = [1, 1]} : vector<16x256xf32> to vector<1x256xf32>
    %c3_159 = arith.constant 3 : index
    %c0_160 = arith.constant 0 : index
    %171 = vector.load %arg15[%c3_159, %c0_160] : memref<34x256xf32, #tpu.memory_space<vmem>>, vector<1x256xf32>
    tpu.vector_store %arg15[%c3_159, %c0_160], %170 {strides = array<i32>} : memref<34x256xf32, #tpu.memory_space<vmem>>, vector<1x256xf32>,
    %172 = vector.extract_strided_slice %165 {offsets = [1, 0], sizes = [1, 256], strides = [1, 1]} : vector<16x256xf32> to vector<1x256xf32>
    %c4_161 = arith.constant 4 : index
    %c0_162 = arith.constant 0 : index
    %173 = vector.load %arg15[%c4_161, %c0_162] : memref<34x256xf32, #tpu.memory_space<vmem>>, vector<1x256xf32>
    tpu.vector_store %arg15[%c4_161, %c0_162], %172 {strides = array<i32>} : memref<34x256xf32, #tpu.memory_space<vmem>>, vector<1x256xf32>,
    %174 = vector.extract_strided_slice %150 {offsets = [2, 0], sizes = [1, 256], strides = [1, 1]} : vector<16x256xf32> to vector<1x256xf32>
    %c5_163 = arith.constant 5 : index
    %c0_164 = arith.constant 0 : index
    %175 = vector.load %arg15[%c5_163, %c0_164] : memref<34x256xf32, #tpu.memory_space<vmem>>, vector<1x256xf32>
    tpu.vector_store %arg15[%c5_163, %c0_164], %174 {strides = array<i32>} : memref<34x256xf32, #tpu.memory_space<vmem>>, vector<1x256xf32>,
    %176 = vector.extract_strided_slice %165 {offsets = [2, 0], sizes = [1, 256], strides = [1, 1]} : vector<16x256xf32> to vector<1x256xf32>
    %c6_165 = arith.constant 6 : index
    %c0_166 = arith.constant 0 : index
    %177 = vector.load %arg15[%c6_165, %c0_166] : memref<34x256xf32, #tpu.memory_space<vmem>>, vector<1x256xf32>
    tpu.vector_store %arg15[%c6_165, %c0_166], %176 {strides = array<i32>} : memref<34x256xf32, #tpu.memory_space<vmem>>, vector<1x256xf32>,
    %178 = vector.extract_strided_slice %150 {offsets = [3, 0], sizes = [1, 256], strides = [1, 1]} : vector<16x256xf32> to vector<1x256xf32>
    %c7_167 = arith.constant 7 : index
    %c0_168 = arith.constant 0 : index
    %179 = vector.load %arg15[%c7_167, %c0_168] : memref<34x256xf32, #tpu.memory_space<vmem>>, vector<1x256xf32>
    tpu.vector_store %arg15[%c7_167, %c0_168], %178 {strides = array<i32>} : memref<34x256xf32, #tpu.memory_space<vmem>>, vector<1x256xf32>,
    %180 = vector.extract_strided_slice %165 {offsets = [3, 0], sizes = [1, 256], strides = [1, 1]} : vector<16x256xf32> to vector<1x256xf32>
    %c8_169 = arith.constant 8 : index
    %c0_170 = arith.constant 0 : index
    %181 = vector.load %arg15[%c8_169, %c0_170] : memref<34x256xf32, #tpu.memory_space<vmem>>, vector<1x256xf32>
    tpu.vector_store %arg15[%c8_169, %c0_170], %180 {strides = array<i32>} : memref<34x256xf32, #tpu.memory_space<vmem>>, vector<1x256xf32>,
    %182 = vector.extract_strided_slice %150 {offsets = [4, 0], sizes = [1, 256], strides = [1, 1]} : vector<16x256xf32> to vector<1x256xf32>
    %c9_171 = arith.constant 9 : index
    %c0_172 = arith.constant 0 : index
    %183 = vector.load %arg15[%c9_171, %c0_172] : memref<34x256xf32, #tpu.memory_space<vmem>>, vector<1x256xf32>
    tpu.vector_store %arg15[%c9_171, %c0_172], %182 {strides = array<i32>} : memref<34x256xf32, #tpu.memory_space<vmem>>, vector<1x256xf32>,
    %184 = vector.extract_strided_slice %165 {offsets = [4, 0], sizes = [1, 256], strides = [1, 1]} : vector<16x256xf32> to vector<1x256xf32>
    %c10_173 = arith.constant 10 : index
    %c0_174 = arith.constant 0 : index
    %185 = vector.load %arg15[%c10_173, %c0_174] : memref<34x256xf32, #tpu.memory_space<vmem>>, vector<1x256xf32>
    tpu.vector_store %arg15[%c10_173, %c0_174], %184 {strides = array<i32>} : memref<34x256xf32, #tpu.memory_space<vmem>>, vector<1x256xf32>,
    %186 = vector.extract_strided_slice %150 {offsets = [5, 0], sizes = [1, 256], strides = [1, 1]} : vector<16x256xf32> to vector<1x256xf32>
    %c11_175 = arith.constant 11 : index
    %c0_176 = arith.constant 0 : index
    %187 = vector.load %arg15[%c11_175, %c0_176] : memref<34x256xf32, #tpu.memory_space<vmem>>, vector<1x256xf32>
    tpu.vector_store %arg15[%c11_175, %c0_176], %186 {strides = array<i32>} : memref<34x256xf32, #tpu.memory_space<vmem>>, vector<1x256xf32>,
    %188 = vector.extract_strided_slice %165 {offsets = [5, 0], sizes = [1, 256], strides = [1, 1]} : vector<16x256xf32> to vector<1x256xf32>
    %c12_177 = arith.constant 12 : index
    %c0_178 = arith.constant 0 : index
    %189 = vector.load %arg15[%c12_177, %c0_178] : memref<34x256xf32, #tpu.memory_space<vmem>>, vector<1x256xf32>
    tpu.vector_store %arg15[%c12_177, %c0_178], %188 {strides = array<i32>} : memref<34x256xf32, #tpu.memory_space<vmem>>, vector<1x256xf32>,
    %190 = vector.extract_strided_slice %150 {offsets = [6, 0], sizes = [1, 256], strides = [1, 1]} : vector<16x256xf32> to vector<1x256xf32>
    %c13_179 = arith.constant 13 : index
    %c0_180 = arith.constant 0 : index
    %191 = vector.load %arg15[%c13_179, %c0_180] : memref<34x256xf32, #tpu.memory_space<vmem>>, vector<1x256xf32>
    tpu.vector_store %arg15[%c13_179, %c0_180], %190 {strides = array<i32>} : memref<34x256xf32, #tpu.memory_space<vmem>>, vector<1x256xf32>,
    %192 = vector.extract_strided_slice %165 {offsets = [6, 0], sizes = [1, 256], strides = [1, 1]} : vector<16x256xf32> to vector<1x256xf32>
    %c14_181 = arith.constant 14 : index
    %c0_182 = arith.constant 0 : index
    %193 = vector.load %arg15[%c14_181, %c0_182] : memref<34x256xf32, #tpu.memory_space<vmem>>, vector<1x256xf32>
    tpu.vector_store %arg15[%c14_181, %c0_182], %192 {strides = array<i32>} : memref<34x256xf32, #tpu.memory_space<vmem>>, vector<1x256xf32>,
    %194 = vector.extract_strided_slice %150 {offsets = [7, 0], sizes = [1, 256], strides = [1, 1]} : vector<16x256xf32> to vector<1x256xf32>
    %c15_183 = arith.constant 15 : index
    %c0_184 = arith.constant 0 : index
    %195 = vector.load %arg15[%c15_183, %c0_184] : memref<34x256xf32, #tpu.memory_space<vmem>>, vector<1x256xf32>
    tpu.vector_store %arg15[%c15_183, %c0_184], %194 {strides = array<i32>} : memref<34x256xf32, #tpu.memory_space<vmem>>, vector<1x256xf32>,
    %196 = vector.extract_strided_slice %165 {offsets = [7, 0], sizes = [1, 256], strides = [1, 1]} : vector<16x256xf32> to vector<1x256xf32>
    %c16_185 = arith.constant 16 : index
    %c0_186 = arith.constant 0 : index
    %197 = vector.load %arg15[%c16_185, %c0_186] : memref<34x256xf32, #tpu.memory_space<vmem>>, vector<1x256xf32>
    tpu.vector_store %arg15[%c16_185, %c0_186], %196 {strides = array<i32>} : memref<34x256xf32, #tpu.memory_space<vmem>>, vector<1x256xf32>,
    %198 = vector.extract_strided_slice %150 {offsets = [8, 0], sizes = [1, 256], strides = [1, 1]} : vector<16x256xf32> to vector<1x256xf32>
    %c17 = arith.constant 17 : index
    %c0_187 = arith.constant 0 : index
    %199 = vector.load %arg15[%c17, %c0_187] : memref<34x256xf32, #tpu.memory_space<vmem>>, vector<1x256xf32>
    tpu.vector_store %arg15[%c17, %c0_187], %198 {strides = array<i32>} : memref<34x256xf32, #tpu.memory_space<vmem>>, vector<1x256xf32>,
    %200 = vector.extract_strided_slice %165 {offsets = [8, 0], sizes = [1, 256], strides = [1, 1]} : vector<16x256xf32> to vector<1x256xf32>
    %c18 = arith.constant 18 : index
    %c0_188 = arith.constant 0 : index
    %201 = vector.load %arg15[%c18, %c0_188] : memref<34x256xf32, #tpu.memory_space<vmem>>, vector<1x256xf32>
    tpu.vector_store %arg15[%c18, %c0_188], %200 {strides = array<i32>} : memref<34x256xf32, #tpu.memory_space<vmem>>, vector<1x256xf32>,
    %202 = vector.extract_strided_slice %150 {offsets = [9, 0], sizes = [1, 256], strides = [1, 1]} : vector<16x256xf32> to vector<1x256xf32>
    %c19 = arith.constant 19 : index
    %c0_189 = arith.constant 0 : index
    %203 = vector.load %arg15[%c19, %c0_189] : memref<34x256xf32, #tpu.memory_space<vmem>>, vector<1x256xf32>
    tpu.vector_store %arg15[%c19, %c0_189], %202 {strides = array<i32>} : memref<34x256xf32, #tpu.memory_space<vmem>>, vector<1x256xf32>,
    %204 = vector.extract_strided_slice %165 {offsets = [9, 0], sizes = [1, 256], strides = [1, 1]} : vector<16x256xf32> to vector<1x256xf32>
    %c20 = arith.constant 20 : index
    %c0_190 = arith.constant 0 : index
    %205 = vector.load %arg15[%c20, %c0_190] : memref<34x256xf32, #tpu.memory_space<vmem>>, vector<1x256xf32>
    tpu.vector_store %arg15[%c20, %c0_190], %204 {strides = array<i32>} : memref<34x256xf32, #tpu.memory_space<vmem>>, vector<1x256xf32>,
    %206 = vector.extract_strided_slice %150 {offsets = [10, 0], sizes = [1, 256], strides = [1, 1]} : vector<16x256xf32> to vector<1x256xf32>
    %c21 = arith.constant 21 : index
    %c0_191 = arith.constant 0 : index
    %207 = vector.load %arg15[%c21, %c0_191] : memref<34x256xf32, #tpu.memory_space<vmem>>, vector<1x256xf32>
    tpu.vector_store %arg15[%c21, %c0_191], %206 {strides = array<i32>} : memref<34x256xf32, #tpu.memory_space<vmem>>, vector<1x256xf32>,
    %208 = vector.extract_strided_slice %165 {offsets = [10, 0], sizes = [1, 256], strides = [1, 1]} : vector<16x256xf32> to vector<1x256xf32>
    %c22 = arith.constant 22 : index
    %c0_192 = arith.constant 0 : index
    %209 = vector.load %arg15[%c22, %c0_192] : memref<34x256xf32, #tpu.memory_space<vmem>>, vector<1x256xf32>
    tpu.vector_store %arg15[%c22, %c0_192], %208 {strides = array<i32>} : memref<34x256xf32, #tpu.memory_space<vmem>>, vector<1x256xf32>,
    %210 = vector.extract_strided_slice %150 {offsets = [11, 0], sizes = [1, 256], strides = [1, 1]} : vector<16x256xf32> to vector<1x256xf32>
    %c23 = arith.constant 23 : index
    %c0_193 = arith.constant 0 : index
    %211 = vector.load %arg15[%c23, %c0_193] : memref<34x256xf32, #tpu.memory_space<vmem>>, vector<1x256xf32>
    tpu.vector_store %arg15[%c23, %c0_193], %210 {strides = array<i32>} : memref<34x256xf32, #tpu.memory_space<vmem>>, vector<1x256xf32>,
    %212 = vector.extract_strided_slice %165 {offsets = [11, 0], sizes = [1, 256], strides = [1, 1]} : vector<16x256xf32> to vector<1x256xf32>
    %c24 = arith.constant 24 : index
    %c0_194 = arith.constant 0 : index
    %213 = vector.load %arg15[%c24, %c0_194] : memref<34x256xf32, #tpu.memory_space<vmem>>, vector<1x256xf32>
    tpu.vector_store %arg15[%c24, %c0_194], %212 {strides = array<i32>} : memref<34x256xf32, #tpu.memory_space<vmem>>, vector<1x256xf32>,
    %214 = vector.extract_strided_slice %150 {offsets = [12, 0], sizes = [1, 256], strides = [1, 1]} : vector<16x256xf32> to vector<1x256xf32>
    %c25 = arith.constant 25 : index
    %c0_195 = arith.constant 0 : index
    %215 = vector.load %arg15[%c25, %c0_195] : memref<34x256xf32, #tpu.memory_space<vmem>>, vector<1x256xf32>
    tpu.vector_store %arg15[%c25, %c0_195], %214 {strides = array<i32>} : memref<34x256xf32, #tpu.memory_space<vmem>>, vector<1x256xf32>,
    %216 = vector.extract_strided_slice %165 {offsets = [12, 0], sizes = [1, 256], strides = [1, 1]} : vector<16x256xf32> to vector<1x256xf32>
    %c26 = arith.constant 26 : index
    %c0_196 = arith.constant 0 : index
    %217 = vector.load %arg15[%c26, %c0_196] : memref<34x256xf32, #tpu.memory_space<vmem>>, vector<1x256xf32>
    tpu.vector_store %arg15[%c26, %c0_196], %216 {strides = array<i32>} : memref<34x256xf32, #tpu.memory_space<vmem>>, vector<1x256xf32>,
    %218 = vector.extract_strided_slice %150 {offsets = [13, 0], sizes = [1, 256], strides = [1, 1]} : vector<16x256xf32> to vector<1x256xf32>
    %c27 = arith.constant 27 : index
    %c0_197 = arith.constant 0 : index
    %219 = vector.load %arg15[%c27, %c0_197] : memref<34x256xf32, #tpu.memory_space<vmem>>, vector<1x256xf32>
    tpu.vector_store %arg15[%c27, %c0_197], %218 {strides = array<i32>} : memref<34x256xf32, #tpu.memory_space<vmem>>, vector<1x256xf32>,
    %220 = vector.extract_strided_slice %165 {offsets = [13, 0], sizes = [1, 256], strides = [1, 1]} : vector<16x256xf32> to vector<1x256xf32>
    %c28 = arith.constant 28 : index
    %c0_198 = arith.constant 0 : index
    %221 = vector.load %arg15[%c28, %c0_198] : memref<34x256xf32, #tpu.memory_space<vmem>>, vector<1x256xf32>
    tpu.vector_store %arg15[%c28, %c0_198], %220 {strides = array<i32>} : memref<34x256xf32, #tpu.memory_space<vmem>>, vector<1x256xf32>,
    %222 = vector.extract_strided_slice %150 {offsets = [14, 0], sizes = [1, 256], strides = [1, 1]} : vector<16x256xf32> to vector<1x256xf32>
    %c29 = arith.constant 29 : index
    %c0_199 = arith.constant 0 : index
    %223 = vector.load %arg15[%c29, %c0_199] : memref<34x256xf32, #tpu.memory_space<vmem>>, vector<1x256xf32>
    tpu.vector_store %arg15[%c29, %c0_199], %222 {strides = array<i32>} : memref<34x256xf32, #tpu.memory_space<vmem>>, vector<1x256xf32>,
    %224 = vector.extract_strided_slice %165 {offsets = [14, 0], sizes = [1, 256], strides = [1, 1]} : vector<16x256xf32> to vector<1x256xf32>
    %c30 = arith.constant 30 : index
    %c0_200 = arith.constant 0 : index
    %225 = vector.load %arg15[%c30, %c0_200] : memref<34x256xf32, #tpu.memory_space<vmem>>, vector<1x256xf32>
    tpu.vector_store %arg15[%c30, %c0_200], %224 {strides = array<i32>} : memref<34x256xf32, #tpu.memory_space<vmem>>, vector<1x256xf32>,
    %226 = vector.extract_strided_slice %150 {offsets = [15, 0], sizes = [1, 256], strides = [1, 1]} : vector<16x256xf32> to vector<1x256xf32>
    %c31 = arith.constant 31 : index
    %c0_201 = arith.constant 0 : index
    %227 = vector.load %arg15[%c31, %c0_201] : memref<34x256xf32, #tpu.memory_space<vmem>>, vector<1x256xf32>
    tpu.vector_store %arg15[%c31, %c0_201], %226 {strides = array<i32>} : memref<34x256xf32, #tpu.memory_space<vmem>>, vector<1x256xf32>,
    %228 = vector.extract_strided_slice %165 {offsets = [15, 0], sizes = [1, 256], strides = [1, 1]} : vector<16x256xf32> to vector<1x256xf32>
    %c32 = arith.constant 32 : index
    %c0_202 = arith.constant 0 : index
    %229 = vector.load %arg15[%c32, %c0_202] : memref<34x256xf32, #tpu.memory_space<vmem>>, vector<1x256xf32>
    tpu.vector_store %arg15[%c32, %c0_202], %228 {strides = array<i32>} : memref<34x256xf32, #tpu.memory_space<vmem>>, vector<1x256xf32>,
    %c0_203 = arith.constant 0 : index
    %c0_204 = arith.constant 0 : index
    %230 = vector.load %arg15[%c0_203, %c0_204] : memref<34x256xf32, #tpu.memory_space<vmem>>, vector<32x256xf32>
    %231 = arith.truncf %230 : vector<32x256xf32> to vector<32x256xbf16>
    %c1_205 = arith.constant 1 : index
    %c0_206 = arith.constant 0 : index
    %232 = vector.load %arg15[%c1_205, %c0_206] : memref<34x256xf32, #tpu.memory_space<vmem>>, vector<32x256xf32>
    %233 = arith.truncf %232 : vector<32x256xf32> to vector<32x256xbf16>
    %c0_207 = arith.constant 0 : index
    %c0_208 = arith.constant 0 : index
    %c0_209 = arith.constant 0 : index
    %c0_210 = arith.constant 0 : index
    %234 = vector.load %arg10[%c0_207, %c0_208, %c0_209, %c0_210] : memref<2x2x256x256xbf16, #tpu.memory_space<vmem>>, vector<1x1x256x256xbf16>
    %235 = vector.shape_cast %234 : vector<1x1x256x256xbf16> to vector<256x256xbf16>
    %cst_211 = arith.constant dense<0.000000e+00> : vector<32x256xf32>
    %236 = tpu.matmul %231, %235, %cst_211 {dimension_numbers = #tpu.dot_dimension_numbers<[1], [0], [0], [1], [0, 0, 1, 1], [], []>} : vector<32x256xbf16>, vector<256x256xbf16>, vector<32x256xf32> -> vector<32x256xf32>
    %c0_212 = arith.constant 0 : index
    %c1_213 = arith.constant 1 : index
    %c0_214 = arith.constant 0 : index
    %c0_215 = arith.constant 0 : index
    %237 = vector.load %arg10[%c0_212, %c1_213, %c0_214, %c0_215] : memref<2x2x256x256xbf16, #tpu.memory_space<vmem>>, vector<1x1x256x256xbf16>
    %238 = vector.shape_cast %237 : vector<1x1x256x256xbf16> to vector<256x256xbf16>
    %cst_216 = arith.constant dense<0.000000e+00> : vector<32x256xf32>
    %239 = tpu.matmul %233, %238, %cst_216 {dimension_numbers = #tpu.dot_dimension_numbers<[1], [0], [0], [1], [0, 0, 1, 1], [], []>} : vector<32x256xbf16>, vector<256x256xbf16>, vector<32x256xf32> -> vector<32x256xf32>
    %240 = arith.addf %236, %239 : vector<32x256xf32>
    %241 = math.tanh %240 : vector<32x256xf32>
    %c1_217 = arith.constant 1 : index
    %c0_218 = arith.constant 0 : index
    %242 = vector.load %arg15[%c1_217, %c0_218] : memref<34x256xf32, #tpu.memory_space<vmem>>, vector<32x256xf32>
    %243 = arith.truncf %242 : vector<32x256xf32> to vector<32x256xbf16>
    %c2_219 = arith.constant 2 : index
    %c0_220 = arith.constant 0 : index
    %244 = vector.load %arg15[%c2_219, %c0_220] : memref<34x256xf32, #tpu.memory_space<vmem>>, vector<32x256xf32>
    %245 = arith.truncf %244 : vector<32x256xf32> to vector<32x256xbf16>
    %c1_221 = arith.constant 1 : index
    %c0_222 = arith.constant 0 : index
    %c0_223 = arith.constant 0 : index
    %c0_224 = arith.constant 0 : index
    %246 = vector.load %arg10[%c1_221, %c0_222, %c0_223, %c0_224] : memref<2x2x256x256xbf16, #tpu.memory_space<vmem>>, vector<1x1x256x256xbf16>
    %247 = vector.shape_cast %246 : vector<1x1x256x256xbf16> to vector<256x256xbf16>
    %cst_225 = arith.constant dense<0.000000e+00> : vector<32x256xf32>
    %248 = tpu.matmul %243, %247, %cst_225 {dimension_numbers = #tpu.dot_dimension_numbers<[1], [0], [0], [1], [0, 0, 1, 1], [], []>} : vector<32x256xbf16>, vector<256x256xbf16>, vector<32x256xf32> -> vector<32x256xf32>
    %c1_226 = arith.constant 1 : index
    %c1_227 = arith.constant 1 : index
    %c0_228 = arith.constant 0 : index
    %c0_229 = arith.constant 0 : index
    %249 = vector.load %arg10[%c1_226, %c1_227, %c0_228, %c0_229] : memref<2x2x256x256xbf16, #tpu.memory_space<vmem>>, vector<1x1x256x256xbf16>
    %250 = vector.shape_cast %249 : vector<1x1x256x256xbf16> to vector<256x256xbf16>
    %cst_230 = arith.constant dense<0.000000e+00> : vector<32x256xf32>
    %251 = tpu.matmul %245, %250, %cst_230 {dimension_numbers = #tpu.dot_dimension_numbers<[1], [0], [0], [1], [0, 0, 1, 1], [], []>} : vector<32x256xbf16>, vector<256x256xbf16>, vector<32x256xf32> -> vector<32x256xf32>
    %252 = arith.addf %248, %251 : vector<32x256xf32>
    %253 = math.tanh %252 : vector<32x256xf32>
    %c0_231 = arith.constant 0 : index
    %c0_232 = arith.constant 0 : index
    %c0_233 = arith.constant 0 : index
    %c0_234 = arith.constant 0 : index
    %254 = vector.load %arg11[%c0_231, %c0_232, %c0_233, %c0_234] : memref<1x2x32x256xf32, #tpu.memory_space<vmem>>, vector<1x1x32x256xf32>
    %255 = vector.shape_cast %254 : vector<1x1x32x256xf32> to vector<32x256xf32>
    %256 = vector.shape_cast %241 : vector<32x256xf32> to vector<1x1x32x256xf32>
    tpu.vector_store %arg11[%c0_231, %c0_232, %c0_233, %c0_234], %256 {strides = array<i32>} : memref<1x2x32x256xf32, #tpu.memory_space<vmem>>, vector<1x1x32x256xf32>,
    %c0_235 = arith.constant 0 : index
    %c1_236 = arith.constant 1 : index
    %c0_237 = arith.constant 0 : index
    %c0_238 = arith.constant 0 : index
    %257 = vector.load %arg11[%c0_235, %c1_236, %c0_237, %c0_238] : memref<1x2x32x256xf32, #tpu.memory_space<vmem>>, vector<1x1x32x256xf32>
    %258 = vector.shape_cast %257 : vector<1x1x32x256xf32> to vector<32x256xf32>
    %259 = vector.shape_cast %253 : vector<32x256xf32> to vector<1x1x32x256xf32>
    tpu.vector_store %arg11[%c0_235, %c1_236, %c0_237, %c0_238], %259 {strides = array<i32>} : memref<1x2x32x256xf32, #tpu.memory_space<vmem>>, vector<1x1x32x256xf32>,
    return
  }
  func.func @transform_0(%arg0: i32) -> (i32, i32, i32) {
    %c0_i32 = arith.constant 0 : i32
    %c0_i32_0 = arith.constant 0 : i32
    %c0_i32_1 = arith.constant 0 : i32
    return %arg0, %c0_i32, %c0_i32_0 : i32, i32, i32
  }
  func.func @transform_1(%arg0: i32) -> (i32, i32) {
    %c0_i32 = arith.constant 0 : i32
    %c0_i32_0 = arith.constant 0 : i32
    %c0_i32_1 = arith.constant 0 : i32
    return %c0_i32, %c0_i32_0 : i32, i32
  }
  func.func @transform_2(%arg0: i32) -> (i32, i32) {
    %c0_i32 = arith.constant 0 : i32
    %c0_i32_0 = arith.constant 0 : i32
    %c0_i32_1 = arith.constant 0 : i32
    return %c0_i32, %c0_i32_0 : i32, i32
  }
  func.func @transform_3(%arg0: i32) -> (i32, i32, i32, i32) {
    %c0_i32 = arith.constant 0 : i32
    %c0_i32_0 = arith.constant 0 : i32
    %c0_i32_1 = arith.constant 0 : i32
    %c0_i32_2 = arith.constant 0 : i32
    %c0_i32_3 = arith.constant 0 : i32
    return %c0_i32, %c0_i32_0, %c0_i32_1, %c0_i32_2 : i32, i32, i32, i32
  }
  func.func @transform_4(%arg0: i32) -> (i32, i32) {
    %c0_i32 = arith.constant 0 : i32
    %c0_i32_0 = arith.constant 0 : i32
    %c0_i32_1 = arith.constant 0 : i32
    return %c0_i32, %c0_i32_0 : i32, i32
  }
  func.func @transform_5(%arg0: i32) -> (i32, i32, i32, i32) {
    %c0_i32 = arith.constant 0 : i32
    %c0_i32_0 = arith.constant 0 : i32
    %c0_i32_1 = arith.constant 0 : i32
    %c0_i32_2 = arith.constant 0 : i32
    %c0_i32_3 = arith.constant 0 : i32
    return %c0_i32, %c0_i32_0, %c0_i32_1, %c0_i32_2 : i32, i32, i32, i32
  }
  func.func @transform_6(%arg0: i32) -> (i32, i32) {
    %c0_i32 = arith.constant 0 : i32
    %c0_i32_0 = arith.constant 0 : i32
    %c0_i32_1 = arith.constant 0 : i32
    return %c0_i32, %c0_i32_0 : i32, i32
  }
  func.func @transform_7(%arg0: i32) -> (i32, i32, i32, i32) {
    %c0_i32 = arith.constant 0 : i32
    %c0_i32_0 = arith.constant 0 : i32
    %c0_i32_1 = arith.constant 0 : i32
    %c0_i32_2 = arith.constant 0 : i32
    %c0_i32_3 = arith.constant 0 : i32
    return %c0_i32, %c0_i32_0, %c0_i32_1, %c0_i32_2 : i32, i32, i32, i32
  }
  func.func @transform_8(%arg0: i32) -> (i32, i32) {
    %c0_i32 = arith.constant 0 : i32
    %c0_i32_0 = arith.constant 0 : i32
    %c0_i32_1 = arith.constant 0 : i32
    return %c0_i32, %c0_i32_0 : i32, i32
  }
  func.func @transform_9(%arg0: i32) -> (i32, i32, i32, i32) {
    %c0_i32 = arith.constant 0 : i32
    %c0_i32_0 = arith.constant 0 : i32
    %c0_i32_1 = arith.constant 0 : i32
    %c0_i32_2 = arith.constant 0 : i32
    %c0_i32_3 = arith.constant 0 : i32
    return %c0_i32, %c0_i32_0, %c0_i32_1, %c0_i32_2 : i32, i32, i32, i32
  }
  func.func @transform_10(%arg0: i32) -> (i32, i32, i32, i32) {
    %c0_i32 = arith.constant 0 : i32
    %c0_i32_0 = arith.constant 0 : i32
    %c0_i32_1 = arith.constant 0 : i32
    %c0_i32_2 = arith.constant 0 : i32
    return %arg0, %c0_i32, %c0_i32_0, %c0_i32_1 : i32, i32, i32, i32
  }
}

</mosaic_0001>

<bundles_post_ra>
// kernel: generator_forward.1
= control target key start
LH: loop header
LB: loop body
LE: loop exit
PB: predicated region body
PF: predicated region fallthrough
CT: control target
= control target key end

     0   :  { %15 = vsyncpa [#allocation7], 0  ;;  %s9440_s0 = inlined_call_operand.vmem [shape: f32[2,1,16], index: 0, kind: input, shape index: {}]   ;;  %s9441_s1 = inlined_call_operand.hbm [shape: bf16[16,1024], index: 1, kind: input, shape index: {}]   ;;  %s9442_s2 = inlined_call_operand.hbm [shape: f32[1,1024], index: 2, kind: input, shape index: {}]   ;;  %s9443_s3 = inlined_call_operand.hbm [shape: bf16[2,2,256,256], index: 3, kind: input, shape index: {}]   ;;  %s9444_s4 = inlined_call_operand.hbm [shape: f32[1,256], index: 4, kind: input, shape index: {}]   ;;  %s9445_s5 = inlined_call_operand.hbm [shape: bf16[2,2,256,256], index: 5, kind: input, shape index: {}]   ;;  %s9446_s6 = inlined_call_operand.hbm [shape: f32[1,256], index: 6, kind: input, shape index: {}]   ;;  %s9447_s7 = inlined_call_operand.hbm [shape: bf16[2,2,256,256], index: 7, kind: input, shape index: {}]   ;;  %s9448_s8 = inlined_call_operand.hbm [shape: f32[1,256], index: 8, kind: input, shape index: {}]   ;;  %s9449_s9 = inlined_call_operand.hbm [shape: bf16[2,2,256,256], index: 9, kind: input, shape index: {}]   ;;  %s9450_s10 = inlined_call_operand.vmem [shape: f32[2,2,32,256], index: 10, kind: output, shape index: {}]  }
   0x1   :  { %16 = vsyncpa [#allocation9], 0 }
   0x2   :  { %17 = vsyncpa [#allocation12], 0 }
   0x3   :  { %18 = vsyncpa [#allocation15], 0 }
   0x4   :  { %19 = vsyncpa [#allocation18], 0  ;;  %s8811_s13 = smov 0  }
   0x5 LB: > { %s297_s16 = sshll.u32 %s9442_s2, 4  ;;  %s8820_s17 = sadd.s32 4294967295, %s8740_s13   ;;  %s8740_s13 = sphi %s8811_s13, %s25_s13   ;;  %s298_s16 = int_to_ptr.hbm [resolvable:$true] %s297_s16 }
   0x6   : > { %p5666_p0 = scmp.ge.s32.totalorder %s8740_s13, 1  ;;  %p271_p1 = scmp.lt.s32.totalorder %s8740_s13, 3 }
   0x7   : > { %p8372_p2 = scmp.eq.s32.totalorder %s8820_s17, 0  ;;  %s8742_s19 = smov [#allocation8]  }
   0x8   : > { %p8825_p3 = pnand %p5666_p0, %p271_p1  ;;  %s299_s20 = sshll.u32 %s8742_s19, 4  ;;  %s300_s20 = int_to_ptr.vmem [resolvable:$true] %s299_s20 }
   0x9   : > { %s323_s23 = sshll.u32 %s9444_s4, 4  ;;  %s349_s26 = sshll.u32 %s9446_s6, 4  ;;  %s324_s23 = int_to_ptr.hbm [resolvable:$true] %s323_s23  ;;  %s350_s26 = int_to_ptr.hbm [resolvable:$true] %s349_s26 }
   0xa   : > { %p8344_p4 = pneg %p8825_p3  ;;  %s8743_s28 = smov [#allocation11]  }
   0xb   : > { %s325_s29 = sshll.u32 %s8743_s28, 4  ;;  %s8744_s30 = smov [#allocation14]   ;;  %s326_s29 = int_to_ptr.vmem [resolvable:$true] %s325_s29 }
   0xc   : > { %p8839_p5 = pnand %p8372_p2, %p8344_p4  ;;  %s351_s11 = sshll.u32 %s8744_s30, 4  ;;  %s352_s11 = int_to_ptr.vmem [resolvable:$true] %s351_s11 }
   0xd   : > { %s375_s15 = sshll.u32 %s9448_s8, 4  ;;  %s282_s22 = sshll.u32 %s9441_s1, 4  ;;  %s376_s15 = int_to_ptr.hbm [resolvable:$true] %s375_s15  ;;  %s283_s22 = int_to_ptr.hbm [resolvable:$true] %s282_s22 }
   0xe   : > { %8350 = dma.hbm_to_vmem [thread:$0]  (!%p8839_p5), %s298_s16, 128, %s300_s20, [#allocation9]  }
   0xf   : > { %8356 = dma.hbm_to_vmem [thread:$0]  (!%p8839_p5), %s324_s23, 32, %s326_s29, [#allocation12]  }
  0x10   : > { %8362 = dma.hbm_to_vmem [thread:$0]  (!%p8839_p5), %s350_s26, 32, %s352_s11, [#allocation15]  }
  0x11   : > { %s8745_s24 = smov [#allocation17]   ;;  %s8746_s16 = smov [#allocation6]  }
  0x12   : > { %s377_s25 = sshll.u32 %s8745_s24, 4  ;;  %s284_s20 = sshll.u32 %s8746_s16, 4  ;;  %s378_s25 = int_to_ptr.vmem [resolvable:$true] %s377_s25  ;;  %s285_s20 = int_to_ptr.vmem [resolvable:$true] %s284_s20 }
  0x13   : > { %8368 = dma.hbm_to_vmem [thread:$0]  (!%p8839_p5), %s376_s15, 32, %s378_s25, [#allocation18]  }
  0x14   : > { %s8747_s23 = smov 512   ;;  %s8748_s28 = smov 32  }
  0x15   : > { %8347 = dma.hbm_to_vmem [thread:$0]  (!%p8839_p5), %s283_s22, 1024, %s285_s20, [#allocation7], %s8747_s23, %s8747_s23, %s8748_s28  }
  0x16   : > { %s308_s30 = sshll.u32 %s9443_s3, 4  ;;  %s8749_s11 = smov [#allocation10]   ;;  %s309_s30 = int_to_ptr.hbm [resolvable:$true] %s308_s30 }
  0x17   : > { %s310_s12 = sshll.u32 %s8749_s11, 4  ;;  %s334_s15 = sshll.u32 %s9445_s5, 4  ;;  %s311_s12 = int_to_ptr.vmem [resolvable:$true] %s310_s12  ;;  %s335_s15 = int_to_ptr.hbm [resolvable:$true] %s334_s15 }
  0x18   : > { %s8750_s21 = smov 128   ;;  %s8751_s24 = smov 8  }
  0x19   : > { %8353 = dma.hbm_to_vmem [thread:$0]  (!%p8839_p5), %s309_s30, 16384, %s311_s12, [#allocation9], %s8750_s21, %s8750_s21, %s8751_s24  }
  0x1a   : > { %s8752_s22 = smov [#allocation13]   ;;  %s360_s23 = sshll.u32 %s9447_s7, 4  ;;  %s361_s23 = int_to_ptr.hbm [resolvable:$true] %s360_s23 }
  0x1b   : > { %s336_s25 = sshll.u32 %s8752_s22, 4  ;;  %s386_s26 = sshll.u32 %s9449_s9, 4  ;;  %s337_s25 = int_to_ptr.vmem [resolvable:$true] %s336_s25  ;;  %s387_s26 = int_to_ptr.hbm [resolvable:$true] %s386_s26 }
  0x1c   : > { %8359 = dma.hbm_to_vmem [thread:$0]  (!%p8839_p5), %s335_s15, 16384, %s337_s25, [#allocation12], %s8750_s21, %s8750_s21, %s8751_s24  }
  0x1d   : > { %s8753_s11 = smov [#allocation16]   ;;  %s8754_s30 = smov [#allocation19]  }
  0x1e   : > { %s362_s14 = sshll.u32 %s8753_s11, 4  ;;  %s388_s12 = sshll.u32 %s8754_s30, 4  ;;  %s363_s14 = int_to_ptr.vmem [resolvable:$true] %s362_s14  ;;  %s389_s12 = int_to_ptr.vmem [resolvable:$true] %s388_s12 }
  0x1f   : > { %8365 = dma.hbm_to_vmem [thread:$0]  (!%p8839_p5), %s361_s23, 16384, %s363_s14, [#allocation15], %s8750_s21, %s8750_s21, %s8751_s24  }
  0x20   : > { %8371 = dma.hbm_to_vmem [thread:$0]  (!%p8839_p5), %s387_s26, 16384, %s389_s12, [#allocation18], %s8750_s21, %s8750_s21, %s8751_s24  }
  0x21   : > { %410 = sbr.rel (%p8825_p3) target bundleno = 1570 (0x622), region = 60 }
  0x26   : > { %8719 = dma.done.wait (%p8372_p2), [#allocation7], 1024  }
  0x27   : > { %8721 = vsyncadd (%p8372_p2), [#allocation7], 4294966272 }
  0x28   : > { %8723 = dma.done.wait (%p8372_p2), [#allocation9], 16512  }
  0x29   : > { %8725 = vsyncadd (%p8372_p2), [#allocation9], 4294950784 }
  0x2a   : > { %8727 = dma.done.wait (%p8372_p2), [#allocation12], 16416  }
  0x2b   : > { %8729 = vsyncadd (%p8372_p2), [#allocation12], 4294950880 }
  0x2c   : > { %8731 = dma.done.wait (%p8372_p2), [#allocation15], 16416  }
  0x2d   : > { %8733 = vsyncadd (%p8372_p2), [#allocation15], 4294950880 }
  0x2e   : > { %8735 = dma.done.wait (%p8372_p2), [#allocation18], 16416  }
  0x2f   : > { %8737 = vsyncadd (%p8372_p2), [#allocation18], 4294950880  ;;  %p487_p6 = scmp.lt.s32.totalorder %s8820_s17, 1  ;;  %vm586_vm0 = vcmask 130048   ;;  %v5691_v0 = vld [vmem:[#allocation6] sm:$0xf] }
  0x30   : > { %v7792_v1 = vld [vmem:[#allocation6 + $0x1c] sm:$0xf0]  ;;  %v7788_v2 = vld [vmem:[#allocation6 + $0x4] sm:$0xf]  ;;  %v5699_v5 = vld [vmem:[#allocation6 + $0x8] sm:$0xf] }
  0x31   : > { %s9456_s17 = smov (!%p487_p6, %s8820_s17), 1  ;;  %v5692_v3 = vor.u32 %v7792_v1, %v5691_v0  ;;  %v5693_v4 = vld [vmem:[#allocation6 + $0x20] sm:$0xf0]  ;;  %v7793_v6 = vld [vmem:[#allocation6 + $0x24] sm:$0xf0]  ;;  %vm705_vm1 = vcmask 1040384  }
  0x32   : > { %s489_s19 = scalar_lea.vmem %s9440_s0, %s9456_s17  ;;  %v5696_v7 = vor.u32 %v7788_v2, %v5693_v4  ;;  %v5700_v8 = vor.u32 %v7793_v6, %v5699_v5  ;;  %v7789_v9 = vld [vmem:[#allocation6 + $0xc] sm:$0xf]  ;;  %v5707_v14 = vld [vmem:[#allocation6 + $0x10] sm:$0xf]  ;;  %v7790_v16 = vld [vmem:[#allocation6 + $0x14] sm:$0xf] }
  0x33   : > { %v5701_v10 = vld [vmem:[#allocation6 + $0x28] sm:$0xf0]  ;;  %v518_v11 = vld [vmem:[%s489_s19] sm:$0x1]  ;;  %597 = vmatpush.bf16.msra.mxu0 %v5692_v3  ;;  %v7794_v15 = vld [vmem:[#allocation6 + $0x2c] sm:$0xf0] }
  0x34   : > { %v5704_v12 = vor.u32 %v7789_v9, %v5701_v10  ;;  %v8909_v13 = vpack.c.bf16 %v518_v11, %v518_v11  ;;  %610 = vmatpush.bf16.msra.mxu1 %v5696_v7  ;;  %623 = vmatpush.bf16.msra.mxu2 %v5700_v8  ;;  %v5708_v17 = vor.u32 %v7794_v15, %v5707_v14  ;;  %v5709_v18 = vld [vmem:[#allocation6 + $0x30] sm:$0xf0]  ;;  %v5715_v19 = vld [vmem:[#allocation6 + $0x18] sm:$0xf]  ;;  %v7791_v23 = vld [vmem:[#allocation6 + $0x1c] sm:$0xf] }
  0x35   : > { %v7795_v20 = vld [vmem:[#allocation6 + $0x34] sm:$0xf0]  ;;  %v5712_v21 = vor.u32 %v7790_v16, %v5709_v18  ;;  %v5717_v24 = vld [vmem:[#allocation6 + $0x38] sm:$0xf0]  ;;  %v7843_v27 = vld [vmem:[#allocation10 + $0x174] sm:$0xf0] }
  0x36   : > { %636 = vmatpush.bf16.msra.mxu3 %v5704_v12  ;;  %v5716_v22 = vor.u32 %v7795_v20, %v5715_v19  ;;  %v5787_v25 = vld [vmem:[#allocation10 + $0x170] sm:$0xf]  ;;  %5721 = vmatmul.msk.bf16.vlgmr.msra.gmra.mxu0 %vm586_vm0, %v8909_v13  ;;  %v5720_v26 = vor.u32 %v7791_v23, %v5717_v24  ;;  %v7859_v29 = vld [vmem:[#allocation10 + $0x1f4] sm:$0xf0]  ;;  %v7842_v32 = vld [vmem:[#allocation10 + $0x174] sm:$0xf] }
  0x37   : > { %v5851_v28 = vld [vmem:[#allocation10 + $0x1f0] sm:$0xf]  ;;  %5722 = vmatmul.msk.bf16.vlgmr.msra.gmra.mxu1 %vm586_vm0, %v8909_v13  ;;  %5723 = vmatmul.msk.bf16.vlgmr.msra.gmra.mxu2 %vm586_vm0, %v8909_v13  ;;  %v5788_v30 = vor.u32 %v7843_v27, %v5787_v25  ;;  %v5789_v33 = vld [vmem:[#allocation10 + $0x178] sm:$0xf0]  ;;  %v7858_v34 = vld [vmem:[#allocation10 + $0x1f4] sm:$0xf] }
  0x38   : > { %v5852_v31 = vor.u32 %v7859_v29, %v5851_v28  ;;  %649 = vmatpush.bf16.msrb.mxu0 %v5708_v17  ;;  %v5792_v35 = vor.u32 %v7842_v32, %v5789_v33  ;;  %v5853_v36 = vld [vmem:[#allocation10 + $0x1f8] sm:$0xf0]  ;;  %v5779_v37 = vld [vmem:[#allocation10 + $0x160] sm:$0xf]  ;;  %v7841_v38 = vld [vmem:[#allocation10 + $0x164] sm:$0xf0]  ;;  %662 = vmatpush.bf16.msrb.mxu1 %v5712_v21 }
  0x39   : > { %5724 = vmatmul.msk.bf16.vlgmr.msra.gmra.mxu3 %vm586_vm0, %v8909_v13  ;;  %675 = vmatpush.bf16.msrb.mxu2 %v5716_v22  ;;  %v5856_v39 = vor.u32 %v7858_v34, %v5853_v36  ;;  %v5843_v40 = vld [vmem:[#allocation10 + $0x1e0] sm:$0xf]  ;;  %v7857_v41 = vld [vmem:[#allocation10 + $0x1e4] sm:$0xf0]  ;;  %v7840_v42 = vld [vmem:[#allocation10 + $0x164] sm:$0xf]  ;;  %v5780_v43 = vor.u32 %v7841_v38, %v5779_v37 }
  0x3a   : > { %688 = vmatpush.bf16.msrb.mxu3 %v5720_v26  ;;  %v5781_v44 = vld [vmem:[#allocation10 + $0x168] sm:$0xf0]  ;;  %v7856_v45 = vld [vmem:[#allocation10 + $0x1e4] sm:$0xf]  ;;  %v5844_v47 = vor.u32 %v7857_v41, %v5843_v40  ;;  %v5771_v49 = vld [vmem:[#allocation10 + $0x150] sm:$0xf] }
  0x3b   : > { %v5845_v46 = vld [vmem:[#allocation10 + $0x1e8] sm:$0xf0]  ;;  %v5784_v48 = vor.u32 %v7840_v42, %v5781_v44  ;;  %v7839_v50 = vld [vmem:[#allocation10 + $0x154] sm:$0xf0]  ;;  %v5835_v51 = vld [vmem:[#allocation10 + $0x1d0] sm:$0xf] }
  0x3c   : > { %989 = vmatpush.bf16.msra.mxu0 %v5788_v30  ;;  %1002 = vmatpush.bf16.msra.mxu1 %v5852_v31  ;;  %v5848_v52 = vor.u32 %v7856_v45, %v5845_v46  ;;  %v7855_v53 = vld [vmem:[#allocation10 + $0x1d4] sm:$0xf0]  ;;  %v7838_v54 = vld [vmem:[#allocation10 + $0x154] sm:$0xf]  ;;  %v5773_v55 = vld [vmem:[#allocation10 + $0x158] sm:$0xf0]  ;;  %v5772_v58 = vor.u32 %v7839_v50, %v5771_v49 }
  0x3d   : > { %1015 = vmatpush.bf16.msra.mxu2 %v5792_v35  ;;  %v7854_v56 = vld [vmem:[#allocation10 + $0x1d4] sm:$0xf]  ;;  %v5837_v57 = vld [vmem:[#allocation10 + $0x1d8] sm:$0xf0]  ;;  %v5836_v59 = vor.u32 %v7855_v53, %v5835_v51  ;;  %v5776_v60 = vor.u32 %v7838_v54, %v5773_v55  ;;  %v5763_v62 = vld [vmem:[#allocation10 + $0x140] sm:$0xf] }
  0x3e   : > { %1028 = vmatpush.bf16.msra.mxu3 %v5856_v39  ;;  %v5840_v61 = vor.u32 %v7854_v56, %v5837_v57  ;;  %v7837_v63 = vld [vmem:[#allocation10 + $0x144] sm:$0xf0]  ;;  %v5827_v0 = vld [vmem:[#allocation10 + $0x1c0] sm:$0xf]  ;;  %v7836_v3 = vld [vmem:[#allocation10 + $0x144] sm:$0xf] }
  0x3f   : > { %v5764_v1 = vor.u32 %v7837_v63, %v5763_v62  ;;  %v7853_v2 = vld [vmem:[#allocation10 + $0x1c4] sm:$0xf0]  ;;  %v5765_v4 = vld [vmem:[#allocation10 + $0x148] sm:$0xf0]  ;;  %v7852_v7 = vld [vmem:[#allocation10 + $0x1c4] sm:$0xf] }
  0x40   : > { %990 = vmatpush.bf16.msra.mxu0 %v5780_v43  ;;  %1003 = vmatpush.bf16.msra.mxu1 %v5844_v47  ;;  %v5828_v5 = vor.u32 %v7853_v2, %v5827_v0  ;;  %v5768_v6 = vor.u32 %v7836_v3, %v5765_v4  ;;  %v5829_v8 = vld [vmem:[#allocation10 + $0x1c8] sm:$0xf0]  ;;  %v5755_v10 = vld [vmem:[#allocation10 + $0x130] sm:$0xf]  ;;  %v7835_v11 = vld [vmem:[#allocation10 + $0x134] sm:$0xf0] }
  0x41   : > { %1016 = vmatpush.bf16.msra.mxu2 %v5784_v48  ;;  %v5832_v9 = vor.u32 %v7852_v7, %v5829_v8  ;;  %v8755_v12 = vmov 0.0   ;;  %v5819_v14 = vld [vmem:[#allocation10 + $0x1b0] sm:$0xf]  ;;  %v7851_v15 = vld [vmem:[#allocation10 + $0x1b4] sm:$0xf0]  ;;  %vm3619_vm4 = vcmask 1046528  }
  0x42   : > { %1029 = vmatpush.bf16.msra.mxu3 %v5848_v52  ;;  %496 = vst [vmem:[#allocation2] sm:$0x3f] %v8755_v12  ;;  %v5820_v16 = vor.u32 %v7851_v15, %v5819_v14  ;;  %v7834_v17 = vld [vmem:[#allocation10 + $0x134] sm:$0xf]  ;;  %v5757_v18 = vld [vmem:[#allocation10 + $0x138] sm:$0xf0] }
  0x43   : > { %497 = vst [vmem:[#allocation2 + $0x8] sm:$0x3f] %v8755_v12  ;;  %v5760_v19 = vor.u32 %v7834_v17, %v5757_v18  ;;  %v7850_v20 = vld [vmem:[#allocation10 + $0x1b4] sm:$0xf]  ;;  %v5821_v21 = vld [vmem:[#allocation10 + $0x1b8] sm:$0xf0] }
  0x44   : > { %991 = vmatpush.bf16.msra.mxu0 %v5772_v58  ;;  %1004 = vmatpush.bf16.msra.mxu1 %v5836_v59  ;;  %498 = vst [vmem:[#allocation3] sm:$0xff] %v8755_v12  ;;  %v5824_v22 = vor.u32 %v7850_v20, %v5821_v21  ;;  %v5747_v23 = vld [vmem:[#allocation10 + $0x120] sm:$0xf]  ;;  %v7833_v24 = vld [vmem:[#allocation10 + $0x124] sm:$0xf0]  ;;  %v8946_v4 = vld [vmem:[#allocation8] sm:$0xff] }
  0x45   : > { %1017 = vmatpush.bf16.msra.mxu2 %v5776_v60  ;;  %499 = vst [vmem:[#allocation3 + $0x8] sm:$0xff] %v8755_v12  ;;  %v5748_v25 = vor.u32 %v7833_v24, %v5747_v23  ;;  %v5811_v26 = vld [vmem:[#allocation10 + $0x1a0] sm:$0xf]  ;;  %v7849_v27 = vld [vmem:[#allocation10 + $0x1a4] sm:$0xf0]  ;;  %v571_v20 = vperm.slane %v8946_v4, 1 }
  0x46   : > { %1030 = vmatpush.bf16.msra.mxu3 %v5840_v61  ;;  %5725 = vmatmul.msk.bf16.vlgmr.msrb.gmra.mxu0 %vm586_vm0, %v8909_v13  ;;  %500 = vst [vmem:[#allocation3 + $0x10] sm:$0x3] %v8755_v12  ;;  %v5812_v28 = vor.u32 %v7849_v27, %v5811_v26  ;;  %v7832_v29 = vld [vmem:[#allocation10 + $0x124] sm:$0xf]  ;;  %v5749_v30 = vld [vmem:[#allocation10 + $0x128] sm:$0xf0] }
  0x47   : > { %5726 = vmatmul.msk.bf16.vlgmr.msrb.gmra.mxu1 %vm586_vm0, %v8909_v13  ;;  %5727 = vmatmul.msk.bf16.vlgmr.msrb.gmra.mxu2 %vm586_vm0, %v8909_v13  ;;  %501 = vst [vmem:[#allocation3 + $0x18] sm:$0x3] %v8755_v12  ;;  %v7848_v31 = vld [vmem:[#allocation10 + $0x1a4] sm:$0xf]  ;;  %v5752_v32 = vor.u32 %v7832_v29, %v5749_v30  ;;  %v5813_v33 = vld [vmem:[#allocation10 + $0x1a8] sm:$0xf0] }
  0x48   : > { %992 = vmatpush.bf16.msra.mxu0 %v5764_v1  ;;  %1005 = vmatpush.bf16.msra.mxu1 %v5828_v5  ;;  %502 = vst [vmem:[#allocation4] sm:$0xff] %v8755_v12  ;;  %v5739_v34 = vld [vmem:[#allocation10 + $0x110] sm:$0xf]  ;;  %v5816_v35 = vor.u32 %v7848_v31, %v5813_v33  ;;  %v7831_v36 = vld [vmem:[#allocation10 + $0x114] sm:$0xf0]  ;;  %s7787_s15 = sshll.u32 %s9456_s17, 7 }
  0x49   : > { %5728 = vmatmul.msk.bf16.vlgmr.msrb.gmra.mxu3 %vm586_vm0, %v8909_v13  ;;  %1018 = vmatpush.bf16.msra.mxu2 %v5768_v6  ;;  %v5756_v13 = vor.u32 %v7835_v11, %v5755_v10  ;;  %503 = vst [vmem:[#allocation4 + $0x8] sm:$0xff] %v8755_v12  ;;  %v5803_v37 = vld [vmem:[#allocation10 + $0x190] sm:$0xf]  ;;  %v5740_v38 = vor.u32 %v7831_v36, %v5739_v34  ;;  %v7847_v39 = vld [vmem:[#allocation10 + $0x194] sm:$0xf0]  ;;  %s9419_s22 = scalar_lea.vmem %s9450_s10, %s7787_s15 }
  0x4a   : > { %1031 = vmatpush.bf16.msra.mxu3 %v5832_v9  ;;  %504 = vst [vmem:[#allocation4 + $0x10] sm:$0xff] %v8755_v12  ;;  %v7830_v40 = vld [vmem:[#allocation10 + $0x114] sm:$0xf]  ;;  %v5804_v41 = vor.u32 %v7847_v39, %v5803_v37  ;;  %v5741_v42 = vld [vmem:[#allocation10 + $0x118] sm:$0xf0] }
  0x4b   : > { %505 = vst [vmem:[#allocation4 + $0x18] sm:$0xff] %v8755_v12  ;;  %v7846_v43 = vld [vmem:[#allocation10 + $0x194] sm:$0xf]  ;;  %v5744_v44 = vor.u32 %v7830_v40, %v5741_v42  ;;  %v5805_v45 = vld [vmem:[#allocation10 + $0x198] sm:$0xf0] }
  0x4c   : > { %993 = vmatpush.bf16.msra.mxu0 %v5756_v13  ;;  %1006 = vmatpush.bf16.msra.mxu1 %v5820_v16  ;;  %506 = vst [vmem:[#allocation4 + $0x20] sm:$0x3] %v8755_v12  ;;  %v5731_v46 = vld [vmem:[#allocation10 + $0x100] sm:$0xf]  ;;  %v5808_v47 = vor.u32 %v7846_v43, %v5805_v45  ;;  %v7829_v48 = vld [vmem:[#allocation10 + $0x104] sm:$0xf0] }
  0x4d   : > { %1019 = vmatpush.bf16.msra.mxu2 %v5760_v19  ;;  %507 = vst [vmem:[#allocation4 + $0x28] sm:$0x3] %v8755_v12  ;;  %v5795_v49 = vld [vmem:[#allocation10 + $0x180] sm:$0xf]  ;;  %v5732_v50 = vor.u32 %v7829_v48, %v5731_v46  ;;  %v7845_v51 = vld [vmem:[#allocation10 + $0x184] sm:$0xf0] }
  0x4e   : > { %1032 = vmatpush.bf16.msra.mxu3 %v5824_v22  ;;  %508 = vst [vmem:[#allocation5] sm:$0xff] %v8755_v12  ;;  %v7828_v52 = vld [vmem:[#allocation10 + $0x104] sm:$0xf]  ;;  %v5796_v53 = vor.u32 %v7845_v51, %v5795_v49  ;;  %v5733_v54 = vld [vmem:[#allocation10 + $0x108] sm:$0xf0]  ;;  %v570_v19 = vperm.slane %v8946_v4, 0 }
  0x4f   : > { %509 = vst [vmem:[#allocation5 + $0x8] sm:$0xff] %v8755_v12  ;;  %v7844_v55 = vld [vmem:[#allocation10 + $0x184] sm:$0xf]  ;;  %v5736_v56 = vor.u32 %v7828_v52, %v5733_v54  ;;  %v5797_v57 = vld [vmem:[#allocation10 + $0x188] sm:$0xf0] }
  0x50   : > { %994 = vmatpush.bf16.msra.mxu0 %v5748_v25  ;;  %1007 = vmatpush.bf16.msra.mxu1 %v5812_v28  ;;  %510 = vst [vmem:[#allocation5 + $0x10] sm:$0xff] %v8755_v12  ;;  %v5915_v58 = vld [vmem:[#allocation10 + $0x70] sm:$0xf]  ;;  %v5800_v59 = vor.u32 %v7844_v55, %v5797_v57  ;;  %v7811_v60 = vld [vmem:[#allocation10 + $0x74] sm:$0xf0]  ;;  %v572_v57 = vperm.slane %v8946_v4, 2 }
  0x51   : > { %1020 = vmatpush.bf16.msra.mxu2 %v5752_v32  ;;  %511 = vst [vmem:[#allocation5 + $0x18] sm:$0xff] %v8755_v12  ;;  %v5979_v61 = vld [vmem:[#allocation10 + $0xf0] sm:$0xf]  ;;  %v5916_v62 = vor.u32 %v7811_v60, %v5915_v58  ;;  %v7827_v63 = vld [vmem:[#allocation10 + $0xf4] sm:$0xf0] }
  0x52   : > { %1033 = vmatpush.bf16.msra.mxu3 %v5816_v35  ;;  %512 = vst [vmem:[#allocation5 + $0x20] sm:$0xff] %v8755_v12  ;;  %v7810_v0 = vld [vmem:[#allocation10 + $0x74] sm:$0xf]  ;;  %v5980_v1 = vor.u32 %v7827_v63, %v5979_v61  ;;  %v5917_v2 = vld [vmem:[#allocation10 + $0x78] sm:$0xf0] }
  0x53   : > { %513 = vst [vmem:[#allocation5 + $0x28] sm:$0xff] %v8755_v12  ;;  %v7826_v3 = vld [vmem:[#allocation10 + $0xf4] sm:$0xf]  ;;  %v5920_v5 = vor.u32 %v7810_v0, %v5917_v2  ;;  %v5981_v6 = vld [vmem:[#allocation10 + $0xf8] sm:$0xf0]  ;;  %v573_v2 = vperm.slane %v8946_v4, 3 }
  0x54   : > { %995 = vmatpush.bf16.msra.mxu0 %v5740_v38  ;;  %1008 = vmatpush.bf16.msra.mxu1 %v5804_v41  ;;  %514 = vst [vmem:[#allocation5 + $0x30] sm:$0xff] %v8755_v12  ;;  %v5907_v7 = vld [vmem:[#allocation10 + $0x60] sm:$0xf]  ;;  %v5984_v8 = vor.u32 %v7826_v3, %v5981_v6  ;;  %v7809_v9 = vld [vmem:[#allocation10 + $0x64] sm:$0xf0] }
  0x55   : > { %1021 = vmatpush.bf16.msra.mxu2 %v5744_v44  ;;  %515 = vst [vmem:[#allocation5 + $0x38] sm:$0xff] %v8755_v12  ;;  %v5971_v10 = vld [vmem:[#allocation10 + $0xe0] sm:$0xf]  ;;  %v5908_v11 = vor.u32 %v7809_v9, %v5907_v7  ;;  %v7825_v13 = vld [vmem:[#allocation10 + $0xe4] sm:$0xf0] }
  0x56   : > { %1034 = vmatpush.bf16.msra.mxu3 %v5808_v47  ;;  %516 = vst [vmem:[#allocation5 + $0x40] sm:$0x3] %v8755_v12  ;;  %v7808_v14 = vld [vmem:[#allocation10 + $0x64] sm:$0xf]  ;;  %v5972_v15 = vor.u32 %v7825_v13, %v5971_v10  ;;  %v5909_v16 = vld [vmem:[#allocation10 + $0x68] sm:$0xf0] }
  0x57   : > { %517 = vst [vmem:[#allocation5 + $0x48] sm:$0x3] %v8755_v12  ;;  %v7824_v17 = vld [vmem:[#allocation10 + $0xe4] sm:$0xf]  ;;  %v5973_v18 = vld [vmem:[#allocation10 + $0xe8] sm:$0xf0]  ;;  %v5912_v21 = vor.u32 %v7808_v14, %v5909_v16 }
  0x58   : > { %996 = vmatpush.bf16.msra.mxu0 %v5732_v50  ;;  %1009 = vmatpush.bf16.msra.mxu1 %v5796_v53  ;;  %v5976_v22 = vor.u32 %v7824_v17, %v5973_v18  ;;  %v5899_v23 = vld [vmem:[#allocation10 + $0x50] sm:$0xf]  ;;  %v7807_v24 = vld [vmem:[#allocation10 + $0x54] sm:$0xf0]  ;;  %v7806_v27 = vld [vmem:[#allocation10 + $0x54] sm:$0xf]  ;;  %v708_v53 = vlaneseq }
  0x59   : > { %1022 = vmatpush.bf16.msra.mxu2 %v5736_v56  ;;  %v5900_v12 = vor.u32 %v7807_v24, %v5899_v23  ;;  %v5963_v25 = vld [vmem:[#allocation10 + $0xd0] sm:$0xf]  ;;  %v7823_v26 = vld [vmem:[#allocation10 + $0xd4] sm:$0xf0]  ;;  %v5901_v29 = vld [vmem:[#allocation10 + $0x58] sm:$0xf0] }
  0x5a   : > { %1035 = vmatpush.bf16.msra.mxu3 %v5800_v59  ;;  %v5964_v28 = vor.u32 %v7823_v26, %v5963_v25  ;;  %v7822_v30 = vld [vmem:[#allocation10 + $0xd4] sm:$0xf]  ;;  %v5965_v31 = vld [vmem:[#allocation10 + $0xd8] sm:$0xf0]  ;;  %v5904_v32 = vor.u32 %v7806_v27, %v5901_v29  ;;  %v5891_v34 = vld [vmem:[#allocation10 + $0x40] sm:$0xf] }
  0x5b   : > { %v5968_v33 = vor.u32 %v7822_v30, %v5965_v31  ;;  %v7805_v35 = vld [vmem:[#allocation10 + $0x44] sm:$0xf0]  ;;  %v5955_v36 = vld [vmem:[#allocation10 + $0xc0] sm:$0xf]  ;;  %v7804_v39 = vld [vmem:[#allocation10 + $0x44] sm:$0xf] }
  0x5c   : > { %1201 = vmatpush.bf16.msrb.mxu0 %v5916_v62  ;;  %1214 = vmatpush.bf16.msrb.mxu1 %v5980_v1  ;;  %v5892_v37 = vor.u32 %v7805_v35, %v5891_v34  ;;  %v7821_v38 = vld [vmem:[#allocation10 + $0xc4] sm:$0xf0]  ;;  %v5893_v40 = vld [vmem:[#allocation10 + $0x48] sm:$0xf0]  ;;  %v7820_v43 = vld [vmem:[#allocation10 + $0xc4] sm:$0xf] }
  0x5d   : > { %1227 = vmatpush.bf16.msrb.mxu2 %v5920_v5  ;;  %v5956_v42 = vor.u32 %v7821_v38, %v5955_v36  ;;  %v5957_v44 = vld [vmem:[#allocation10 + $0xc8] sm:$0xf0]  ;;  %v5883_v45 = vld [vmem:[#allocation10 + $0x30] sm:$0xf]  ;;  %v5896_v48 = vor.u32 %v7804_v39, %v5893_v40  ;;  %v7803_v49 = vld [vmem:[#allocation10 + $0x34] sm:$0xf0] }
  0x5e   : > { %1240 = vmatpush.bf16.msrb.mxu3 %v5984_v8  ;;  %v5947_v50 = vld [vmem:[#allocation10 + $0xb0] sm:$0xf]  ;;  %v7819_v51 = vld [vmem:[#allocation10 + $0xb4] sm:$0xf0]  ;;  %v5960_v54 = vor.u32 %v7820_v43, %v5957_v44  ;;  %v7802_v55 = vld [vmem:[#allocation10 + $0x34] sm:$0xf]  ;;  %v5884_v58 = vor.u32 %v7803_v49, %v5883_v45 }
  0x5f   : > { %v5885_v56 = vld [vmem:[#allocation10 + $0x38] sm:$0xf0]  ;;  %v7818_v59 = vld [vmem:[#allocation10 + $0xb4] sm:$0xf]  ;;  %v5948_v63 = vor.u32 %v7819_v51, %v5947_v50  ;;  %v5875_v0 = vld [vmem:[#allocation10 + $0x20] sm:$0xf] }
  0x60   : > { %1202 = vmatpush.bf16.msrb.mxu0 %v5908_v11  ;;  %1215 = vmatpush.bf16.msrb.mxu1 %v5972_v15  ;;  %v5949_v60 = vld [vmem:[#allocation10 + $0xb8] sm:$0xf0]  ;;  %v7801_v1 = vld [vmem:[#allocation10 + $0x24] sm:$0xf0]  ;;  %v5888_v3 = vor.u32 %v7802_v55, %v5885_v56  ;;  %v5939_v5 = vld [vmem:[#allocation10 + $0xa0] sm:$0xf] }
  0x61   : > { %1228 = vmatpush.bf16.msrb.mxu2 %v5912_v21  ;;  %v7817_v6 = vld [vmem:[#allocation10 + $0xa4] sm:$0xf0]  ;;  %vm8955_vm2 = vcmp.lt.s32.totalorder %v708_v53, 256  ;;  %v5952_v9 = vor.u32 %v7818_v59, %v5949_v60  ;;  %v7800_v10 = vld [vmem:[#allocation10 + $0x24] sm:$0xf]  ;;  %v5876_v14 = vor.u32 %v7801_v1, %v5875_v0  ;;  %v574_v40 = vperm.slane %v8946_v4, 4 }
  0x62   : > { %1241 = vmatpush.bf16.msrb.mxu3 %v5976_v22  ;;  %v5877_v11 = vld [vmem:[#allocation10 + $0x28] sm:$0xf0]  ;;  %v7816_v15 = vld [vmem:[#allocation10 + $0xa4] sm:$0xf]  ;;  %v5940_v21 = vor.u32 %v7817_v6, %v5939_v5  ;;  %v5867_v22 = vld [vmem:[#allocation10 + $0x10] sm:$0xf] }
  0x63   : > { %v5941_v16 = vld [vmem:[#allocation10 + $0xa8] sm:$0xf0]  ;;  %v7799_v23 = vld [vmem:[#allocation10 + $0x14] sm:$0xf0]  ;;  %v5931_v24 = vld [vmem:[#allocation10 + $0x90] sm:$0xf]  ;;  %v5880_v26 = vor.u32 %v7800_v10, %v5877_v11 }
  0x64   : > { %1203 = vmatpush.bf16.msrb.mxu0 %v5900_v12  ;;  %1216 = vmatpush.bf16.msrb.mxu1 %v5964_v28  ;;  %v7815_v27 = vld [vmem:[#allocation10 + $0x94] sm:$0xf0]  ;;  %v5944_v28 = vor.u32 %v7816_v15, %v5941_v16  ;;  %v7798_v29 = vld [vmem:[#allocation10 + $0x14] sm:$0xf]  ;;  %v5869_v30 = vld [vmem:[#allocation10 + $0x18] sm:$0xf0] }
  0x65   : > { %1229 = vmatpush.bf16.msrb.mxu2 %v5904_v32  ;;  %v7814_v34 = vld [vmem:[#allocation10 + $0x94] sm:$0xf]  ;;  %v5933_v35 = vld [vmem:[#allocation10 + $0x98] sm:$0xf0]  ;;  %v5932_v36 = vor.u32 %v7815_v27, %v5931_v24  ;;  %v7797_v38 = vld [vmem:[#allocation10 + $0x4] sm:$0xf0] }
  0x66   : > { %1242 = vmatpush.bf16.msrb.mxu3 %v5968_v33  ;;  %v5868_v33 = vor.u32 %v7799_v23, %v5867_v22  ;;  %v7813_v43 = vld [vmem:[#allocation10 + $0x84] sm:$0xf0]  ;;  %v575_v44 = vperm.slane %v8946_v4, 5  ;;  %v5936_v45 = vor.u32 %v7814_v34, %v5933_v35  ;;  %v7812_v51 = vld [vmem:[#allocation10 + $0x84] sm:$0xf]  ;;  %v577_v0 = vperm.slane %v8946_v4, 7 }
  0x67   : > { %v7907_v22 = vld [vmem:[#allocation10 + $0x374] sm:$0xf0]  ;;  %v6045_v27 = vld [vmem:[#allocation10 + $0x378] sm:$0xf0]  ;;  %vm3069_vm3 = vsmask.f32 7424 }
  0x68   : > { %1204 = vmatpush.bf16.msrb.mxu0 %v5892_v37  ;;  %1217 = vmatpush.bf16.msrb.mxu1 %v5956_v42  ;;  %v5859_v37 = vld [vmem:[#allocation10] sm:$0xf]  ;;  %v7459_v8 = vld [vmem:[#allocation19 + $0x80] sm:$0xf] }
  0x69   : > { %1230 = vmatpush.bf16.msrb.mxu2 %v5896_v48  ;;  %v5923_v42 = vld [vmem:[#allocation10 + $0x80] sm:$0xf]  ;;  %v5860_v50 = vor.u32 %v7797_v38, %v5859_v37 }
  0x6a   : > { %1243 = vmatpush.bf16.msrb.mxu3 %v5960_v54  ;;  %v5924_v55 = vor.u32 %v7813_v43, %v5923_v42  ;;  %v6035_v38 = vld [vmem:[#allocation10 + $0x360] sm:$0xf]  ;;  %v7921_v43 = vld [vmem:[#allocation10 + $0x3e4] sm:$0xf0] }
  0x6b   : > { %v6099_v42 = vld [vmem:[#allocation10 + $0x3e0] sm:$0xf] }
  0x6c   : > { %1205 = vmatpush.bf16.msrb.mxu0 %v5884_v58  ;;  %1218 = vmatpush.bf16.msrb.mxu1 %v5948_v63  ;;  %v576_v63 = vperm.slane %v8946_v4, 6 }
  0x6d   : > { %1231 = vmatpush.bf16.msrb.mxu2 %v5888_v3 }
  0x6e   : > { %1244 = vmatpush.bf16.msrb.mxu3 %v5952_v9 }
  0x70   : > { %1206 = vmatpush.bf16.msrb.mxu0 %v5876_v14  ;;  %1219 = vmatpush.bf16.msrb.mxu1 %v5940_v21  ;;  %v6043_v21 = vld [vmem:[#allocation10 + $0x370] sm:$0xf] }
  0x71   : > { %1232 = vmatpush.bf16.msrb.mxu2 %v5880_v26  ;;  %v7906_v26 = vld [vmem:[#allocation10 + $0x374] sm:$0xf] }
  0x72   : > { %1245 = vmatpush.bf16.msrb.mxu3 %v5944_v28  ;;  %v7922_v28 = vld [vmem:[#allocation10 + $0x3f4] sm:$0xf] }
  0x74   : > { %1207 = vmatpush.bf16.msrb.mxu0 %v5868_v33  ;;  %1220 = vmatpush.bf16.msrb.mxu1 %v5932_v36  ;;  %v6109_v33 = vld [vmem:[#allocation10 + $0x3f8] sm:$0xf0]  ;;  %v6044_v36 = vor.u32 %v7907_v22, %v6043_v21  ;;  %v7914_v22 = vld [vmem:[#allocation10 + $0x3b4] sm:$0xf] }
  0x75   : > { %v6013_v21 = vld [vmem:[#allocation10 + $0x338] sm:$0xf0] }
  0x76   : > { %1246 = vmatpush.bf16.msrb.mxu3 %v5936_v45  ;;  %v6037_v45 = vld [vmem:[#allocation10 + $0x368] sm:$0xf0] }
  0x78   : > { %1208 = vmatpush.bf16.msrb.mxu0 %v5860_v50  ;;  %1221 = vmatpush.bf16.msrb.mxu1 %v5924_v55  ;;  %v6027_v50 = vld [vmem:[#allocation10 + $0x350] sm:$0xf]  ;;  %v7919_v55 = vld [vmem:[#allocation10 + $0x3d4] sm:$0xf0] }
  0xb3   : > { %v599_v41 = vpop.f32.mrf.mxu0 }
  0xb4   : > { %v600_v46 = vadd.f32 %v599_v41, %v570_v19  ;;  %v612_v47 = vpop.f32.mrf.mxu1  ;;  %v5872_v41 = vor.u32 %v7798_v29, %v5869_v30 }
  0xb5   : > { %v613_v52 = vadd.f32 %v612_v47, %v571_v20  ;;  %v5861_v47 = vld [vmem:[#allocation10 + $0x8] sm:$0xf0] }
  0xb6   : > { %v694_v61 = vmax.f32 %v600_v46, 0.0  ;;  %v7796_v46 = vld [vmem:[#allocation10 + $0x4] sm:$0xf]  ;;  %1233 = vmatpush.bf16.msrb.mxu2 %v5872_v41  ;;  %v6112_v41 = vor.u32 %v7922_v28, %v6109_v33  ;;  %v7897_v28 = vld [vmem:[#allocation10 + $0x324] sm:$0xf0] }
  0xb7   : > { %v695_v62 = vmax.f32 %v613_v52, 0.0  ;;  %v5925_v52 = vld [vmem:[#allocation10 + $0x88] sm:$0xf0]  ;;  %v5864_v58 = vor.u32 %v7796_v46, %v5861_v47  ;;  %v7920_v46 = vld [vmem:[#allocation10 + $0x3e4] sm:$0xf] }
  0xb8   : > { %v5928_v60 = vor.u32 %v7812_v51, %v5925_v52  ;;  %v6101_v47 = vld [vmem:[#allocation10 + $0x3e8] sm:$0xf0]  ;;  %v7903_v51 = vld [vmem:[#allocation10 + $0x354] sm:$0xf0]  ;;  %v7896_v33 = vld [vmem:[#allocation10 + $0x324] sm:$0xf] }
  0xb9   : > { %v704_v7 = vrot.slane %v695_v62, 7 }
  0xba   : > { %v625_v13 = vpop.f32.mrf.mxu2  ;;  %1234 = vmatpush.bf16.msrb.mxu2 %v5864_v58  ;;  %1247 = vmatpush.bf16.msrb.mxu3 %v5928_v60  ;;  %v7918_v58 = vld [vmem:[#allocation10 + $0x3d4] sm:$0xf]  ;;  %v6028_v60 = vor.u32 %v7903_v51, %v6027_v50  ;;  %v6061_v50 = vld [vmem:[#allocation10 + $0x398] sm:$0xf0]  ;;  %v5987_v51 = vld [vmem:[#allocation10 + $0x300] sm:$0xf] }
  0xbb   : > { %v706_v17 = vsel %vm705_vm1, %v694_v61, %v704_v7  ;;  %v626_v18 = vadd.f32 %v625_v13, %v572_v57  ;;  %v601_v20 = vpop.f32.mrf.mxu0 }
  0xbc   : > { %v638_v19 = vpop.f32.mrf.mxu3  ;;  %713 = vst.msk [vmem:[#allocation2 + $0x1] ss:$8 sm:$0x3] %vm8955_vm2, %v706_v17  ;;  %v614_v25 = vpop.f32.mrf.mxu1 }
  0xbd   : > { %v639_v12 = vadd.f32 %v638_v19, %v573_v2  ;;  %v696_v31 = vmax.f32 %v626_v18, 0.0  ;;  %v7923_v25 = vld [vmem:[#allocation10 + $0x3f4] sm:$0xf0] }
  0xbf   : > { %v697_v32 = vmax.f32 %v639_v12, 0.0  ;;  %v6107_v12 = vld [vmem:[#allocation10 + $0x3f0] sm:$0xf] }
  0xc0   : > { %v6108_v37 = vor.u32 %v7923_v25, %v6107_v12 }
  0xc1   : > { %v717_v39 = vrot.slane %v697_v32, 7 }
  0xc2   : > { %v627_v49 = vpop.f32.mrf.mxu2 }
  0xc3   : > { %v718_v48 = vsel %vm705_vm1, %v696_v31, %v717_v39  ;;  %v651_v54 = vpop.f32.mrf.mxu0  ;;  %v7905_v39 = vld [vmem:[#allocation10 + $0x364] sm:$0xf0]  ;;  %v6100_v49 = vor.u32 %v7921_v43, %v6099_v42  ;;  %v7895_v42 = vld [vmem:[#allocation10 + $0x314] sm:$0xf0] }
  0xc4   : > { %721 = vst.msk [vmem:[#allocation2 + $0x2] ss:$8 sm:$0x3] %vm8955_vm2, %v718_v48  ;;  %v640_v53 = vpop.f32.mrf.mxu3  ;;  %v652_v56 = vadd.f32 %v651_v54, %v574_v40  ;;  %v664_v57 = vpop.f32.mrf.mxu1  ;;  %v6048_v40 = vor.u32 %v7906_v26, %v6045_v27  ;;  %v6036_v48 = vor.u32 %v7905_v39, %v6035_v38  ;;  %v6091_v54 = vld [vmem:[#allocation10 + $0x3d0] sm:$0xf] }
  0xc5   : > { %v665_v59 = vadd.f32 %v664_v57, %v575_v44  ;;  %v7904_v44 = vld [vmem:[#allocation10 + $0x364] sm:$0xf]  ;;  %v6104_v53 = vor.u32 %v7920_v46, %v6101_v47  ;;  %v6029_v57 = vld [vmem:[#allocation10 + $0x358] sm:$0xf0]  ;;  %v6003_v27 = vld [vmem:[#allocation10 + $0x320] sm:$0xf] }
  0xc6   : > { %v698_v61 = vmax.f32 %v652_v56, 0.0  ;;  %v6040_v52 = vor.u32 %v7904_v44, %v6037_v45  ;;  %v7902_v56 = vld [vmem:[#allocation10 + $0x354] sm:$0xf]  ;;  %v6069_v38 = vld [vmem:[#allocation10 + $0x3a8] sm:$0xf0]  ;;  %v6004_v39 = vor.u32 %v7897_v28, %v6003_v27 }
  0xc7   : > { %v699_v62 = vmax.f32 %v665_v59, 0.0  ;;  %v6093_v59 = vld [vmem:[#allocation10 + $0x3d8] sm:$0xf0]  ;;  %v6059_v45 = vld [vmem:[#allocation10 + $0x390] sm:$0xf] }
  0xc8   : > { %v7911_v46 = vld [vmem:[#allocation10 + $0x394] sm:$0xf0]  ;;  %v7894_v47 = vld [vmem:[#allocation10 + $0x314] sm:$0xf]  ;;  %v6229_v27 = vld [vmem:[#allocation10 + $0x2e8] sm:$0xf0] }
  0xc9   : > { %v725_v1 = vrot.slane %v699_v62, 7  ;;  %v6019_v62 = vld [vmem:[#allocation10 + $0x340] sm:$0xf] }
  0xca   : > { %v677_v2 = vpop.f32.mrf.mxu2 }
  0xcb   : > { %v726_v3 = vsel %vm705_vm1, %v698_v61, %v725_v1  ;;  %v678_v5 = vadd.f32 %v677_v2, %v576_v63  ;;  %v653_v7 = vpop.f32.mrf.mxu0  ;;  %v6092_v61 = vor.u32 %v7919_v55, %v6091_v54  ;;  %v7901_v63 = vld [vmem:[#allocation10 + $0x344] sm:$0xf0]  ;;  %v6096_v1 = vor.u32 %v7918_v58, %v6093_v59  ;;  %v6083_v2 = vld [vmem:[#allocation10 + $0x3c0] sm:$0xf] }
  0xcc   : > { %v690_v6 = vpop.f32.mrf.mxu3  ;;  %729 = vst.msk [vmem:[#allocation2 + $0x3] ss:$8 sm:$0x3] %vm8955_vm2, %v726_v3  ;;  %v666_v10 = vpop.f32.mrf.mxu1  ;;  %v7917_v3 = vld [vmem:[#allocation10 + $0x3c4] sm:$0xf0]  ;;  %v6060_v54 = vor.u32 %v7911_v46, %v6059_v45 }
  0xcd   : > { %v691_v9 = vadd.f32 %v690_v6, %v577_v0  ;;  %v700_v11 = vmax.f32 %v678_v5, 0.0  ;;  %v6032_v0 = vor.u32 %v7902_v56, %v6029_v57  ;;  %v7900_v5 = vld [vmem:[#allocation10 + $0x344] sm:$0xf]  ;;  %v6021_v6 = vld [vmem:[#allocation10 + $0x348] sm:$0xf0] }
  0xce   : > { %v7916_v7 = vld [vmem:[#allocation10 + $0x3c4] sm:$0xf]  ;;  %v6051_v55 = vld [vmem:[#allocation10 + $0x380] sm:$0xf]  ;;  %v7909_v56 = vld [vmem:[#allocation10 + $0x384] sm:$0xf0] }
  0xcf   : > { %v701_v13 = vmax.f32 %v691_v9, 0.0  ;;  %v6085_v9 = vld [vmem:[#allocation10 + $0x3c8] sm:$0xf0]  ;;  %v7892_v57 = vld [vmem:[#allocation10 + $0x304] sm:$0xf] }
  0xd0   : > { %v6147_v46 = vld [vmem:[#allocation10 + $0x240] sm:$0xf] }
  0xd1   : > { %v733_v14 = vrot.slane %v701_v13, 7  ;;  %v6084_v13 = vor.u32 %v7917_v3, %v6083_v2  ;;  %v6235_v2 = vld [vmem:[#allocation10 + $0x2f0] sm:$0xf]  ;;  %v7891_v3 = vld [vmem:[#allocation10 + $0x2f4] sm:$0xf0] }
  0xd2   : > { %v679_v4 = vpop.f32.mrf.mxu2 }
  0xd3   : > { %v734_v15 = vsel %vm705_vm1, %v700_v11, %v733_v14  ;;  %v740_v10 = vld [vmem:[#allocation2] sm:$0xf]  ;;  %v6020_v11 = vor.u32 %v7901_v63, %v6019_v62  ;;  %v741_v14 = vld [vmem:[#allocation2 + $0x8] sm:$0xf]  ;;  %v7899_v4 = vld [vmem:[#allocation10 + $0x334] sm:$0xf0] }
  0xd4   : > { %737 = vst.msk [vmem:[#allocation2 + $0x4] ss:$8 sm:$0x3] %vm8955_vm2, %v734_v15  ;;  %v692_v16 = vpop.f32.mrf.mxu3  ;;  %v6011_v15 = vld [vmem:[#allocation10 + $0x330] sm:$0xf]  ;;  %v743_v12 = vpack.c.bf16 %v741_v14, %v741_v14 }
  0xd5   : > { %v6024_v16 = vor.u32 %v7900_v5, %v6021_v6  ;;  %v6012_v25 = vor.u32 %v7899_v4, %v6011_v15  ;;  %v6053_v62 = vld [vmem:[#allocation10 + $0x388] sm:$0xf0]  ;;  %v7874_v5 = vld [vmem:[#allocation10 + $0x274] sm:$0xf] }
  0xdb   : > { %v744_v17 = vld [vmem:[#allocation2] sm:$0x1e]  ;;  %v745_v18 = vld [vmem:[#allocation2 + $0x8] sm:$0x1e] }
  0xdc   : > { %v746_v19 = vpack.c.bf16 %v744_v17, %v744_v17  ;;  %v747_v20 = vpack.c.bf16 %v745_v18, %v745_v18  ;;  %v6088_v17 = vor.u32 %v7916_v7, %v6085_v9  ;;  %v6075_v18 = vld [vmem:[#allocation10 + $0x3b0] sm:$0xf]  ;;  %v1262_v63 = vld [vmem:[#allocation2] sm:$0x3c]  ;;  %v6052_v9 = vor.u32 %v7909_v56, %v6051_v55 }
  0xdd   : > { %v1263_v6 = vld [vmem:[#allocation2 + $0x8] sm:$0x3c]  ;;  %v6213_v55 = vld [vmem:[#allocation10 + $0x2c8] sm:$0xf0] }
  0xde   : > { %v816_v23 = vshll.u32 %v746_v19, 16  ;;  %v823_v24 = vshll.u32 %v747_v20, 16  ;;  %v814_v29 = vshrl.u32 %v746_v19, 16  ;;  %v821_v31 = vshrl.u32 %v747_v20, 16  ;;  %v7915_v19 = vld [vmem:[#allocation10 + $0x3b4] sm:$0xf0] }
  0xdf   : > { %v7898_v20 = vld [vmem:[#allocation10 + $0x334] sm:$0xf]  ;;  %v6076_v26 = vor.u32 %v7915_v19, %v6075_v18  ;;  %v1265_v18 = vpack.c.bf16 %v1263_v6, %v1263_v6  ;;  %v6163_v19 = vld [vmem:[#allocation10 + $0x260] sm:$0xf] }
  0xe0   : > { %v818_v30 = vrot.slane %v816_v23, 1  ;;  %v825_v32 = vrot.slane %v823_v24, 1  ;;  %v6077_v23 = vld [vmem:[#allocation10 + $0x3b8] sm:$0xf0]  ;;  %v742_v24 = vpack.c.bf16 %v740_v10, %v740_v10 }
  0xe1   : > { %v6173_v10 = vld [vmem:[#allocation10 + $0x278] sm:$0xf0] }
  0xe2   : > { %v8975_v34 = vor.u32 %v818_v30, %v814_v29  ;;  %v8977_v35 = vor.u32 %v825_v32, %v821_v31  ;;  %v6016_v29 = vor.u32 %v7898_v20, %v6013_v21  ;;  %v6080_v30 = vor.u32 %v7914_v22, %v6077_v23  ;;  %v6067_v31 = vld [vmem:[#allocation10 + $0x3a0] sm:$0xf]  ;;  %v7913_v32 = vld [vmem:[#allocation10 + $0x3a4] sm:$0xf0] }
  0xe3   : > { %v7873_v20 = vld [vmem:[#allocation10 + $0x264] sm:$0xf0]  ;;  %v6176_v21 = vor.u32 %v7874_v5, %v6173_v10  ;;  %v6227_v23 = vld [vmem:[#allocation10 + $0x2e0] sm:$0xf] }
  0xe4   : > { %997 = vmatmul.bf16.vlgmr.msra.gmra.mxu0 %v8975_v34  ;;  %1010 = vmatmul.bf16.vlgmr.msra.gmra.mxu1 %v8977_v35 }
  0xe5   : > { %1023 = vmatmul.bf16.vlgmr.msra.gmra.mxu2 %v8975_v34  ;;  %1036 = vmatmul.bf16.vlgmr.msra.gmra.mxu3 %v8977_v35 }
  0xe6   : > { %1498 = vmatpush.bf16.msra.mxu0 %v6044_v36  ;;  %1511 = vmatpush.bf16.msra.mxu1 %v6108_v37  ;;  %v6005_v36 = vld [vmem:[#allocation10 + $0x328] sm:$0xf0]  ;;  %v7912_v37 = vld [vmem:[#allocation10 + $0x3a4] sm:$0xf] }
  0xe7   : > { %1524 = vmatpush.bf16.msra.mxu2 %v6048_v40  ;;  %1537 = vmatpush.bf16.msra.mxu3 %v6112_v41  ;;  %v6068_v40 = vor.u32 %v7913_v32, %v6067_v31  ;;  %v5995_v41 = vld [vmem:[#allocation10 + $0x310] sm:$0xf]  ;;  %v6008_v43 = vor.u32 %v7896_v33, %v6005_v36  ;;  %v6072_v44 = vor.u32 %v7912_v37, %v6069_v38  ;;  %v7871_v33 = vld [vmem:[#allocation10 + $0x254] sm:$0xf0] }
  0xe8   : > { %v6155_v32 = vld [vmem:[#allocation10 + $0x250] sm:$0xf] }
  0xe9   : > { %v6219_v38 = vld [vmem:[#allocation10 + $0x2d0] sm:$0xf] }
  0xea   : > { %1499 = vmatpush.bf16.msra.mxu0 %v6036_v48  ;;  %1512 = vmatpush.bf16.msra.mxu1 %v6100_v49  ;;  %v5997_v48 = vld [vmem:[#allocation10 + $0x318] sm:$0xf0]  ;;  %v7910_v49 = vld [vmem:[#allocation10 + $0x394] sm:$0xf] }
  0xeb   : > { %1525 = vmatpush.bf16.msra.mxu2 %v6040_v52  ;;  %1538 = vmatpush.bf16.msra.mxu3 %v6104_v53  ;;  %v7893_v52 = vld [vmem:[#allocation10 + $0x304] sm:$0xf0]  ;;  %v5996_v53 = vor.u32 %v7895_v42, %v5995_v41  ;;  %v6000_v58 = vor.u32 %v7894_v47, %v5997_v48  ;;  %v6064_v59 = vor.u32 %v7910_v49, %v6061_v50  ;;  %v6157_v41 = vld [vmem:[#allocation10 + $0x258] sm:$0xf0]  ;;  %v7886_v42 = vld [vmem:[#allocation10 + $0x2d4] sm:$0xf] }
  0xec   : > { %v5988_v7 = vor.u32 %v7893_v52, %v5987_v51  ;;  %v7869_v47 = vld [vmem:[#allocation10 + $0x244] sm:$0xf0]  ;;  %v6211_v50 = vld [vmem:[#allocation10 + $0x2c0] sm:$0xf]  ;;  %v7868_v52 = vld [vmem:[#allocation10 + $0x244] sm:$0xf] }
  0xed   : > { %v7885_v51 = vld [vmem:[#allocation10 + $0x2c4] sm:$0xf0]  ;;  %v6148_v56 = vor.u32 %v7869_v47, %v6147_v46 }
  0xee   : > { %1500 = vmatpush.bf16.msra.mxu0 %v6028_v60  ;;  %1513 = vmatpush.bf16.msra.mxu1 %v6092_v61  ;;  %v5989_v60 = vld [vmem:[#allocation10 + $0x308] sm:$0xf0]  ;;  %v7908_v61 = vld [vmem:[#allocation10 + $0x384] sm:$0xf] }
  0xef   : > { %1526 = vmatpush.bf16.msra.mxu2 %v6032_v0  ;;  %1539 = vmatpush.bf16.msra.mxu3 %v6096_v1  ;;  %v6171_v0 = vld [vmem:[#allocation10 + $0x270] sm:$0xf]  ;;  %v7875_v1 = vld [vmem:[#allocation10 + $0x274] sm:$0xf0]  ;;  %v5992_v14 = vor.u32 %v7892_v57, %v5989_v60  ;;  %v6056_v15 = vor.u32 %v7908_v61, %v6053_v62  ;;  %v6212_v57 = vor.u32 %v7885_v51, %v6211_v50 }
  0xf0   : > { %v6172_v4 = vor.u32 %v7875_v1, %v6171_v0  ;;  %v6203_v62 = vld [vmem:[#allocation10 + $0x2b0] sm:$0xf]  ;;  %v7866_v0 = vld [vmem:[#allocation10 + $0x234] sm:$0xf]  ;;  %v6141_v1 = vld [vmem:[#allocation10 + $0x238] sm:$0xf0] }
  0xf1   : > { %v6144_v10 = vor.u32 %v7866_v0, %v6141_v1 }
  0xf2   : > { %1501 = vmatpush.bf16.msra.mxu0 %v6020_v11  ;;  %1514 = vmatpush.bf16.msra.mxu1 %v6084_v13  ;;  %v7890_v11 = vld [vmem:[#allocation10 + $0x2f4] sm:$0xf]  ;;  %v6237_v13 = vld [vmem:[#allocation10 + $0x2f8] sm:$0xf0] }
  0xf3   : > { %1527 = vmatpush.bf16.msra.mxu2 %v6024_v16  ;;  %1540 = vmatpush.bf16.msra.mxu3 %v6088_v17  ;;  %v6236_v16 = vor.u32 %v7891_v3, %v6235_v2  ;;  %v1264_v17 = vpack.c.bf16 %v1262_v63, %v1262_v63  ;;  %v6240_v22 = vor.u32 %v7890_v11, %v6237_v13  ;;  %v7883_v63 = vld [vmem:[#allocation10 + $0x2b4] sm:$0xf0]  ;;  %v7882_v2 = vld [vmem:[#allocation10 + $0x2b4] sm:$0xf]  ;;  %v6205_v3 = vld [vmem:[#allocation10 + $0x2b8] sm:$0xf0] }
  0xf4   : > { %1209 = vmatmul.bf16.vlgmr.msrb.gmra.mxu0 %v742_v24  ;;  %1222 = vmatmul.bf16.vlgmr.msrb.gmra.mxu1 %v743_v12  ;;  %v6204_v6 = vor.u32 %v7883_v63, %v6203_v62  ;;  %v6208_v11 = vor.u32 %v7882_v2, %v6205_v3  ;;  %v6195_v13 = vld [vmem:[#allocation10 + $0x2a0] sm:$0xf] }
  0xf5   : > { %1235 = vmatmul.bf16.vlgmr.msrb.gmra.mxu2 %v742_v24  ;;  %1248 = vmatmul.bf16.vlgmr.msrb.gmra.mxu3 %v743_v12  ;;  %v7889_v24 = vld [vmem:[#allocation10 + $0x2e4] sm:$0xf0]  ;;  %v7872_v12 = vld [vmem:[#allocation10 + $0x264] sm:$0xf]  ;;  %v1334_v28 = vrot.slane %v1264_v17, 1 }
  0xf6   : > { %1502 = vmatpush.bf16.msra.mxu0 %v6012_v25  ;;  %1515 = vmatpush.bf16.msra.mxu1 %v6076_v26  ;;  %v6165_v25 = vld [vmem:[#allocation10 + $0x268] sm:$0xf0]  ;;  %v7888_v26 = vld [vmem:[#allocation10 + $0x2e4] sm:$0xf]  ;;  %v6228_v31 = vor.u32 %v7889_v24, %v6227_v23  ;;  %v6187_v24 = vld [vmem:[#allocation10 + $0x290] sm:$0xf] }
  0xf7   : > { %1528 = vmatpush.bf16.msra.mxu2 %v6016_v29  ;;  %1541 = vmatpush.bf16.msra.mxu3 %v6080_v30  ;;  %v1335_v29 = vrot.slane %v1265_v18, 1  ;;  %v6164_v30 = vor.u32 %v7873_v20, %v6163_v19  ;;  %v6168_v36 = vor.u32 %v7872_v12, %v6165_v25  ;;  %v6232_v37 = vor.u32 %v7888_v26, %v6229_v27  ;;  %v6197_v17 = vld [vmem:[#allocation10 + $0x2a8] sm:$0xf0]  ;;  %v6123_v20 = vld [vmem:[#allocation10 + $0x210] sm:$0xf] }
  0xf8   : > { %v7879_v12 = vld [vmem:[#allocation10 + $0x294] sm:$0xf0]  ;;  %v7862_v25 = vld [vmem:[#allocation10 + $0x214] sm:$0xf]  ;;  %v6125_v26 = vld [vmem:[#allocation10 + $0x218] sm:$0xf0] }
  0xf9   : > { %v7878_v27 = vld [vmem:[#allocation10 + $0x294] sm:$0xf] }
  0xfa   : > { %1503 = vmatpush.bf16.msra.mxu0 %v6004_v39  ;;  %1516 = vmatpush.bf16.msra.mxu1 %v6068_v40  ;;  %v7887_v39 = vld [vmem:[#allocation10 + $0x2d4] sm:$0xf0]  ;;  %v7870_v40 = vld [vmem:[#allocation10 + $0x254] sm:$0xf] }
  0xfb   : > { %1529 = vmatpush.bf16.msra.mxu2 %v6008_v43  ;;  %1542 = vmatpush.bf16.msra.mxu3 %v6072_v44  ;;  %v6221_v43 = vld [vmem:[#allocation10 + $0x2d8] sm:$0xf0]  ;;  %v6156_v44 = vor.u32 %v7871_v33, %v6155_v32  ;;  %v6220_v45 = vor.u32 %v7887_v39, %v6219_v38  ;;  %v6160_v48 = vor.u32 %v7870_v40, %v6157_v41  ;;  %v7861_v32 = vld [vmem:[#allocation10 + $0x204] sm:$0xf0]  ;;  %v7860_v39 = vld [vmem:[#allocation10 + $0x204] sm:$0xf] }
  0xfc   : > { %v6224_v49 = vor.u32 %v7886_v42, %v6221_v43  ;;  %v6128_v33 = vor.u32 %v7862_v25, %v6125_v26  ;;  %v7877_v38 = vld [vmem:[#allocation10 + $0x284] sm:$0xf0]  ;;  %v6117_v40 = vld [vmem:[#allocation10 + $0x208] sm:$0xf0]  ;;  %v7876_v41 = vld [vmem:[#allocation10 + $0x284] sm:$0xf] }
  0xfd   : > { %v6181_v42 = vld [vmem:[#allocation10 + $0x288] sm:$0xf0]  ;;  %v7987_v26 = vld [vmem:[#allocation13 + $0x1f4] sm:$0xf0] }
  0xfe   : > { %1504 = vmatpush.bf16.msra.mxu0 %v5996_v53  ;;  %1517 = vmatpush.bf16.msra.mxu1 %v6060_v54  ;;  %v6149_v53 = vld [vmem:[#allocation10 + $0x248] sm:$0xf0]  ;;  %v7884_v54 = vld [vmem:[#allocation10 + $0x2c4] sm:$0xf]  ;;  %v6184_v46 = vor.u32 %v7876_v41, %v6181_v42 }
  0xff   : > { %1530 = vmatpush.bf16.msra.mxu2 %v6000_v58  ;;  %1543 = vmatpush.bf16.msra.mxu3 %v6064_v59  ;;  %v6139_v58 = vld [vmem:[#allocation10 + $0x230] sm:$0xf]  ;;  %v7867_v59 = vld [vmem:[#allocation10 + $0x234] sm:$0xf0]  ;;  %v6152_v60 = vor.u32 %v7868_v52, %v6149_v53  ;;  %v6216_v61 = vor.u32 %v7884_v54, %v6213_v55  ;;  %v8987_v53 = vld [vmem:[#allocation11] sm:$0x3] }
 0x100   : > { %v6140_v5 = vor.u32 %v7867_v59, %v6139_v58  ;;  %v1255_v2 = vperm.slane %v8987_v53, 1  ;;  %v7968_v41 = vld [vmem:[#allocation13 + $0x164] sm:$0xf]  ;;  %v6293_v42 = vld [vmem:[#allocation13 + $0x168] sm:$0xf0] }
 0x102   : > { %1505 = vmatpush.bf16.msra.mxu0 %v5988_v7  ;;  %1518 = vmatpush.bf16.msra.mxu1 %v6052_v9  ;;  %v6131_v7 = vld [vmem:[#allocation10 + $0x220] sm:$0xf]  ;;  %v7865_v9 = vld [vmem:[#allocation10 + $0x224] sm:$0xf0] }
 0x103   : > { %1531 = vmatpush.bf16.msra.mxu2 %v5992_v14  ;;  %1544 = vmatpush.bf16.msra.mxu3 %v6056_v15  ;;  %v7881_v14 = vld [vmem:[#allocation10 + $0x2a4] sm:$0xf0]  ;;  %v7864_v15 = vld [vmem:[#allocation10 + $0x224] sm:$0xf]  ;;  %v6132_v18 = vor.u32 %v7865_v9, %v6131_v7 }
 0x104   : > { %v6196_v19 = vor.u32 %v7881_v14, %v6195_v13 }
 0x105   : > { %1506 = vmatmul.bf16.vlgmr.msra.gmra.mxu0 %v1334_v28  ;;  %1519 = vmatmul.bf16.vlgmr.msra.gmra.mxu1 %v1335_v29 }
 0x106   : > { %1710 = vmatpush.bf16.msrb.mxu0 %v6172_v4  ;;  %1723 = vmatpush.bf16.msrb.mxu1 %v6236_v16  ;;  %v6133_v4 = vld [vmem:[#allocation10 + $0x228] sm:$0xf0]  ;;  %v7880_v16 = vld [vmem:[#allocation10 + $0x2a4] sm:$0xf] }
 0x107   : > { %1736 = vmatpush.bf16.msrb.mxu2 %v6176_v21  ;;  %1749 = vmatpush.bf16.msrb.mxu3 %v6240_v22  ;;  %v7863_v21 = vld [vmem:[#allocation10 + $0x214] sm:$0xf0]  ;;  %v6136_v22 = vor.u32 %v7864_v15, %v6133_v4  ;;  %v6200_v23 = vor.u32 %v7880_v16, %v6197_v17 }
 0x108   : > { %1532 = vmatmul.bf16.vlgmr.msra.gmra.mxu2 %v1334_v28  ;;  %1545 = vmatmul.bf16.vlgmr.msra.gmra.mxu3 %v1335_v29  ;;  %v6189_v28 = vld [vmem:[#allocation10 + $0x298] sm:$0xf0]  ;;  %v6124_v29 = vor.u32 %v7863_v21, %v6123_v20  ;;  %v6299_v21 = vld [vmem:[#allocation13 + $0x170] sm:$0xf] }
 0x10a   : > { %1711 = vmatpush.bf16.msrb.mxu0 %v6164_v30  ;;  %1724 = vmatpush.bf16.msrb.mxu1 %v6228_v31  ;;  %v6188_v30 = vor.u32 %v7879_v12, %v6187_v24  ;;  %v6115_v31 = vld [vmem:[#allocation10 + $0x200] sm:$0xf] }
 0x10b   : > { %1737 = vmatpush.bf16.msrb.mxu2 %v6168_v36  ;;  %1750 = vmatpush.bf16.msrb.mxu3 %v6232_v37  ;;  %v6192_v36 = vor.u32 %v7878_v27, %v6189_v28  ;;  %v6179_v37 = vld [vmem:[#allocation10 + $0x280] sm:$0xf]  ;;  %v6116_v43 = vor.u32 %v7861_v32, %v6115_v31  ;;  %v7970_v27 = vld [vmem:[#allocation13 + $0x174] sm:$0xf] }
 0x10c   : > { %v6301_v28 = vld [vmem:[#allocation13 + $0x178] sm:$0xf0]  ;;  %v7986_v31 = vld [vmem:[#allocation13 + $0x1f4] sm:$0xf] }
 0x10d   : > { %v6365_v32 = vld [vmem:[#allocation13 + $0x1f8] sm:$0xf0] }
 0x10e   : > { %1712 = vmatpush.bf16.msrb.mxu0 %v6156_v44  ;;  %1725 = vmatpush.bf16.msrb.mxu1 %v6220_v45  ;;  %v6180_v44 = vor.u32 %v7877_v38, %v6179_v37  ;;  %v6120_v45 = vor.u32 %v7860_v39, %v6117_v40  ;;  %v7969_v37 = vld [vmem:[#allocation13 + $0x164] sm:$0xf0]  ;;  %v6355_v38 = vld [vmem:[#allocation13 + $0x1e0] sm:$0xf] }
 0x10f   : > { %1738 = vmatpush.bf16.msrb.mxu2 %v6160_v48  ;;  %1751 = vmatpush.bf16.msrb.mxu3 %v6224_v49  ;;  %v7985_v40 = vld [vmem:[#allocation13 + $0x1e4] sm:$0xf0] }
 0x112   : > { %1713 = vmatpush.bf16.msrb.mxu0 %v6148_v56  ;;  %1726 = vmatpush.bf16.msrb.mxu1 %v6212_v57 }
 0x113   : > { %1739 = vmatpush.bf16.msrb.mxu2 %v6152_v60  ;;  %1752 = vmatpush.bf16.msrb.mxu3 %v6216_v61  ;;  %v1254_v60 = vperm.slane %v8987_v53, 0  ;;  %v7972_v53 = vld [vmem:[#allocation13 + $0x184] sm:$0xf] }
 0x116   : > { %1714 = vmatpush.bf16.msrb.mxu0 %v6140_v5  ;;  %1727 = vmatpush.bf16.msrb.mxu1 %v6204_v6 }
 0x117   : > { %1740 = vmatpush.bf16.msrb.mxu2 %v6144_v10  ;;  %1753 = vmatpush.bf16.msrb.mxu3 %v6208_v11 }
 0x11a   : > { %1715 = vmatpush.bf16.msrb.mxu0 %v6132_v18  ;;  %1728 = vmatpush.bf16.msrb.mxu1 %v6196_v19 }
 0x11b   : > { %1741 = vmatpush.bf16.msrb.mxu2 %v6136_v22  ;;  %1754 = vmatpush.bf16.msrb.mxu3 %v6200_v23  ;;  %v7971_v22 = vld [vmem:[#allocation13 + $0x174] sm:$0xf0]  ;;  %v6363_v23 = vld [vmem:[#allocation13 + $0x1f0] sm:$0xf] }
 0x11c   : > { %v6300_v25 = vor.u32 %v7971_v22, %v6299_v21  ;;  %v6267_v21 = vld [vmem:[#allocation13 + $0x130] sm:$0xf]  ;;  %v7963_v22 = vld [vmem:[#allocation13 + $0x134] sm:$0xf0] }
 0x11e   : > { %1716 = vmatpush.bf16.msrb.mxu0 %v6124_v29  ;;  %1729 = vmatpush.bf16.msrb.mxu1 %v6188_v30  ;;  %v6364_v29 = vor.u32 %v7987_v26, %v6363_v23  ;;  %v6304_v30 = vor.u32 %v7970_v27, %v6301_v28  ;;  %v6331_v23 = vld [vmem:[#allocation13 + $0x1b0] sm:$0xf]  ;;  %v6269_v26 = vld [vmem:[#allocation13 + $0x138] sm:$0xf0]  ;;  %v7978_v28 = vld [vmem:[#allocation13 + $0x1b4] sm:$0xf] }
 0x11f   : > { %1742 = vmatpush.bf16.msrb.mxu2 %v6128_v33  ;;  %1755 = vmatpush.bf16.msrb.mxu3 %v6192_v36  ;;  %v6368_v33 = vor.u32 %v7986_v31, %v6365_v32  ;;  %v6291_v36 = vld [vmem:[#allocation13 + $0x160] sm:$0xf] }
 0x120   : > { %v6292_v39 = vor.u32 %v7969_v37, %v6291_v36  ;;  %v6259_v32 = vld [vmem:[#allocation13 + $0x120] sm:$0xf] }
 0x121   : > { %v6323_v36 = vld [vmem:[#allocation13 + $0x1a0] sm:$0xf] }
 0x122   : > { %1717 = vmatpush.bf16.msrb.mxu0 %v6116_v43  ;;  %1730 = vmatpush.bf16.msrb.mxu1 %v6180_v44  ;;  %v6356_v43 = vor.u32 %v7985_v40, %v6355_v38  ;;  %v6296_v44 = vor.u32 %v7968_v41, %v6293_v42  ;;  %v7960_v40 = vld [vmem:[#allocation13 + $0x124] sm:$0xf]  ;;  %v6261_v41 = vld [vmem:[#allocation13 + $0x128] sm:$0xf0] }
 0x123   : > { %1743 = vmatpush.bf16.msrb.mxu2 %v6120_v45  ;;  %1756 = vmatpush.bf16.msrb.mxu3 %v6184_v46  ;;  %v7984_v45 = vld [vmem:[#allocation13 + $0x1e4] sm:$0xf]  ;;  %v6357_v46 = vld [vmem:[#allocation13 + $0x1e8] sm:$0xf0] }
 0x125   : > { %1718 = vmatmul.bf16.vlgmr.msrb.gmra.mxu0 %v8975_v34  ;;  %1731 = vmatmul.bf16.vlgmr.msrb.gmra.mxu1 %v8977_v35 }
 0x126   : > { %1744 = vmatmul.bf16.vlgmr.msrb.gmra.mxu2 %v8975_v34  ;;  %1757 = vmatmul.bf16.vlgmr.msrb.gmra.mxu3 %v8977_v35 }
 0x127   : > { %2082 = vmatpush.bf16.msra.mxu0 %v6300_v25  ;;  %2095 = vmatpush.bf16.msra.mxu1 %v6364_v29  ;;  %v7962_v25 = vld [vmem:[#allocation13 + $0x134] sm:$0xf]  ;;  %v6333_v29 = vld [vmem:[#allocation13 + $0x1b8] sm:$0xf0] }
 0x128   : > { %2108 = vmatpush.bf16.msra.mxu2 %v6304_v30  ;;  %2121 = vmatpush.bf16.msra.mxu3 %v6368_v33  ;;  %v6272_v27 = vor.u32 %v7962_v25, %v6269_v26  ;;  %v6336_v30 = vor.u32 %v7978_v28, %v6333_v29  ;;  %v7961_v33 = vld [vmem:[#allocation13 + $0x124] sm:$0xf0]  ;;  %v6491_v25 = vld [vmem:[#allocation13 + $0xf0] sm:$0xf]  ;;  %v7955_v26 = vld [vmem:[#allocation13 + $0xf4] sm:$0xf0] }
 0x129   : > { %v6260_v38 = vor.u32 %v7961_v33, %v6259_v32  ;;  %v6429_v28 = vld [vmem:[#allocation13 + $0x78] sm:$0xf0]  ;;  %v7954_v29 = vld [vmem:[#allocation13 + $0xf4] sm:$0xf]  ;;  %v6419_v33 = vld [vmem:[#allocation13 + $0x60] sm:$0xf] }
 0x12b   : > { %2083 = vmatpush.bf16.msra.mxu0 %v6292_v39  ;;  %2096 = vmatpush.bf16.msra.mxu1 %v6356_v43  ;;  %v7977_v39 = vld [vmem:[#allocation13 + $0x1a4] sm:$0xf0] }
 0x12c   : > { %2109 = vmatpush.bf16.msra.mxu2 %v6296_v44 }
 0x161   : > { %v998_v47 = vpop.f32.mrf.mxu0  ;;  %v1011_v48 = vpop.f32.mrf.mxu1 }
 0x162   : > { %v1012_v54 = vadd.f32 %v1011_v48, %v998_v47  ;;  %v6360_v47 = vor.u32 %v7984_v45, %v6357_v46  ;;  %v6283_v48 = vld [vmem:[#allocation13 + $0x150] sm:$0xf]  ;;  %v6324_v45 = vor.u32 %v7977_v39, %v6323_v36  ;;  %v6264_v46 = vor.u32 %v7960_v40, %v6261_v41  ;;  %v7937_v36 = vld [vmem:[#allocation13 + $0x64] sm:$0xf0]  ;;  %v7936_v41 = vld [vmem:[#allocation13 + $0x64] sm:$0xf] }
 0x163   : > { %v6420_v39 = vor.u32 %v7937_v36, %v6419_v33  ;;  %v6453_v33 = vld [vmem:[#allocation13 + $0xa8] sm:$0xf0]  ;;  %v6379_v36 = vld [vmem:[#allocation13 + $0x10] sm:$0xf] }
 0x164   : > { %2122 = vmatpush.bf16.msra.mxu3 %v6360_v47  ;;  %v6325_v47 = vld [vmem:[#allocation13 + $0x1a8] sm:$0xf0] }
 0x168   : > { %v1024_v49 = vpop.f32.mrf.mxu2  ;;  %v1037_v50 = vpop.f32.mrf.mxu3 }
 0x169   : > { %v1000_v51 = vpop.f32.mrf.mxu0  ;;  %v1013_v52 = vpop.f32.mrf.mxu1  ;;  %v1038_v35 = vadd.f32 %v1037_v50, %v1024_v49  ;;  %v7967_v49 = vld [vmem:[#allocation13 + $0x154] sm:$0xf0]  ;;  %v6347_v50 = vld [vmem:[#allocation13 + $0x1d0] sm:$0xf] }
 0x16a   : > { %v6284_v51 = vor.u32 %v7967_v49, %v6283_v48  ;;  %v7983_v52 = vld [vmem:[#allocation13 + $0x1d4] sm:$0xf0] }
 0x16c   : > { %2084 = vmatpush.bf16.msra.mxu0 %v6284_v51 }
 0x170   : > { %v1026_v55 = vpop.f32.mrf.mxu2  ;;  %v1039_v56 = vpop.f32.mrf.mxu3 }
 0x171   : > { %v1210_v57 = vpop.f32.mrf.mxu0  ;;  %v1223_v58 = vpop.f32.mrf.mxu1  ;;  %v6285_v55 = vld [vmem:[#allocation13 + $0x158] sm:$0xf0]  ;;  %v6348_v56 = vor.u32 %v7983_v52, %v6347_v50 }
 0x172   : > { %v1211_v59 = vadd.f32 %v1210_v57, %v1012_v54  ;;  %v7966_v54 = vld [vmem:[#allocation13 + $0x154] sm:$0xf] }
 0x173   : > { %v6288_v57 = vor.u32 %v7966_v54, %v6285_v55  ;;  %2097 = vmatpush.bf16.msra.mxu1 %v6348_v56  ;;  %v6315_v55 = vld [vmem:[#allocation13 + $0x190] sm:$0xf]  ;;  %v7975_v56 = vld [vmem:[#allocation13 + $0x194] sm:$0xf0] }
 0x174   : > { %v1224_v61 = vadd.f32 %v1223_v58, %v1211_v59  ;;  %v7982_v58 = vld [vmem:[#allocation13 + $0x1d4] sm:$0xf]  ;;  %v6349_v59 = vld [vmem:[#allocation13 + $0x1d8] sm:$0xf0] }
 0x175   : > { %2110 = vmatpush.bf16.msra.mxu2 %v6288_v57  ;;  %v7958_v57 = vld [vmem:[#allocation13 + $0x114] sm:$0xf] }
 0x176   : > { %v1258_v34 = vadd.f32 %v1254_v60, %v1224_v61  ;;  %v6352_v61 = vor.u32 %v7982_v58, %v6349_v59  ;;  %v6316_v58 = vor.u32 %v7975_v56, %v6315_v55  ;;  %v6253_v59 = vld [vmem:[#allocation13 + $0x118] sm:$0xf0]  ;;  %v7950_v56 = vld [vmem:[#allocation13 + $0xd4] sm:$0xf] }
 0x178   : > { %v8992_v62 = vmax.f32 %v1258_v34, 0.0  ;;  %v1236_v63 = vpop.f32.mrf.mxu2  ;;  %v1249_v0 = vpop.f32.mrf.mxu3  ;;  %v6275_v34 = vld [vmem:[#allocation13 + $0x140] sm:$0xf]  ;;  %2123 = vmatpush.bf16.msra.mxu3 %v6352_v61  ;;  %v7974_v61 = vld [vmem:[#allocation13 + $0x194] sm:$0xf] }
 0x179   : > { %v1237_v1 = vadd.f32 %v1236_v63, %v1038_v35  ;;  %v1212_v3 = vpop.f32.mrf.mxu0  ;;  %v1225_v5 = vpop.f32.mrf.mxu1  ;;  %v7965_v35 = vld [vmem:[#allocation13 + $0x144] sm:$0xf0]  ;;  %v6339_v63 = vld [vmem:[#allocation13 + $0x1c0] sm:$0xf] }
 0x17a   : > { %1782 = vst [vmem:[#allocation1] sm:$0xff] %v8992_v62  ;;  %v7964_v3 = vld [vmem:[#allocation13 + $0x144] sm:$0xf]  ;;  %v6277_v5 = vld [vmem:[#allocation13 + $0x148] sm:$0xf0] }
 0x17b   : > { %v1250_v6 = vadd.f32 %v1249_v0, %v1237_v1  ;;  %v6276_v0 = vor.u32 %v7965_v35, %v6275_v34  ;;  %v7981_v1 = vld [vmem:[#allocation13 + $0x1c4] sm:$0xf0]  ;;  %v6317_v34 = vld [vmem:[#allocation13 + $0x198] sm:$0xf0] }
 0x17d   : > { %v1259_v7 = vadd.f32 %v1255_v2, %v1250_v6  ;;  %2085 = vmatpush.bf16.msra.mxu0 %v6276_v0  ;;  %v6320_v0 = vor.u32 %v7974_v61, %v6317_v34  ;;  %v7933_v61 = vld [vmem:[#allocation13 + $0x44] sm:$0xf0]  ;;  %v6467_v34 = vld [vmem:[#allocation13 + $0xc0] sm:$0xf] }
 0x17f   : > { %v8998_v9 = vmax.f32 %v1259_v7, 0.0  ;;  %v6340_v7 = vor.u32 %v7981_v1, %v6339_v63  ;;  %v6256_v63 = vor.u32 %v7958_v57, %v6253_v59  ;;  %v6243_v1 = vld [vmem:[#allocation13 + $0x100] sm:$0xf]  ;;  %v6477_v57 = vld [vmem:[#allocation13 + $0xd8] sm:$0xf0] }
 0x180   : > { %v1238_v10 = vpop.f32.mrf.mxu2  ;;  %v1251_v11 = vpop.f32.mrf.mxu3  ;;  %v6403_v59 = vld [vmem:[#allocation13 + $0x40] sm:$0xf] }
 0x181   : > { %v1768_v13 = vrot.slane %v8998_v9, 7  ;;  %1783 = vst [vmem:[#allocation1 + $0x9] sm:$0xff] %v8998_v9  ;;  %v6280_v10 = vor.u32 %v7964_v3, %v6277_v5  ;;  %v7980_v11 = vld [vmem:[#allocation13 + $0x1c4] sm:$0xf]  ;;  %2098 = vmatpush.bf16.msra.mxu1 %v6340_v7  ;;  %v7957_v3 = vld [vmem:[#allocation13 + $0x104] sm:$0xf0] }
 0x182   : > { %v9004_v15 = vpop.f32.mrf.mxu0  ;;  %v9006_v4 = vpop.f32.mrf.mxu1  ;;  %v6307_v5 = vld [vmem:[#allocation13 + $0x180] sm:$0xf]  ;;  %v6244_v7 = vor.u32 %v7957_v3, %v6243_v1  ;;  %v7932_v1 = vld [vmem:[#allocation13 + $0x44] sm:$0xf]  ;;  %v6405_v3 = vld [vmem:[#allocation13 + $0x48] sm:$0xf0] }
 0x183   : > { %v1769_v14 = vsel %vm705_vm1, %v8992_v62, %v1768_v13  ;;  %v1521_v6 = vadd.f32 %v9006_v4, %v9004_v15  ;;  %v6341_v13 = vld [vmem:[#allocation13 + $0x1c8] sm:$0xf0]  ;;  %2111 = vmatpush.bf16.msra.mxu2 %v6280_v10  ;;  %v7973_v10 = vld [vmem:[#allocation13 + $0x184] sm:$0xf0] }
 0x184   : > { %1772 = vst.msk [vmem:[#allocation3 + $0x1] ss:$8 sm:$0x3] %vm8955_vm2, %v1769_v14 }
 0x187   : > { %2112 = vmatpush.bf16.msra.mxu2 %v6272_v27  ;;  %v6492_v27 = vor.u32 %v7955_v26, %v6491_v25  ;;  %v7929_v25 = vld [vmem:[#allocation13 + $0x24] sm:$0xf0] }
 0x188   : > { %v1785_v16 = vld [vmem:[#allocation1 + $0x1] ss:$9 sm:$0xff] }
 0x189   : > { %1788 = vst.msk [vmem:[#allocation3 + $0x3] ss:$8 sm:$0x3] %vm8955_vm2, %v1785_v16 }
 0x18a   : > { %v1509_v19 = vpop.f32.mrf.mxu0  ;;  %v1522_v20 = vpop.f32.mrf.mxu1 }
 0x18b   : > { %v9012_v17 = vpop.f32.mrf.mxu2  ;;  %v9014_v18 = vpop.f32.mrf.mxu3  ;;  %v6344_v19 = vor.u32 %v7980_v11, %v6341_v13  ;;  %2113 = vmatpush.bf16.msra.mxu2 %v6264_v46  ;;  %v7956_v11 = vld [vmem:[#allocation13 + $0x104] sm:$0xf]  ;;  %v6485_v46 = vld [vmem:[#allocation13 + $0xe8] sm:$0xf0] }
 0x18c   : > { %v1547_v37 = vadd.f32 %v9014_v18, %v9012_v17  ;;  %v6251_v17 = vld [vmem:[#allocation13 + $0x110] sm:$0xf]  ;;  %v7959_v18 = vld [vmem:[#allocation13 + $0x114] sm:$0xf0] }
 0x18d   : > { %2124 = vmatpush.bf16.msra.mxu3 %v6344_v19  ;;  %v6252_v54 = vor.u32 %v7959_v18, %v6251_v17  ;;  %v6245_v19 = vld [vmem:[#allocation13 + $0x108] sm:$0xf0]  ;;  %v7951_v17 = vld [vmem:[#allocation13 + $0xd4] sm:$0xf0] }
 0x18f   : > { %2114 = vmatpush.bf16.msra.mxu2 %v6256_v63  ;;  %v6404_v63 = vor.u32 %v7933_v61, %v6403_v59 }
 0x191   : > { %2125 = vmatpush.bf16.msra.mxu3 %v6336_v30  ;;  %v6493_v30 = vld [vmem:[#allocation13 + $0xf8] sm:$0xf0] }
 0x192   : > { %v6496_v32 = vor.u32 %v7954_v29, %v6493_v30  ;;  %v6389_v29 = vld [vmem:[#allocation13 + $0x28] sm:$0xf0] }
 0x193   : > { %v1535_v24 = vpop.f32.mrf.mxu2  ;;  %v1548_v12 = vpop.f32.mrf.mxu3 }
 0x194   : > { %v6268_v24 = vor.u32 %v7963_v22, %v6267_v21  ;;  %v7979_v12 = vld [vmem:[#allocation13 + $0x1b4] sm:$0xf0]  ;;  %v6248_v21 = vor.u32 %v7956_v11, %v6245_v19  ;;  %v6395_v11 = vld [vmem:[#allocation13 + $0x30] sm:$0xf] }
 0x195   : > { %v6332_v4 = vor.u32 %v7979_v12, %v6331_v23  ;;  %v6427_v23 = vld [vmem:[#allocation13 + $0x70] sm:$0xf]  ;;  %v7947_v19 = vld [vmem:[#allocation13 + $0xb4] sm:$0xf0] }
 0x196   : > { %2086 = vmatpush.bf16.msra.mxu0 %v6268_v24  ;;  %v7939_v24 = vld [vmem:[#allocation13 + $0x74] sm:$0xf0]  ;;  %2115 = vmatpush.bf16.msra.mxu2 %v6248_v21  ;;  %v7946_v21 = vld [vmem:[#allocation13 + $0xb4] sm:$0xf] }
 0x197   : > { %2099 = vmatpush.bf16.msra.mxu1 %v6332_v4  ;;  %v6428_v12 = vor.u32 %v7939_v24, %v6427_v23 }
 0x19a   : > { %2087 = vmatpush.bf16.msra.mxu0 %v6260_v38  ;;  %v7953_v38 = vld [vmem:[#allocation13 + $0xe4] sm:$0xf0] }
 0x19b   : > { %2100 = vmatpush.bf16.msra.mxu1 %v6324_v45 }
 0x19e   : > { %2088 = vmatpush.bf16.msra.mxu0 %v6252_v54  ;;  %v6413_v54 = vld [vmem:[#allocation13 + $0x58] sm:$0xf0] }
 0x19f   : > { %2101 = vmatpush.bf16.msra.mxu1 %v6316_v58  ;;  %v6480_v58 = vor.u32 %v7950_v56, %v6477_v57  ;;  %v7940_v56 = vld [vmem:[#allocation13 + $0x84] sm:$0xf]  ;;  %v6437_v57 = vld [vmem:[#allocation13 + $0x88] sm:$0xf0] }
 0x1a2   : > { %v1719_v14 = vpop.f32.mrf.mxu0  ;;  %v1732_v16 = vpop.f32.mrf.mxu1  ;;  %2089 = vmatpush.bf16.msra.mxu0 %v6244_v7  ;;  %v6408_v7 = vor.u32 %v7932_v1, %v6405_v3 }
 0x1a3   : > { %v1720_v20 = vadd.f32 %v1719_v14, %v1521_v6 }
 0x1a5   : > { %v1733_v15 = vadd.f32 %v1732_v16, %v1720_v20  ;;  %v6308_v16 = vor.u32 %v7973_v10, %v6307_v5  ;;  %v7948_v5 = vld [vmem:[#allocation13 + $0xc4] sm:$0xf]  ;;  %v6469_v10 = vld [vmem:[#allocation13 + $0xc8] sm:$0xf0] }
 0x1a6   : > { %2294 = vmatpush.bf16.msrb.mxu0 %v6428_v12  ;;  %v6387_v12 = vld [vmem:[#allocation13 + $0x20] sm:$0xf] }
 0x1a7   : > { %v1762_v31 = vadd.f32 %v1733_v15, %v1254_v60  ;;  %v7976_v60 = vld [vmem:[#allocation13 + $0x1a4] sm:$0xf]  ;;  %2102 = vmatpush.bf16.msra.mxu1 %v6308_v16  ;;  %v7938_v15 = vld [vmem:[#allocation13 + $0x74] sm:$0xf]  ;;  %v6459_v16 = vld [vmem:[#allocation13 + $0xb0] sm:$0xf]  ;;  %v6388_v30 = vor.u32 %v7929_v25, %v6387_v12 }
 0x1a8   : > { %v6328_v51 = vor.u32 %v7976_v60, %v6325_v47  ;;  %v6411_v60 = vld [vmem:[#allocation13 + $0x50] sm:$0xf]  ;;  %v7935_v47 = vld [vmem:[#allocation13 + $0x54] sm:$0xf0]  ;;  %v6460_v24 = vor.u32 %v7947_v19, %v6459_v16  ;;  %v6557_v16 = vld [vmem:[#allocation13 + $0x378] sm:$0xf0] }
 0x1a9   : > { %v9022_v42 = vmax.f32 %v1762_v31, 0.0  ;;  %v1745_v43 = vpop.f32.mrf.mxu2  ;;  %v1758_v44 = vpop.f32.mrf.mxu3  ;;  %v6432_v31 = vor.u32 %v7938_v15, %v6429_v28  ;;  %v7928_v28 = vld [vmem:[#allocation13 + $0x24] sm:$0xf]  ;;  %v8050_v19 = vld [vmem:[#allocation13 + $0x3f4] sm:$0xf] }
 0x1aa   : > { %v1746_v48 = vadd.f32 %v1745_v43, %v1547_v37  ;;  %v1721_v49 = vpop.f32.mrf.mxu0  ;;  %v1734_v50 = vpop.f32.mrf.mxu1  ;;  %2126 = vmatpush.bf16.msra.mxu3 %v6328_v51  ;;  %v6483_v37 = vld [vmem:[#allocation13 + $0xe0] sm:$0xf]  ;;  %v6421_v43 = vld [vmem:[#allocation13 + $0x68] sm:$0xf0]  ;;  %2295 = vmatpush.bf16.msrb.mxu0 %v6420_v39  ;;  %v6475_v51 = vld [vmem:[#allocation13 + $0xd0] sm:$0xf] }
 0x1ab   : > { %1790 = vst [vmem:[#allocation1] sm:$0xff] %v9022_v42  ;;  %2307 = vmatpush.bf16.msrb.mxu1 %v6492_v27  ;;  %2320 = vmatpush.bf16.msrb.mxu2 %v6432_v31  ;;  %v6484_v40 = vor.u32 %v7953_v38, %v6483_v37  ;;  %v6424_v45 = vor.u32 %v7936_v41, %v6421_v43  ;;  %v7945_v27 = vld [vmem:[#allocation13 + $0xa4] sm:$0xf0]  ;;  %v7944_v31 = vld [vmem:[#allocation13 + $0xa4] sm:$0xf] }
 0x1ac   : > { %v1759_v52 = vadd.f32 %v1758_v44, %v1746_v48  ;;  %v7952_v44 = vld [vmem:[#allocation13 + $0xe4] sm:$0xf]  ;;  %v6412_v50 = vor.u32 %v7935_v47, %v6411_v60  ;;  %v6476_v18 = vor.u32 %v7951_v17, %v6475_v51  ;;  %v7927_v37 = vld [vmem:[#allocation13 + $0x14] sm:$0xf0]  ;;  %v6392_v38 = vor.u32 %v7928_v28, %v6389_v29  ;;  %v7926_v43 = vld [vmem:[#allocation13 + $0x14] sm:$0xf] }
 0x1ad   : > { %v6488_v49 = vor.u32 %v7952_v44, %v6485_v46  ;;  %v6456_v39 = vor.u32 %v7944_v31, %v6453_v33  ;;  %v7943_v41 = vld [vmem:[#allocation13 + $0x94] sm:$0xf0]  ;;  %v6381_v44 = vld [vmem:[#allocation13 + $0x18] sm:$0xf0]  ;;  %v6380_v60 = vor.u32 %v7927_v37, %v6379_v36  ;;  %v6371_v47 = vld [vmem:[#allocation13] sm:$0xf] }
 0x1ae   : > { %v1763_v35 = vadd.f32 %v1759_v52, %v1255_v2  ;;  %2127 = vmatpush.bf16.msra.mxu3 %v6320_v0  ;;  %v6309_v2 = vld [vmem:[#allocation13 + $0x188] sm:$0xf0]  ;;  %v7934_v52 = vld [vmem:[#allocation13 + $0x54] sm:$0xf]  ;;  %2296 = vmatpush.bf16.msrb.mxu0 %v6412_v50  ;;  %v6445_v46 = vld [vmem:[#allocation13 + $0x98] sm:$0xf0] }
 0x1af   : > { %v6312_v22 = vor.u32 %v7972_v53, %v6309_v2  ;;  %2308 = vmatpush.bf16.msrb.mxu1 %v6484_v40  ;;  %2321 = vmatpush.bf16.msrb.mxu2 %v6424_v45  ;;  %v6416_v55 = vor.u32 %v7934_v52, %v6413_v54  ;;  %v7930_v53 = vld [vmem:[#allocation13 + $0x34] sm:$0xf]  ;;  %v6443_v40 = vld [vmem:[#allocation13 + $0x90] sm:$0xf]  ;;  %v6435_v50 = vld [vmem:[#allocation13 + $0x80] sm:$0xf] }
 0x1b0   : > { %v9027_v6 = vmax.f32 %v1763_v35, 0.0  ;;  %v7949_v35 = vld [vmem:[#allocation13 + $0xc4] sm:$0xf0]  ;;  %v7942_v45 = vld [vmem:[#allocation13 + $0x94] sm:$0xf] }
 0x1b1   : > { %v1747_v13 = vpop.f32.mrf.mxu2  ;;  %v1760_v14 = vpop.f32.mrf.mxu3  ;;  %v6468_v0 = vor.u32 %v7949_v35, %v6467_v34  ;;  %v7941_v51 = vld [vmem:[#allocation13 + $0x84] sm:$0xf0]  ;;  %v6448_v52 = vor.u32 %v7942_v45, %v6445_v46  ;;  %v7924_v54 = vld [vmem:[#allocation13 + $0x4] sm:$0xf]  ;;  %v6440_v34 = vor.u32 %v7940_v56, %v6437_v57  ;;  %v6611_v28 = vld [vmem:[#allocation13 + $0x3e0] sm:$0xf] }
 0x1b2   : > { %v1776_v20 = vrot.slane %v9027_v6, 7  ;;  %1791 = vst [vmem:[#allocation1 + $0x9] sm:$0xff] %v9027_v6  ;;  %2128 = vmatpush.bf16.msra.mxu3 %v6312_v22  ;;  %v7931_v13 = vld [vmem:[#allocation13 + $0x34] sm:$0xf0]  ;;  %v6472_v14 = vor.u32 %v7948_v5, %v6469_v10  ;;  %2297 = vmatpush.bf16.msrb.mxu0 %v6404_v63  ;;  %v6461_v22 = vld [vmem:[#allocation13 + $0xb8] sm:$0xf0]  ;;  %v6436_v59 = vor.u32 %v7941_v51, %v6435_v50 }
 0x1b3   : > { %2309 = vmatpush.bf16.msrb.mxu1 %v6476_v18  ;;  %2322 = vmatpush.bf16.msrb.mxu2 %v6416_v55  ;;  %v6396_v2 = vor.u32 %v7931_v13, %v6395_v11  ;;  %v6464_v15 = vor.u32 %v7946_v21, %v6461_v22  ;;  %v6384_v18 = vor.u32 %v7926_v43, %v6381_v44  ;;  %v6373_v55 = vld [vmem:[#allocation13 + $0x8] sm:$0xf0]  ;;  %v8035_v10 = vld [vmem:[#allocation13 + $0x374] sm:$0xf0]  ;;  %v6621_v22 = vld [vmem:[#allocation13 + $0x3f8] sm:$0xf0] }
 0x1b4   : > { %v1777_v4 = vsel %vm705_vm1, %v9022_v42, %v1776_v20  ;;  %v6397_v20 = vld [vmem:[#allocation13 + $0x38] sm:$0xf0]  ;;  %v6376_v61 = vor.u32 %v7924_v54, %v6373_v55  ;;  %v8049_v29 = vld [vmem:[#allocation13 + $0x3e4] sm:$0xf0]  ;;  %v6549_v31 = vld [vmem:[#allocation13 + $0x368] sm:$0xf0] }
 0x1b5   : > { %1780 = vst.msk [vmem:[#allocation3 + $0x2] ss:$8 sm:$0x3] %vm8955_vm2, %v1777_v4  ;;  %v6400_v26 = vor.u32 %v7930_v53, %v6397_v20  ;;  %v6451_v4 = vld [vmem:[#allocation13 + $0xa0] sm:$0xf]  ;;  %v6612_v37 = vor.u32 %v8049_v29, %v6611_v28 }
 0x1b6   : > { %2333 = vmatpush.bf16.msrb.mxu3 %v6496_v32  ;;  %2298 = vmatpush.bf16.msrb.mxu0 %v6396_v2  ;;  %v6452_v32 = vor.u32 %v7945_v27, %v6451_v4  ;;  %v6624_v27 = vor.u32 %v8050_v19, %v6621_v22  ;;  %v6613_v33 = vld [vmem:[#allocation13 + $0x3e8] sm:$0xf0]  ;;  %v6603_v43 = vld [vmem:[#allocation13 + $0x3d0] sm:$0xf]  ;;  %v8047_v44 = vld [vmem:[#allocation13 + $0x3d4] sm:$0xf0] }
 0x1b7   : > { %2310 = vmatpush.bf16.msrb.mxu1 %v6468_v0  ;;  %2323 = vmatpush.bf16.msrb.mxu2 %v6408_v7  ;;  %v6555_v7 = vld [vmem:[#allocation13 + $0x370] sm:$0xf]  ;;  %v8030_v45 = vld [vmem:[#allocation13 + $0x354] sm:$0xf]  ;;  %v6541_v46 = vld [vmem:[#allocation13 + $0x358] sm:$0xf0] }
 0x1b8   : > { %v6556_v12 = vor.u32 %v8035_v10, %v6555_v7  ;;  %v6531_v50 = vld [vmem:[#allocation13 + $0x340] sm:$0xf]  ;;  %v8029_v51 = vld [vmem:[#allocation13 + $0x344] sm:$0xf0]  ;;  %v8028_v55 = vld [vmem:[#allocation13 + $0x344] sm:$0xf] }
 0x1b9   : > { %v1793_v48 = vld [vmem:[#allocation1 + $0x1] ss:$9 sm:$0xff]  ;;  %v8044_v57 = vld [vmem:[#allocation13 + $0x3c4] sm:$0xf] }
 0x1ba   : > { %1798 = vst [vmem:[#allocation1] sm:$0xff] %v8992_v62  ;;  %2334 = vmatpush.bf16.msrb.mxu3 %v6488_v49  ;;  %2299 = vmatpush.bf16.msrb.mxu0 %v6388_v30  ;;  %v7925_v49 = vld [vmem:[#allocation13 + $0x4] sm:$0xf0]  ;;  %v8032_v30 = vld [vmem:[#allocation13 + $0x364] sm:$0xf] }
 0x1bb   : > { %1799 = vst [vmem:[#allocation1 + $0x9] sm:$0xff] %v8998_v9  ;;  %2311 = vmatpush.bf16.msrb.mxu1 %v6460_v24  ;;  %2324 = vmatpush.bf16.msrb.mxu2 %v6400_v26  ;;  %v6547_v26 = vld [vmem:[#allocation13 + $0x360] sm:$0xf]  ;;  %v8045_v54 = vld [vmem:[#allocation13 + $0x3c4] sm:$0xf0] }
 0x1bc   : > { %1796 = vst.msk [vmem:[#allocation3 + $0x4] ss:$8 sm:$0x3] %vm8955_vm2, %v1793_v48  ;;  %v6444_v48 = vor.u32 %v7943_v41, %v6443_v40  ;;  %v6552_v40 = vor.u32 %v8032_v30, %v6549_v31  ;;  %v6533_v56 = vld [vmem:[#allocation13 + $0x348] sm:$0xf0] }
 0x1bd   : > { %v6525_v7 = vld [vmem:[#allocation13 + $0x338] sm:$0xf0]  ;;  %v8042_v10 = vld [vmem:[#allocation13 + $0x3b4] sm:$0xf]  ;;  %v8025_v19 = vld [vmem:[#allocation13 + $0x324] sm:$0xf0] }
 0x1be   : > { %2335 = vmatpush.bf16.msrb.mxu3 %v6480_v58  ;;  %2300 = vmatpush.bf16.msrb.mxu0 %v6380_v60  ;;  %v6372_v58 = vor.u32 %v7925_v49, %v6371_v47  ;;  %v8046_v60 = vld [vmem:[#allocation13 + $0x3d4] sm:$0xf]  ;;  %v6605_v47 = vld [vmem:[#allocation13 + $0x3d8] sm:$0xf0]  ;;  %v6604_v49 = vor.u32 %v8047_v44, %v6603_v43  ;;  %v8024_v22 = vld [vmem:[#allocation13 + $0x324] sm:$0xf] }
 0x1bf   : > { %2312 = vmatpush.bf16.msrb.mxu1 %v6452_v32  ;;  %2325 = vmatpush.bf16.msrb.mxu2 %v6392_v38  ;;  %v8048_v32 = vld [vmem:[#allocation13 + $0x3e4] sm:$0xf]  ;;  %v6539_v38 = vld [vmem:[#allocation13 + $0x350] sm:$0xf]  ;;  %v8023_v28 = vld [vmem:[#allocation13 + $0x314] sm:$0xf0] }
 0x1c0   : > { %v6616_v41 = vor.u32 %v8048_v32, %v6613_v33  ;;  %v6571_v31 = vld [vmem:[#allocation13 + $0x390] sm:$0xf]  ;;  %v8039_v32 = vld [vmem:[#allocation13 + $0x394] sm:$0xf0]  ;;  %v8022_v33 = vld [vmem:[#allocation13 + $0x314] sm:$0xf] }
 0x1c1   : > { %v6572_v44 = vor.u32 %v8039_v32, %v6571_v31  ;;  %v6733_v31 = vld [vmem:[#allocation13 + $0x2d8] sm:$0xf0] }
 0x1c2   : > { %v1801_v23 = vld [vmem:[#allocation1 + $0x2] ss:$9 sm:$0xff]  ;;  %2336 = vmatpush.bf16.msrb.mxu3 %v6472_v14  ;;  %2301 = vmatpush.bf16.msrb.mxu0 %v6372_v58 }
 0x1c3   : > { %1806 = vst [vmem:[#allocation1] sm:$0xff] %v9022_v42  ;;  %2313 = vmatpush.bf16.msrb.mxu1 %v6444_v48  ;;  %2326 = vmatpush.bf16.msrb.mxu2 %v6384_v18  ;;  %v8051_v14 = vld [vmem:[#allocation13 + $0x3f4] sm:$0xf0]  ;;  %v6608_v18 = vor.u32 %v8046_v60, %v6605_v47  ;;  %v6597_v58 = vld [vmem:[#allocation13 + $0x3c8] sm:$0xf0] }
 0x1c4   : > { %1807 = vst [vmem:[#allocation1 + $0x9] sm:$0xff] %v9027_v6  ;;  %v6501_v60 = vld [vmem:[#allocation13 + $0x308] sm:$0xf0] }
 0x1c5   : > { %1804 = vst.msk [vmem:[#allocation3 + $0x5] ss:$8 sm:$0x3] %vm8955_vm2, %v1801_v23 }
 0x1c6   : > { %2337 = vmatpush.bf16.msrb.mxu3 %v6464_v15  ;;  %v8033_v15 = vld [vmem:[#allocation13 + $0x364] sm:$0xf0] }
 0x1c7   : > { %2314 = vmatpush.bf16.msrb.mxu1 %v6436_v59  ;;  %2327 = vmatpush.bf16.msrb.mxu2 %v6376_v61  ;;  %v6548_v36 = vor.u32 %v8033_v15, %v6547_v26  ;;  %v6532_v61 = vor.u32 %v8029_v51, %v6531_v50  ;;  %v6581_v26 = vld [vmem:[#allocation13 + $0x3a8] sm:$0xf0]  ;;  %v6683_v51 = vld [vmem:[#allocation13 + $0x270] sm:$0xf] }
 0x1c8   : > { %v6565_v50 = vld [vmem:[#allocation13 + $0x388] sm:$0xf0] }
 0x1ca   : > { %2338 = vmatpush.bf16.msrb.mxu3 %v6456_v39  ;;  %v8031_v39 = vld [vmem:[#allocation13 + $0x354] sm:$0xf0] }
 0x1cb   : > { %v1809_v17 = vld [vmem:[#allocation1 + $0x2] ss:$9 sm:$0xff]  ;;  %v6540_v48 = vor.u32 %v8031_v39, %v6539_v38 }
 0x1cc   : > { %1814 = vst [vmem:[#allocation1] sm:$0xff] %v8992_v62  ;;  %v6573_v38 = vld [vmem:[#allocation13 + $0x398] sm:$0xf0]  ;;  %v6499_v39 = vld [vmem:[#allocation13 + $0x300] sm:$0xf] }
 0x1cd   : > { %1815 = vst [vmem:[#allocation1 + $0x9] sm:$0xff] %v8998_v9 }
 0x1ce   : > { %1812 = vst.msk [vmem:[#allocation3 + $0x6] ss:$8 sm:$0x3] %vm8955_vm2, %v1809_v17  ;;  %2339 = vmatpush.bf16.msrb.mxu3 %v6448_v52  ;;  %v6544_v17 = vor.u32 %v8030_v45, %v6541_v46  ;;  %v6595_v52 = vld [vmem:[#allocation13 + $0x3c0] sm:$0xf] }
 0x1cf   : > { %v8037_v45 = vld [vmem:[#allocation13 + $0x384] sm:$0xf0]  ;;  %v8020_v46 = vld [vmem:[#allocation13 + $0x304] sm:$0xf] }
 0x1d2   : > { %2340 = vmatpush.bf16.msrb.mxu3 %v6440_v34  ;;  %v6596_v34 = vor.u32 %v8045_v54, %v6595_v52  ;;  %v8019_v52 = vld [vmem:[#allocation13 + $0x2f4] sm:$0xf0]  ;;  %v8002_v54 = vld [vmem:[#allocation13 + $0x274] sm:$0xf] }
 0x1d4   : > { %v1817_v62 = vld [vmem:[#allocation1 + $0x3] ss:$9 sm:$0xff] }
 0x1d5   : > { %1822 = vst [vmem:[#allocation1] sm:$0xff] %v9022_v42  ;;  %v6619_v42 = vld [vmem:[#allocation13 + $0x3f0] sm:$0xf] }
 0x1d6   : > { %1823 = vst [vmem:[#allocation1 + $0x9] sm:$0xff] %v9027_v6  ;;  %v8034_v6 = vld [vmem:[#allocation13 + $0x374] sm:$0xf]  ;;  %v6620_v25 = vor.u32 %v8051_v14, %v6619_v42 }
 0x1d7   : > { %1820 = vst.msk [vmem:[#allocation3 + $0x7] ss:$8 sm:$0x3] %vm8955_vm2, %v1817_v62  ;;  %v6560_v4 = vor.u32 %v8034_v6, %v6557_v16  ;;  %v6515_v16 = vld [vmem:[#allocation13 + $0x320] sm:$0xf] }
 0x1d8   : > { %v6516_v15 = vor.u32 %v8025_v19, %v6515_v16  ;;  %v6677_v16 = vld [vmem:[#allocation13 + $0x268] sm:$0xf0]  ;;  %v8016_v19 = vld [vmem:[#allocation13 + $0x2e4] sm:$0xf] }
 0x1dd   : > { %v1825_v9 = vld [vmem:[#allocation1 + $0x3] ss:$9 sm:$0xff] }
 0x1de   : > { %1828 = vst.msk [vmem:[#allocation3 + $0x10] ss:$8 sm:$0x3] %vm8955_vm2, %v1825_v9  ;;  %v1835_v35 = vld [vmem:[#allocation3] sm:$0xfe]  ;;  %v1832_v62 = vld [vmem:[#allocation3 + $0x8] sm:$0xff] }
 0x1df   : > { %v1836_v0 = vld [vmem:[#allocation3 + $0x8] sm:$0xfe]  ;;  %v1831_v59 = vld [vmem:[#allocation3] sm:$0xff]  ;;  %v6523_v9 = vld [vmem:[#allocation13 + $0x330] sm:$0xf]  ;;  %v1834_v42 = vpack.c.bf16 %v1832_v62, %v1832_v62  ;;  %v6504_v62 = vor.u32 %v8020_v46, %v6501_v60 }
 0x1e0   : > { %v6725_v46 = vld [vmem:[#allocation13 + $0x2c8] sm:$0xf0] }
 0x1e5   : > { %v1837_v63 = vld [vmem:[#allocation3 + $0x10] sm:$0x1]  ;;  %v1838_v1 = vld [vmem:[#allocation3 + $0x18] sm:$0x1] }
 0x1e6   : > { %v1839_v3 = vpack.c.bf16 %v1837_v63, %v1835_v35  ;;  %v1840_v5 = vpack.c.bf16 %v1838_v1, %v1836_v0  ;;  %v8027_v35 = vld [vmem:[#allocation13 + $0x334] sm:$0xf0]  ;;  %v6536_v63 = vor.u32 %v8028_v55, %v6533_v56  ;;  %v6600_v0 = vor.u32 %v8044_v57, %v6597_v58  ;;  %v6587_v1 = vld [vmem:[#allocation13 + $0x3b0] sm:$0xf]  ;;  %v2357_v55 = vld [vmem:[#allocation3 + $0x10] sm:$0x3] }
 0x1e7   : > { %v6524_v14 = vor.u32 %v8027_v35, %v6523_v9  ;;  %v2358_v56 = vld [vmem:[#allocation3 + $0x18] sm:$0x3]  ;;  %v2355_v35 = vld [vmem:[#allocation3] sm:$0xfc] }
 0x1e8   : > { %v1909_v11 = vshll.u32 %v1839_v3, 16  ;;  %v1916_v13 = vshll.u32 %v1840_v5, 16  ;;  %v1907_v53 = vshrl.u32 %v1839_v3, 16  ;;  %v1914_v20 = vshrl.u32 %v1840_v5, 16  ;;  %v8043_v3 = vld [vmem:[#allocation13 + $0x3b4] sm:$0xf0] }
 0x1e9   : > { %v8026_v5 = vld [vmem:[#allocation13 + $0x334] sm:$0xf]  ;;  %v6588_v6 = vor.u32 %v8043_v3, %v6587_v1  ;;  %v2359_v3 = vpack.c.bf16 %v2357_v55, %v2355_v35  ;;  %v8009_v35 = vld [vmem:[#allocation13 + $0x2a4] sm:$0xf0] }
 0x1ea   : > { %v1911_v2 = vrot.slane %v1909_v11, 1  ;;  %v1918_v21 = vrot.slane %v1916_v13, 1  ;;  %v6589_v11 = vld [vmem:[#allocation13 + $0x3b8] sm:$0xf0]  ;;  %v1833_v13 = vpack.c.bf16 %v1831_v59, %v1831_v59  ;;  %v8010_v55 = vld [vmem:[#allocation13 + $0x2b4] sm:$0xf] }
 0x1eb   : > { %v6685_v59 = vld [vmem:[#allocation13 + $0x278] sm:$0xf0] }
 0x1ec   : > { %v9053_v23 = vor.u32 %v1911_v2, %v1907_v53  ;;  %v9055_v24 = vor.u32 %v1918_v21, %v1914_v20  ;;  %v6528_v53 = vor.u32 %v8026_v5, %v6525_v7  ;;  %v6592_v2 = vor.u32 %v8042_v10, %v6589_v11  ;;  %v6579_v20 = vld [vmem:[#allocation13 + $0x3a0] sm:$0xf]  ;;  %v8041_v21 = vld [vmem:[#allocation13 + $0x3a4] sm:$0xf0] }
 0x1ed   : > { %v6675_v7 = vld [vmem:[#allocation13 + $0x260] sm:$0xf]  ;;  %v8001_v10 = vld [vmem:[#allocation13 + $0x264] sm:$0xf0]  ;;  %v6688_v11 = vor.u32 %v8002_v54, %v6685_v59  ;;  %v6653_v54 = vld [vmem:[#allocation13 + $0x238] sm:$0xf0] }
 0x1ee   : > { %2090 = vmatmul.bf16.vlgmr.msra.gmra.mxu0 %v9053_v23  ;;  %2103 = vmatmul.bf16.vlgmr.msra.gmra.mxu1 %v9055_v24  ;;  %v6643_v59 = vld [vmem:[#allocation13 + $0x220] sm:$0xf] }
 0x1ef   : > { %2116 = vmatmul.bf16.vlgmr.msra.gmra.mxu2 %v9053_v23  ;;  %2129 = vmatmul.bf16.vlgmr.msra.gmra.mxu3 %v9055_v24 }
 0x1f0   : > { %2593 = vmatpush.bf16.msra.mxu0 %v6556_v12  ;;  %2606 = vmatpush.bf16.msra.mxu1 %v6620_v25  ;;  %v6517_v12 = vld [vmem:[#allocation13 + $0x328] sm:$0xf0]  ;;  %v8040_v25 = vld [vmem:[#allocation13 + $0x3a4] sm:$0xf] }
 0x1f1   : > { %2619 = vmatpush.bf16.msra.mxu2 %v6560_v4  ;;  %2632 = vmatpush.bf16.msra.mxu3 %v6624_v27  ;;  %v6580_v4 = vor.u32 %v8041_v21, %v6579_v20  ;;  %v6507_v27 = vld [vmem:[#allocation13 + $0x310] sm:$0xf]  ;;  %v6520_v29 = vor.u32 %v8024_v22, %v6517_v12  ;;  %v6584_v30 = vor.u32 %v8040_v25, %v6581_v26  ;;  %v7999_v25 = vld [vmem:[#allocation13 + $0x254] sm:$0xf0] }
 0x1f2   : > { %v6508_v43 = vor.u32 %v8023_v28, %v6507_v27  ;;  %v6676_v21 = vor.u32 %v8001_v10, %v6675_v7  ;;  %v6667_v12 = vld [vmem:[#allocation13 + $0x250] sm:$0xf]  ;;  %v8015_v27 = vld [vmem:[#allocation13 + $0x2d4] sm:$0xf0]  ;;  %v7998_v28 = vld [vmem:[#allocation13 + $0x254] sm:$0xf] }
 0x1f3   : > { %v6668_v32 = vor.u32 %v7999_v25, %v6667_v12  ;;  %v6635_v10 = vld [vmem:[#allocation13 + $0x210] sm:$0xf]  ;;  %v7989_v12 = vld [vmem:[#allocation13 + $0x204] sm:$0xf0] }
 0x1f4   : > { %2594 = vmatpush.bf16.msra.mxu0 %v6548_v36  ;;  %2607 = vmatpush.bf16.msra.mxu1 %v6612_v37  ;;  %v6509_v36 = vld [vmem:[#allocation13 + $0x318] sm:$0xf0]  ;;  %v8038_v37 = vld [vmem:[#allocation13 + $0x394] sm:$0xf] }
 0x1f5   : > { %2620 = vmatpush.bf16.msra.mxu2 %v6552_v40  ;;  %2633 = vmatpush.bf16.msra.mxu3 %v6616_v41  ;;  %v8021_v40 = vld [vmem:[#allocation13 + $0x304] sm:$0xf0]  ;;  %v6563_v41 = vld [vmem:[#allocation13 + $0x380] sm:$0xf]  ;;  %v6512_v47 = vor.u32 %v8022_v33, %v6509_v36 }
 0x1f6   : > { %v6500_v57 = vor.u32 %v8021_v40, %v6499_v39  ;;  %v6564_v58 = vor.u32 %v8037_v45, %v6563_v41  ;;  %v6659_v36 = vld [vmem:[#allocation13 + $0x240] sm:$0xf]  ;;  %v8013_v41 = vld [vmem:[#allocation13 + $0x2c4] sm:$0xf0]  ;;  %v8012_v45 = vld [vmem:[#allocation13 + $0x2c4] sm:$0xf] }
 0x1f7   : > { %v6723_v40 = vld [vmem:[#allocation13 + $0x2c0] sm:$0xf] }
 0x1f8   : > { %2595 = vmatpush.bf16.msra.mxu0 %v6540_v48  ;;  %2608 = vmatpush.bf16.msra.mxu1 %v6604_v49  ;;  %v6576_v48 = vor.u32 %v8038_v37, %v6573_v38  ;;  %v8036_v49 = vld [vmem:[#allocation13 + $0x384] sm:$0xf]  ;;  %v7997_v37 = vld [vmem:[#allocation13 + $0x244] sm:$0xf0] }
 0x1f9   : > { %2621 = vmatpush.bf16.msra.mxu2 %v6544_v17  ;;  %2634 = vmatpush.bf16.msra.mxu3 %v6608_v18  ;;  %v8003_v17 = vld [vmem:[#allocation13 + $0x274] sm:$0xf0]  ;;  %v6747_v18 = vld [vmem:[#allocation13 + $0x2f0] sm:$0xf]  ;;  %v6568_v9 = vor.u32 %v8036_v49, %v6565_v50  ;;  %v6660_v60 = vor.u32 %v7997_v37, %v6659_v36 }
 0x1fa   : > { %v6748_v1 = vor.u32 %v8019_v52, %v6747_v18  ;;  %v7995_v49 = vld [vmem:[#allocation13 + $0x234] sm:$0xf0]  ;;  %v7994_v52 = vld [vmem:[#allocation13 + $0x234] sm:$0xf] }
 0x1fb   : > { %v8011_v18 = vld [vmem:[#allocation13 + $0x2b4] sm:$0xf0] }
 0x1fc   : > { %2596 = vmatpush.bf16.msra.mxu0 %v6532_v61  ;;  %2609 = vmatpush.bf16.msra.mxu1 %v6596_v34  ;;  %v8018_v61 = vld [vmem:[#allocation13 + $0x2f4] sm:$0xf]  ;;  %v6749_v34 = vld [vmem:[#allocation13 + $0x2f8] sm:$0xf0] }
 0x1fd   : > { %2622 = vmatpush.bf16.msra.mxu2 %v6536_v63  ;;  %2635 = vmatpush.bf16.msra.mxu3 %v6600_v0  ;;  %v2356_v63 = vld [vmem:[#allocation3 + $0x8] sm:$0xfc]  ;;  %v6684_v0 = vor.u32 %v8003_v17, %v6683_v51  ;;  %v6728_v51 = vor.u32 %v8012_v45, %v6725_v46  ;;  %v6715_v17 = vld [vmem:[#allocation13 + $0x2b0] sm:$0xf] }
 0x1fe   : > { %2302 = vmatmul.bf16.vlgmr.msrb.gmra.mxu0 %v1833_v13  ;;  %2315 = vmatmul.bf16.vlgmr.msrb.gmra.mxu1 %v1834_v42  ;;  %v2360_v5 = vpack.c.bf16 %v2358_v56, %v2356_v63  ;;  %v6717_v56 = vld [vmem:[#allocation13 + $0x2b8] sm:$0xf0]  ;;  %v7992_v63 = vld [vmem:[#allocation13 + $0x224] sm:$0xf] }
 0x1ff   : > { %2328 = vmatmul.bf16.vlgmr.msrb.gmra.mxu2 %v1833_v13  ;;  %2341 = vmatmul.bf16.vlgmr.msrb.gmra.mxu3 %v1834_v42  ;;  %v6752_v13 = vor.u32 %v8018_v61, %v6749_v34  ;;  %v6739_v42 = vld [vmem:[#allocation13 + $0x2e0] sm:$0xf]  ;;  %v7993_v61 = vld [vmem:[#allocation13 + $0x224] sm:$0xf0]  ;;  %v6656_v34 = vor.u32 %v7994_v52, %v6653_v54 }
 0x200   : > { %2597 = vmatpush.bf16.msra.mxu0 %v6524_v14  ;;  %2610 = vmatpush.bf16.msra.mxu1 %v6588_v6  ;;  %v8017_v14 = vld [vmem:[#allocation13 + $0x2e4] sm:$0xf0]  ;;  %v8000_v6 = vld [vmem:[#allocation13 + $0x264] sm:$0xf]  ;;  %v2430_v20 = vrot.slane %v2360_v5, 1  ;;  %v6644_v5 = vor.u32 %v7993_v61, %v6643_v59 }
 0x201   : > { %2623 = vmatpush.bf16.msra.mxu2 %v6528_v53  ;;  %2636 = vmatpush.bf16.msra.mxu3 %v6592_v2  ;;  %v6741_v53 = vld [vmem:[#allocation13 + $0x2e8] sm:$0xf0]  ;;  %v2429_v2 = vrot.slane %v2359_v3, 1  ;;  %v6740_v22 = vor.u32 %v8017_v14, %v6739_v42  ;;  %v6680_v26 = vor.u32 %v8000_v6, %v6677_v16  ;;  %v6699_v14 = vld [vmem:[#allocation13 + $0x290] sm:$0xf] }
 0x202   : > { %v6709_v3 = vld [vmem:[#allocation13 + $0x2a8] sm:$0xf0]  ;;  %v8007_v6 = vld [vmem:[#allocation13 + $0x294] sm:$0xf0]  ;;  %v7990_v16 = vld [vmem:[#allocation13 + $0x214] sm:$0xf] }
 0x204   : > { %2598 = vmatpush.bf16.msra.mxu0 %v6516_v15  ;;  %2611 = vmatpush.bf16.msra.mxu1 %v6580_v4  ;;  %v6744_v15 = vor.u32 %v8016_v19, %v6741_v53  ;;  %v6731_v4 = vld [vmem:[#allocation13 + $0x2d0] sm:$0xf]  ;;  %v6637_v19 = vld [vmem:[#allocation13 + $0x218] sm:$0xf0]  ;;  %v8006_v53 = vld [vmem:[#allocation13 + $0x294] sm:$0xf] }
 0x205   : > { %2624 = vmatpush.bf16.msra.mxu2 %v6520_v29  ;;  %2637 = vmatpush.bf16.msra.mxu3 %v6584_v30  ;;  %v6669_v29 = vld [vmem:[#allocation13 + $0x258] sm:$0xf0]  ;;  %v8014_v30 = vld [vmem:[#allocation13 + $0x2d4] sm:$0xf]  ;;  %v6732_v33 = vor.u32 %v8015_v27, %v6731_v4  ;;  %v6640_v25 = vor.u32 %v7990_v16, %v6637_v19  ;;  %v8005_v4 = vld [vmem:[#allocation13 + $0x284] sm:$0xf0] }
 0x206   : > { %v6672_v38 = vor.u32 %v7998_v28, %v6669_v29  ;;  %v6736_v39 = vor.u32 %v8014_v30, %v6733_v31  ;;  %v7988_v27 = vld [vmem:[#allocation13 + $0x204] sm:$0xf]  ;;  %v6629_v28 = vld [vmem:[#allocation13 + $0x208] sm:$0xf0] }
 0x207   : > { %v8004_v29 = vld [vmem:[#allocation13 + $0x284] sm:$0xf]  ;;  %v6693_v30 = vld [vmem:[#allocation13 + $0x288] sm:$0xf0] }
 0x208   : > { %2599 = vmatpush.bf16.msra.mxu0 %v6508_v43  ;;  %2612 = vmatpush.bf16.msra.mxu1 %v6572_v44  ;;  %v7996_v43 = vld [vmem:[#allocation13 + $0x244] sm:$0xf]  ;;  %v6661_v44 = vld [vmem:[#allocation13 + $0x248] sm:$0xf0]  ;;  %v6696_v36 = vor.u32 %v8004_v29, %v6693_v30 }
 0x209   : > { %2625 = vmatpush.bf16.msra.mxu2 %v6512_v47  ;;  %2638 = vmatpush.bf16.msra.mxu3 %v6576_v48  ;;  %v6724_v47 = vor.u32 %v8013_v41, %v6723_v40  ;;  %v6651_v48 = vld [vmem:[#allocation13 + $0x230] sm:$0xf]  ;;  %v6664_v50 = vor.u32 %v7996_v43, %v6661_v44  ;;  %v1830_v44 = vld [vmem:[#allocation14] sm:$0x3] }
 0x20c   : > { %2600 = vmatpush.bf16.msra.mxu0 %v6500_v57  ;;  %2613 = vmatpush.bf16.msra.mxu1 %v6564_v58  ;;  %v6652_v57 = vor.u32 %v7995_v49, %v6651_v48  ;;  %v6716_v58 = vor.u32 %v8011_v18, %v6715_v17 }
 0x20d   : > { %2626 = vmatpush.bf16.msra.mxu2 %v6504_v62  ;;  %2639 = vmatpush.bf16.msra.mxu3 %v6568_v9  ;;  %v6720_v62 = vor.u32 %v8010_v55, %v6717_v56  ;;  %v6707_v9 = vld [vmem:[#allocation13 + $0x2a0] sm:$0xf]  ;;  %v2348_v55 = vperm.slane %v1830_v44, 1 }
 0x20e   : > { %v6708_v7 = vor.u32 %v8009_v35, %v6707_v9 }
 0x20f   : > { %2601 = vmatmul.bf16.vlgmr.msra.gmra.mxu0 %v2429_v2  ;;  %2614 = vmatmul.bf16.vlgmr.msra.gmra.mxu1 %v2430_v20 }
 0x210   : > { %2805 = vmatpush.bf16.msrb.mxu0 %v6684_v0  ;;  %2818 = vmatpush.bf16.msrb.mxu1 %v6748_v1  ;;  %v6645_v0 = vld [vmem:[#allocation13 + $0x228] sm:$0xf0]  ;;  %v8008_v1 = vld [vmem:[#allocation13 + $0x2a4] sm:$0xf] }
 0x211   : > { %2831 = vmatpush.bf16.msrb.mxu2 %v6688_v11  ;;  %2844 = vmatpush.bf16.msrb.mxu3 %v6752_v13  ;;  %v7991_v11 = vld [vmem:[#allocation13 + $0x214] sm:$0xf0]  ;;  %v6648_v13 = vor.u32 %v7992_v63, %v6645_v0  ;;  %v6712_v42 = vor.u32 %v8008_v1, %v6709_v3 }
 0x212   : > { %2627 = vmatmul.bf16.vlgmr.msra.gmra.mxu2 %v2429_v2  ;;  %2640 = vmatmul.bf16.vlgmr.msra.gmra.mxu3 %v2430_v20  ;;  %v6701_v2 = vld [vmem:[#allocation13 + $0x298] sm:$0xf0]  ;;  %v6636_v20 = vor.u32 %v7991_v11, %v6635_v10 }
 0x214   : > { %2806 = vmatpush.bf16.msrb.mxu0 %v6676_v21  ;;  %2819 = vmatpush.bf16.msrb.mxu1 %v6740_v22  ;;  %v6700_v21 = vor.u32 %v8007_v6, %v6699_v14  ;;  %v6627_v22 = vld [vmem:[#allocation13 + $0x200] sm:$0xf] }
 0x215   : > { %2832 = vmatpush.bf16.msrb.mxu2 %v6680_v26  ;;  %2845 = vmatpush.bf16.msrb.mxu3 %v6744_v15  ;;  %v6704_v26 = vor.u32 %v8006_v53, %v6701_v2  ;;  %v6691_v15 = vld [vmem:[#allocation13 + $0x280] sm:$0xf]  ;;  %v6628_v31 = vor.u32 %v7989_v12, %v6627_v22 }
 0x218   : > { %2807 = vmatpush.bf16.msrb.mxu0 %v6668_v32  ;;  %2820 = vmatpush.bf16.msrb.mxu1 %v6732_v33  ;;  %v6692_v32 = vor.u32 %v8005_v4, %v6691_v15  ;;  %v6632_v33 = vor.u32 %v7988_v27, %v6629_v28 }
 0x219   : > { %2833 = vmatpush.bf16.msrb.mxu2 %v6672_v38  ;;  %2846 = vmatpush.bf16.msrb.mxu3 %v6736_v39 }
 0x21c   : > { %2808 = vmatpush.bf16.msrb.mxu0 %v6660_v60  ;;  %2821 = vmatpush.bf16.msrb.mxu1 %v6724_v47 }
 0x21d   : > { %2834 = vmatpush.bf16.msrb.mxu2 %v6664_v50  ;;  %2847 = vmatpush.bf16.msrb.mxu3 %v6728_v51  ;;  %v2347_v50 = vperm.slane %v1830_v44, 0  ;;  %v8098_v44 = vld [vmem:[#allocation16 + $0x174] sm:$0xf] }
 0x220   : > { %2809 = vmatpush.bf16.msrb.mxu0 %v6652_v57  ;;  %2822 = vmatpush.bf16.msrb.mxu1 %v6716_v58 }
 0x221   : > { %2835 = vmatpush.bf16.msrb.mxu2 %v6656_v34  ;;  %2848 = vmatpush.bf16.msrb.mxu3 %v6720_v62 }
 0x224   : > { %2810 = vmatpush.bf16.msrb.mxu0 %v6644_v5  ;;  %2823 = vmatpush.bf16.msrb.mxu1 %v6708_v7 }
 0x225   : > { %2836 = vmatpush.bf16.msrb.mxu2 %v6648_v13  ;;  %2849 = vmatpush.bf16.msrb.mxu3 %v6712_v42 }
 0x228   : > { %2811 = vmatpush.bf16.msrb.mxu0 %v6636_v20  ;;  %2824 = vmatpush.bf16.msrb.mxu1 %v6700_v21 }
 0x229   : > { %2837 = vmatpush.bf16.msrb.mxu2 %v6640_v25  ;;  %2850 = vmatpush.bf16.msrb.mxu3 %v6704_v26 }
 0x22c   : > { %2812 = vmatpush.bf16.msrb.mxu0 %v6628_v31  ;;  %2825 = vmatpush.bf16.msrb.mxu1 %v6692_v32 }
 0x22d   : > { %2838 = vmatpush.bf16.msrb.mxu2 %v6632_v33  ;;  %2851 = vmatpush.bf16.msrb.mxu3 %v6696_v36 }
 0x22f   : > { %2813 = vmatmul.bf16.vlgmr.msrb.gmra.mxu0 %v9053_v23  ;;  %2826 = vmatmul.bf16.vlgmr.msrb.gmra.mxu1 %v9055_v24 }
 0x230   : > { %2839 = vmatmul.bf16.vlgmr.msrb.gmra.mxu2 %v9053_v23  ;;  %2852 = vmatmul.bf16.vlgmr.msrb.gmra.mxu3 %v9055_v24 }
 0x26b   : > { %v2091_v37 = vpop.f32.mrf.mxu0  ;;  %v2104_v38 = vpop.f32.mrf.mxu1 }
 0x26c   : > { %v2105_v45 = vadd.f32 %v2104_v38, %v2091_v37  ;;  %v6811_v38 = vld [vmem:[#allocation16 + $0x170] sm:$0xf] }
 0x272   : > { %v2117_v39 = vpop.f32.mrf.mxu2  ;;  %v2130_v40 = vpop.f32.mrf.mxu3 }
 0x273   : > { %v2093_v41 = vpop.f32.mrf.mxu0  ;;  %v2106_v43 = vpop.f32.mrf.mxu1  ;;  %v2131_v18 = vadd.f32 %v2130_v40, %v2117_v39  ;;  %v8099_v39 = vld [vmem:[#allocation16 + $0x174] sm:$0xf0]  ;;  %v6875_v40 = vld [vmem:[#allocation16 + $0x1f0] sm:$0xf] }
 0x274   : > { %v6812_v41 = vor.u32 %v8099_v39, %v6811_v38  ;;  %v8115_v43 = vld [vmem:[#allocation16 + $0x1f4] sm:$0xf0]  ;;  %v6845_v38 = vld [vmem:[#allocation16 + $0x1b8] sm:$0xf0] }
 0x276   : > { %3256 = vmatpush.bf16.msra.mxu0 %v6812_v41  ;;  %v6771_v41 = vld [vmem:[#allocation16 + $0x120] sm:$0xf] }
 0x27a   : > { %v2119_v46 = vpop.f32.mrf.mxu2  ;;  %v2132_v60 = vpop.f32.mrf.mxu3 }
 0x27b   : > { %v2303_v47 = vpop.f32.mrf.mxu0  ;;  %v2316_v48 = vpop.f32.mrf.mxu1  ;;  %v6876_v46 = vor.u32 %v8115_v43, %v6875_v40  ;;  %v8089_v43 = vld [vmem:[#allocation16 + $0x124] sm:$0xf0] }
 0x27c   : > { %v2304_v49 = vadd.f32 %v2303_v47, %v2105_v45  ;;  %v6813_v45 = vld [vmem:[#allocation16 + $0x178] sm:$0xf0]  ;;  %v8114_v47 = vld [vmem:[#allocation16 + $0x1f4] sm:$0xf] }
 0x27d   : > { %v6816_v60 = vor.u32 %v8098_v44, %v6813_v45  ;;  %3270 = vmatpush.bf16.msra.mxu1 %v6876_v46  ;;  %v6835_v44 = vld [vmem:[#allocation16 + $0x1a0] sm:$0xf]  ;;  %v6772_v46 = vor.u32 %v8089_v43, %v6771_v41  ;;  %v8080_v41 = vld [vmem:[#allocation16 + $0xe4] sm:$0xf]  ;;  %v6997_v43 = vld [vmem:[#allocation16 + $0xe8] sm:$0xf0] }
 0x27e   : > { %v2317_v51 = vadd.f32 %v2316_v48, %v2304_v49  ;;  %v6877_v48 = vld [vmem:[#allocation16 + $0x1f8] sm:$0xf0] }
 0x27f   : > { %3284 = vmatpush.bf16.msra.mxu2 %v6816_v60  ;;  %v8105_v60 = vld [vmem:[#allocation16 + $0x1a4] sm:$0xf0] }
 0x280   : > { %v2351_v17 = vadd.f32 %v2347_v50, %v2317_v51  ;;  %v6803_v51 = vld [vmem:[#allocation16 + $0x160] sm:$0xf] }
 0x282   : > { %v9065_v23 = vmax.f32 %v2351_v17, 0.0  ;;  %v2329_v24 = vpop.f32.mrf.mxu2  ;;  %v2342_v52 = vpop.f32.mrf.mxu3  ;;  %v8097_v17 = vld [vmem:[#allocation16 + $0x164] sm:$0xf0] }
 0x283   : > { %v2330_v54 = vadd.f32 %v2329_v24, %v2131_v18  ;;  %v2305_v56 = vpop.f32.mrf.mxu0  ;;  %v2318_v57 = vpop.f32.mrf.mxu1  ;;  %v6804_v18 = vor.u32 %v8097_v17, %v6803_v51  ;;  %v6867_v24 = vld [vmem:[#allocation16 + $0x1e0] sm:$0xf]  ;;  %v6837_v17 = vld [vmem:[#allocation16 + $0x1a8] sm:$0xf0] }
 0x284   : > { %2877 = vst [vmem:[#allocation1] sm:$0xff] %v9065_v23  ;;  %v6805_v56 = vld [vmem:[#allocation16 + $0x168] sm:$0xf0]  ;;  %v8112_v57 = vld [vmem:[#allocation16 + $0x1e4] sm:$0xf] }
 0x285   : > { %v2343_v58 = vadd.f32 %v2342_v52, %v2330_v54  ;;  %v8113_v52 = vld [vmem:[#allocation16 + $0x1e4] sm:$0xf0]  ;;  %3257 = vmatpush.bf16.msra.mxu0 %v6804_v18 }
 0x286   : > { %v6868_v54 = vor.u32 %v8113_v52, %v6867_v24  ;;  %v6763_v24 = vld [vmem:[#allocation16 + $0x110] sm:$0xf]  ;;  %v8087_v52 = vld [vmem:[#allocation16 + $0x114] sm:$0xf0] }
 0x287   : > { %v2352_v59 = vadd.f32 %v2348_v55, %v2343_v58  ;;  %v6869_v58 = vld [vmem:[#allocation16 + $0x1e8] sm:$0xf0] }
 0x288   : > { %3271 = vmatpush.bf16.msra.mxu1 %v6868_v54  ;;  %v6827_v54 = vld [vmem:[#allocation16 + $0x190] sm:$0xf] }
 0x289   : > { %v9068_v61 = vmax.f32 %v2352_v59, 0.0 }
 0x28a   : > { %v2331_v34 = vpop.f32.mrf.mxu2  ;;  %v2344_v62 = vpop.f32.mrf.mxu3 }
 0x28b   : > { %v2863_v9 = vrot.slane %v9068_v61, 7  ;;  %2878 = vst [vmem:[#allocation1 + $0x9] sm:$0xff] %v9068_v61  ;;  %v6872_v34 = vor.u32 %v8112_v57, %v6869_v58  ;;  %v6795_v62 = vld [vmem:[#allocation16 + $0x150] sm:$0xf]  ;;  %v8086_v58 = vld [vmem:[#allocation16 + $0x114] sm:$0xf] }
 0x28c   : > { %v2602_v63 = vpop.f32.mrf.mxu0  ;;  %v2615_v0 = vpop.f32.mrf.mxu1 }
 0x28d   : > { %v2864_v35 = vsel %vm705_vm1, %v9065_v23, %v2863_v9  ;;  %v2616_v42 = vadd.f32 %v2615_v0, %v2602_v63  ;;  %v8095_v9 = vld [vmem:[#allocation16 + $0x154] sm:$0xf0] }
 0x28e   : > { %2867 = vst.msk [vmem:[#allocation4 + $0x1] ss:$8 sm:$0x3] %vm8955_vm2, %v2864_v35  ;;  %v6859_v35 = vld [vmem:[#allocation16 + $0x1d0] sm:$0xf]  ;;  %v6796_v63 = vor.u32 %v8095_v9, %v6795_v62 }
 0x28f   : > { %v8111_v0 = vld [vmem:[#allocation16 + $0x1d4] sm:$0xf0]  ;;  %v6829_v9 = vld [vmem:[#allocation16 + $0x198] sm:$0xf0] }
 0x290   : > { %3258 = vmatpush.bf16.msra.mxu0 %v6796_v63  ;;  %v6755_v63 = vld [vmem:[#allocation16 + $0x100] sm:$0xf] }
 0x292   : > { %v2880_v1 = vld [vmem:[#allocation1 + $0x1] ss:$9 sm:$0xff] }
 0x293   : > { %2883 = vst.msk [vmem:[#allocation4 + $0x3] ss:$8 sm:$0x3] %vm8955_vm2, %v2880_v1  ;;  %v8094_v1 = vld [vmem:[#allocation16 + $0x154] sm:$0xf] }
 0x294   : > { %v2604_v7 = vpop.f32.mrf.mxu0  ;;  %v2617_v10 = vpop.f32.mrf.mxu1 }
 0x295   : > { %v2628_v3 = vpop.f32.mrf.mxu2  ;;  %v2641_v5 = vpop.f32.mrf.mxu3  ;;  %v8110_v10 = vld [vmem:[#allocation16 + $0x1d4] sm:$0xf] }
 0x296   : > { %v2642_v2 = vadd.f32 %v2641_v5, %v2628_v3  ;;  %v6797_v3 = vld [vmem:[#allocation16 + $0x158] sm:$0xf0]  ;;  %v6860_v5 = vor.u32 %v8111_v0, %v6859_v35  ;;  %v8085_v0 = vld [vmem:[#allocation16 + $0x104] sm:$0xf0] }
 0x297   : > { %v6800_v7 = vor.u32 %v8094_v1, %v6797_v3  ;;  %v6819_v1 = vld [vmem:[#allocation16 + $0x180] sm:$0xf]  ;;  %v6756_v3 = vor.u32 %v8085_v0, %v6755_v63  ;;  %v6981_v63 = vld [vmem:[#allocation16 + $0xc8] sm:$0xf0]  ;;  %v6907_v0 = vld [vmem:[#allocation16 + $0x30] sm:$0xf] }
 0x298   : > { %3272 = vmatpush.bf16.msra.mxu1 %v6860_v5  ;;  %v8101_v5 = vld [vmem:[#allocation16 + $0x184] sm:$0xf0] }
 0x29d   : > { %v2630_v11 = vpop.f32.mrf.mxu2  ;;  %v2643_v13 = vpop.f32.mrf.mxu3 }
 0x29e   : > { %v6861_v11 = vld [vmem:[#allocation16 + $0x1d8] sm:$0xf0] }
 0x29f   : > { %v6864_v13 = vor.u32 %v8110_v10, %v6861_v11  ;;  %v6757_v10 = vld [vmem:[#allocation16 + $0x108] sm:$0xf0] }
 0x2ac   : > { %v2814_v14 = vpop.f32.mrf.mxu0  ;;  %v2827_v6 = vpop.f32.mrf.mxu1 }
 0x2ad   : > { %v2815_v16 = vadd.f32 %v2814_v14, %v2616_v42  ;;  %v6787_v14 = vld [vmem:[#allocation16 + $0x140] sm:$0xf] }
 0x2af   : > { %v2828_v19 = vadd.f32 %v2827_v6, %v2815_v16  ;;  %v8093_v6 = vld [vmem:[#allocation16 + $0x144] sm:$0xf0] }
 0x2b0   : > { %v6788_v16 = vor.u32 %v8093_v6, %v6787_v14  ;;  %v8100_v14 = vld [vmem:[#allocation16 + $0x184] sm:$0xf]  ;;  %v6821_v6 = vld [vmem:[#allocation16 + $0x188] sm:$0xf0] }
 0x2b1   : > { %v2857_v53 = vadd.f32 %v2828_v19, %v2347_v50  ;;  %v6880_v50 = vor.u32 %v8114_v47, %v6877_v48  ;;  %v6851_v19 = vld [vmem:[#allocation16 + $0x1c0] sm:$0xf]  ;;  %v8088_v47 = vld [vmem:[#allocation16 + $0x124] sm:$0xf]  ;;  %v6836_v48 = vor.u32 %v8105_v60, %v6835_v44  ;;  %v6923_v44 = vld [vmem:[#allocation16 + $0x50] sm:$0xf] }
 0x2b2   : > { %3259 = vmatpush.bf16.msra.mxu0 %v6788_v16  ;;  %v6824_v16 = vor.u32 %v8100_v14, %v6821_v6  ;;  %v6987_v60 = vld [vmem:[#allocation16 + $0xd0] sm:$0xf]  ;;  %v8074_v14 = vld [vmem:[#allocation16 + $0xb4] sm:$0xf] }
 0x2b3   : > { %v9078_v20 = vmax.f32 %v2857_v53, 0.0  ;;  %v2840_v21 = vpop.f32.mrf.mxu2  ;;  %v2853_v22 = vpop.f32.mrf.mxu3  ;;  %3298 = vmatpush.bf16.msra.mxu3 %v6880_v50  ;;  %v8109_v53 = vld [vmem:[#allocation16 + $0x1c4] sm:$0xf0]  ;;  %v8104_v50 = vld [vmem:[#allocation16 + $0x1a4] sm:$0xf] }
 0x2b4   : > { %v2841_v12 = vadd.f32 %v2840_v21, %v2642_v2  ;;  %v2816_v25 = vpop.f32.mrf.mxu0  ;;  %v2829_v26 = vpop.f32.mrf.mxu1  ;;  %v6852_v2 = vor.u32 %v8109_v53, %v6851_v19  ;;  %v8092_v21 = vld [vmem:[#allocation16 + $0x144] sm:$0xf]  ;;  %v6840_v18 = vor.u32 %v8104_v50, %v6837_v17  ;;  %v6939_v19 = vld [vmem:[#allocation16 + $0x70] sm:$0xf]  ;;  %v8067_v53 = vld [vmem:[#allocation16 + $0x74] sm:$0xf0] }
 0x2b5   : > { %2885 = vst [vmem:[#allocation1] sm:$0xff] %v9078_v20  ;;  %v8108_v25 = vld [vmem:[#allocation16 + $0x1c4] sm:$0xf]  ;;  %v6853_v26 = vld [vmem:[#allocation16 + $0x1c8] sm:$0xf0] }
 0x2b6   : > { %v2854_v15 = vadd.f32 %v2853_v22, %v2841_v12  ;;  %v6789_v22 = vld [vmem:[#allocation16 + $0x148] sm:$0xf0]  ;;  %3273 = vmatpush.bf16.msra.mxu1 %v6852_v2  ;;  %v6940_v2 = vor.u32 %v8067_v53, %v6939_v19  ;;  %v6925_v17 = vld [vmem:[#allocation16 + $0x58] sm:$0xf0]  ;;  %v6899_v19 = vld [vmem:[#allocation16 + $0x20] sm:$0xf] }
 0x2b7   : > { %3299 = vmatpush.bf16.msra.mxu3 %v6872_v34  ;;  %v6792_v12 = vor.u32 %v8092_v21, %v6789_v22  ;;  %v8102_v34 = vld [vmem:[#allocation16 + $0x194] sm:$0xf]  ;;  %v7003_v21 = vld [vmem:[#allocation16 + $0xf0] sm:$0xf]  ;;  %v8083_v22 = vld [vmem:[#allocation16 + $0xf4] sm:$0xf0] }
 0x2b8   : > { %v2858_v4 = vadd.f32 %v2854_v15, %v2348_v55  ;;  %v8096_v55 = vld [vmem:[#allocation16 + $0x164] sm:$0xf]  ;;  %v6779_v15 = vld [vmem:[#allocation16 + $0x130] sm:$0xf]  ;;  %v6832_v35 = vor.u32 %v8102_v34, %v6829_v9  ;;  %v8057_v53 = vld [vmem:[#allocation16 + $0x24] sm:$0xf0] }
 0x2b9   : > { %v6808_v59 = vor.u32 %v8096_v55, %v6805_v56  ;;  %v8103_v55 = vld [vmem:[#allocation16 + $0x194] sm:$0xf0]  ;;  %v6764_v56 = vor.u32 %v8087_v52, %v6763_v24  ;;  %v6989_v24 = vld [vmem:[#allocation16 + $0xd8] sm:$0xf0]  ;;  %v8060_v34 = vld [vmem:[#allocation16 + $0x44] sm:$0xf] }
 0x2ba   : > { %v9081_v27 = vmax.f32 %v2858_v4, 0.0  ;;  %v8091_v4 = vld [vmem:[#allocation16 + $0x134] sm:$0xf0]  ;;  %v6828_v57 = vor.u32 %v8103_v55, %v6827_v54  ;;  %v6915_v55 = vld [vmem:[#allocation16 + $0x40] sm:$0xf] }
 0x2bb   : > { %v2842_v28 = vpop.f32.mrf.mxu2  ;;  %v2855_v29 = vpop.f32.mrf.mxu3  ;;  %3285 = vmatpush.bf16.msra.mxu2 %v6808_v59  ;;  %3300 = vmatpush.bf16.msra.mxu3 %v6864_v13  ;;  %v6765_v59 = vld [vmem:[#allocation16 + $0x118] sm:$0xf0]  ;;  %v6820_v13 = vor.u32 %v8101_v5, %v6819_v1  ;;  %v8059_v5 = vld [vmem:[#allocation16 + $0x34] sm:$0xf0] }
 0x2bc   : > { %v2871_v30 = vrot.slane %v9081_v27, 7  ;;  %2886 = vst [vmem:[#allocation1 + $0x9] sm:$0xff] %v9081_v27  ;;  %v6856_v28 = vor.u32 %v8108_v25, %v6853_v26  ;;  %v6780_v29 = vor.u32 %v8091_v4, %v6779_v15  ;;  %v6768_v62 = vor.u32 %v8086_v58, %v6765_v59  ;;  %v8066_v25 = vld [vmem:[#allocation16 + $0x74] sm:$0xf]  ;;  %v6941_v26 = vld [vmem:[#allocation16 + $0x78] sm:$0xf0] }
 0x2bd   : > { %v8082_v15 = vld [vmem:[#allocation16 + $0xf4] sm:$0xf]  ;;  %v7005_v4 = vld [vmem:[#allocation16 + $0xf8] sm:$0xf0]  ;;  %v6979_v58 = vld [vmem:[#allocation16 + $0xc0] sm:$0xf] }
 0x2be   : > { %v2872_v31 = vsel %vm705_vm1, %v9078_v20, %v2871_v30  ;;  %v6843_v30 = vld [vmem:[#allocation16 + $0x1b0] sm:$0xf]  ;;  %3260 = vmatpush.bf16.msra.mxu0 %v6780_v29  ;;  %v7008_v29 = vor.u32 %v8082_v15, %v7005_v4  ;;  %v8077_v59 = vld [vmem:[#allocation16 + $0xc4] sm:$0xf0]  ;;  %v6901_v15 = vld [vmem:[#allocation16 + $0x28] sm:$0xf0]  ;;  %v6900_v4 = vor.u32 %v8057_v53, %v6899_v19 }
 0x2bf   : > { %2875 = vst.msk [vmem:[#allocation4 + $0x2] ss:$8 sm:$0x3] %vm8955_vm2, %v2872_v31  ;;  %3286 = vmatpush.bf16.msra.mxu2 %v6800_v7  ;;  %v8107_v31 = vld [vmem:[#allocation16 + $0x1b4] sm:$0xf0]  ;;  %3301 = vmatpush.bf16.msra.mxu3 %v6856_v28  ;;  %v6944_v28 = vor.u32 %v8066_v25, %v6941_v26  ;;  %v6980_v9 = vor.u32 %v8077_v59, %v6979_v58 }
 0x2c0   : > { %v8084_v7 = vld [vmem:[#allocation16 + $0x104] sm:$0xf]  ;;  %v8162_v53 = vld [vmem:[#allocation16 + $0x374] sm:$0xf] }
 0x2c1   : > { %v8056_v26 = vld [vmem:[#allocation16 + $0x24] sm:$0xf] }
 0x2c2   : > { %3261 = vmatpush.bf16.msra.mxu0 %v6772_v46  ;;  %v8063_v46 = vld [vmem:[#allocation16 + $0x54] sm:$0xf0] }
 0x2c3   : > { %v2888_v32 = vld [vmem:[#allocation1 + $0x1] ss:$9 sm:$0xff]  ;;  %3287 = vmatpush.bf16.msra.mxu2 %v6792_v12  ;;  %v7004_v12 = vor.u32 %v8083_v22, %v7003_v21 }
 0x2c4   : > { %2893 = vst [vmem:[#allocation1] sm:$0xff] %v9065_v23  ;;  %v6963_v21 = vld [vmem:[#allocation16 + $0xa0] sm:$0xf]  ;;  %v8073_v22 = vld [vmem:[#allocation16 + $0xa4] sm:$0xf0] }
 0x2c5   : > { %2894 = vst [vmem:[#allocation1 + $0x9] sm:$0xff] %v9068_v61 }
 0x2c6   : > { %2891 = vst.msk [vmem:[#allocation4 + $0x4] ss:$8 sm:$0x3] %vm8955_vm2, %v2888_v32  ;;  %v8090_v32 = vld [vmem:[#allocation16 + $0x134] sm:$0xf]  ;;  %3262 = vmatpush.bf16.msra.mxu0 %v6764_v56 }
 0x2c7   : > { %v8061_v56 = vld [vmem:[#allocation16 + $0x44] sm:$0xf0] }
 0x2ca   : > { %3263 = vmatpush.bf16.msra.mxu0 %v6756_v3 }
 0x2cc   : > { %v2896_v33 = vld [vmem:[#allocation1 + $0x2] ss:$9 sm:$0xff] }
 0x2cd   : > { %2901 = vst [vmem:[#allocation1] sm:$0xff] %v9078_v20 }
 0x2ce   : > { %2902 = vst [vmem:[#allocation1 + $0x9] sm:$0xff] %v9081_v27  ;;  %3472 = vmatpush.bf16.msrb.mxu0 %v6940_v2 }
 0x2cf   : > { %2899 = vst.msk [vmem:[#allocation4 + $0x5] ss:$8 sm:$0x3] %vm8955_vm2, %v2896_v33  ;;  %v6844_v33 = vor.u32 %v8107_v31, %v6843_v30  ;;  %v6931_v30 = vld [vmem:[#allocation16 + $0x60] sm:$0xf] }
 0x2d0   : > { %v8065_v31 = vld [vmem:[#allocation16 + $0x64] sm:$0xf0] }
 0x2d1   : > { %3274 = vmatpush.bf16.msra.mxu1 %v6844_v33  ;;  %v6932_v33 = vor.u32 %v8065_v31, %v6931_v30  ;;  %v6964_v30 = vor.u32 %v8073_v22, %v6963_v21  ;;  %v6891_v31 = vld [vmem:[#allocation16 + $0x10] sm:$0xf]  ;;  %v8178_v21 = vld [vmem:[#allocation16 + $0x3f4] sm:$0xf]  ;;  %v7133_v22 = vld [vmem:[#allocation16 + $0x3f8] sm:$0xf0] }
 0x2d3   : > { %3473 = vmatpush.bf16.msrb.mxu0 %v6932_v33  ;;  %v6955_v33 = vld [vmem:[#allocation16 + $0x90] sm:$0xf] }
 0x2d5   : > { %v2904_v36 = vld [vmem:[#allocation1 + $0x2] ss:$9 sm:$0xff]  ;;  %3275 = vmatpush.bf16.msra.mxu1 %v6836_v48 }
 0x2d6   : > { %2909 = vst [vmem:[#allocation1] sm:$0xff] %v9065_v23 }
 0x2d7   : > { %2910 = vst [vmem:[#allocation1 + $0x9] sm:$0xff] %v9068_v61 }
 0x2d8   : > { %2907 = vst.msk [vmem:[#allocation4 + $0x6] ss:$8 sm:$0x3] %vm8955_vm2, %v2904_v36  ;;  %v6781_v36 = vld [vmem:[#allocation16 + $0x138] sm:$0xf0] }
 0x2d9   : > { %v6784_v39 = vor.u32 %v8090_v32, %v6781_v36  ;;  %3276 = vmatpush.bf16.msra.mxu1 %v6828_v57  ;;  %v6995_v32 = vld [vmem:[#allocation16 + $0xe0] sm:$0xf]  ;;  %v8081_v36 = vld [vmem:[#allocation16 + $0xe4] sm:$0xf0]  ;;  %v6916_v57 = vor.u32 %v8061_v56, %v6915_v55 }
 0x2db   : > { %3288 = vmatpush.bf16.msra.mxu2 %v6784_v39  ;;  %v6996_v39 = vor.u32 %v8081_v36, %v6995_v32  ;;  %v8055_v32 = vld [vmem:[#allocation16 + $0x14] sm:$0xf0] }
 0x2dc   : > { %v8071_v36 = vld [vmem:[#allocation16 + $0x94] sm:$0xf0] }
 0x2dd   : > { %3277 = vmatpush.bf16.msra.mxu1 %v6820_v13  ;;  %v8058_v13 = vld [vmem:[#allocation16 + $0x34] sm:$0xf] }
 0x2de   : > { %v2912_v37 = vld [vmem:[#allocation1 + $0x3] ss:$9 sm:$0xff] }
 0x2df   : > { %2917 = vst [vmem:[#allocation1] sm:$0xff] %v9078_v20 }
 0x2e0   : > { %2918 = vst [vmem:[#allocation1 + $0x9] sm:$0xff] %v9081_v27 }
 0x2e1   : > { %2915 = vst.msk [vmem:[#allocation4 + $0x7] ss:$8 sm:$0x3] %vm8955_vm2, %v2912_v37  ;;  %v8106_v37 = vld [vmem:[#allocation16 + $0x1b4] sm:$0xf]  ;;  %3486 = vmatpush.bf16.msrb.mxu1 %v7004_v12 }
 0x2e2   : > { %v6848_v40 = vor.u32 %v8106_v37, %v6845_v38  ;;  %v8064_v37 = vld [vmem:[#allocation16 + $0x64] sm:$0xf]  ;;  %v6933_v38 = vld [vmem:[#allocation16 + $0x68] sm:$0xf0] }
 0x2e4   : > { %3302 = vmatpush.bf16.msra.mxu3 %v6848_v40  ;;  %v6936_v40 = vor.u32 %v8064_v37, %v6933_v38  ;;  %v6904_v37 = vor.u32 %v8056_v26, %v6901_v15 }
 0x2e5   : > { %3487 = vmatpush.bf16.msrb.mxu1 %v6996_v39  ;;  %v8054_v39 = vld [vmem:[#allocation16 + $0x14] sm:$0xf] }
 0x2e7   : > { %v2920_v49 = vld [vmem:[#allocation1 + $0x3] ss:$9 sm:$0xff] }
 0x2e8   : > { %2925 = vst [vmem:[#allocation1] sm:$0xff] %v9065_v23  ;;  %3303 = vmatpush.bf16.msra.mxu3 %v6840_v18  ;;  %v8078_v18 = vld [vmem:[#allocation16 + $0xd4] sm:$0xf]  ;;  %v2997_v59 = vld [vmem:[#allocation4 + $0x8] sm:$0xfe] }
 0x2e9   : > { %2926 = vst [vmem:[#allocation1 + $0x9] sm:$0xff] %v9068_v61  ;;  %v6992_v54 = vor.u32 %v8078_v18, %v6989_v24  ;;  %v6885_v18 = vld [vmem:[#allocation16 + $0x8] sm:$0xf0]  ;;  %v2996_v58 = vld [vmem:[#allocation4] sm:$0xfe] }
 0x2ea   : > { %2923 = vst.msk [vmem:[#allocation4 + $0x10] ss:$8 sm:$0x3] %vm8955_vm2, %v2920_v49  ;;  %v6773_v49 = vld [vmem:[#allocation16 + $0x128] sm:$0xf0] }
 0x2eb   : > { %v6776_v51 = vor.u32 %v8088_v47, %v6773_v49  ;;  %v8079_v47 = vld [vmem:[#allocation16 + $0xd4] sm:$0xf0]  ;;  %v6924_v49 = vor.u32 %v8063_v46, %v6923_v44  ;;  %v6957_v44 = vld [vmem:[#allocation16 + $0x98] sm:$0xf0]  ;;  %v6883_v46 = vld [vmem:[#allocation16] sm:$0xf] }
 0x2ec   : > { %3304 = vmatpush.bf16.msra.mxu3 %v6832_v35  ;;  %v6988_v50 = vor.u32 %v8079_v47, %v6987_v60  ;;  %v8076_v35 = vld [vmem:[#allocation16 + $0xc4] sm:$0xf]  ;;  %v8053_v60 = vld [vmem:[#allocation16 + $0x4] sm:$0xf0]  ;;  %v6947_v47 = vld [vmem:[#allocation16 + $0x80] sm:$0xf] }
 0x2ed   : > { %3289 = vmatpush.bf16.msra.mxu2 %v6776_v51  ;;  %v8062_v51 = vld [vmem:[#allocation16 + $0x54] sm:$0xf]  ;;  %3474 = vmatpush.bf16.msrb.mxu0 %v6924_v49  ;;  %v6984_v3 = vor.u32 %v8076_v35, %v6981_v63  ;;  %v6884_v24 = vor.u32 %v8053_v60, %v6883_v46  ;;  %v7051_v46 = vld [vmem:[#allocation16 + $0x350] sm:$0xf]  ;;  %v8159_v60 = vld [vmem:[#allocation16 + $0x354] sm:$0xf0] }
 0x2ee   : > { %v6928_v52 = vor.u32 %v8062_v51, %v6925_v17  ;;  %3488 = vmatpush.bf16.msrb.mxu1 %v6988_v50  ;;  %v8052_v17 = vld [vmem:[#allocation16 + $0x4] sm:$0xf] }
 0x2ef   : > { %v6888_v56 = vor.u32 %v8052_v17, %v6885_v18  ;;  %v7053_v17 = vld [vmem:[#allocation16 + $0x358] sm:$0xf0]  ;;  %v8174_v18 = vld [vmem:[#allocation16 + $0x3d4] sm:$0xf] }
 0x2f0   : > { %v2928_v42 = vld [vmem:[#allocation1 + $0x4] ss:$9 sm:$0xff]  ;;  %3305 = vmatpush.bf16.msra.mxu3 %v6824_v16 }
 0x2f1   : > { %2933 = vst [vmem:[#allocation1] sm:$0xff] %v9078_v20  ;;  %3290 = vmatpush.bf16.msra.mxu2 %v6768_v62  ;;  %v6917_v62 = vld [vmem:[#allocation16 + $0x48] sm:$0xf0]  ;;  %3475 = vmatpush.bf16.msrb.mxu0 %v6916_v57  ;;  %v6973_v16 = vld [vmem:[#allocation16 + $0xb8] sm:$0xf0] }
 0x2f2   : > { %2934 = vst [vmem:[#allocation1 + $0x9] sm:$0xff] %v9081_v27  ;;  %v6920_v1 = vor.u32 %v8060_v34, %v6917_v62  ;;  %3489 = vmatpush.bf16.msrb.mxu1 %v6980_v9  ;;  %v6976_v25 = vor.u32 %v8074_v14, %v6973_v16 }
 0x2f3   : > { %2931 = vst.msk [vmem:[#allocation4 + $0x11] ss:$8 sm:$0x3] %vm8955_vm2, %v2928_v42  ;;  %v6760_v42 = vor.u32 %v8084_v7, %v6757_v10  ;;  %v6971_v7 = vld [vmem:[#allocation16 + $0xb0] sm:$0xf] }
 0x2f4   : > { %3514 = vmatpush.bf16.msrb.mxu3 %v7008_v29  ;;  %v8075_v10 = vld [vmem:[#allocation16 + $0xb4] sm:$0xf0]  ;;  %v6965_v29 = vld [vmem:[#allocation16 + $0xa8] sm:$0xf0] }
 0x2f5   : > { %3291 = vmatpush.bf16.msra.mxu2 %v6760_v42  ;;  %v6909_v42 = vld [vmem:[#allocation16 + $0x38] sm:$0xf0]  ;;  %v6972_v6 = vor.u32 %v8075_v10, %v6971_v7  ;;  %v7067_v10 = vld [vmem:[#allocation16 + $0x370] sm:$0xf] }
 0x2f6   : > { %v6912_v12 = vor.u32 %v8058_v13, %v6909_v42  ;;  %v7131_v13 = vld [vmem:[#allocation16 + $0x3f0] sm:$0xf]  ;;  %v8179_v42 = vld [vmem:[#allocation16 + $0x3f4] sm:$0xf0] }
 0x2f7   : > { %3490 = vmatpush.bf16.msrb.mxu1 %v6972_v6 }
 0x2f9   : > { %v2936_v45 = vld [vmem:[#allocation1 + $0x4] ss:$9 sm:$0xff]  ;;  %3500 = vmatpush.bf16.msrb.mxu2 %v6944_v28 }
 0x2fa   : > { %2941 = vst [vmem:[#allocation1] sm:$0xff] %v9065_v23  ;;  %v8072_v28 = vld [vmem:[#allocation16 + $0xa4] sm:$0xf] }
 0x2fb   : > { %2942 = vst [vmem:[#allocation1 + $0x9] sm:$0xff] %v9068_v61  ;;  %v6968_v38 = vor.u32 %v8072_v28, %v6965_v29  ;;  %3491 = vmatpush.bf16.msrb.mxu1 %v6964_v30  ;;  %v7132_v28 = vor.u32 %v8179_v42, %v7131_v13  ;;  %v7059_v29 = vld [vmem:[#allocation16 + $0x360] sm:$0xf]  ;;  %v8161_v30 = vld [vmem:[#allocation16 + $0x364] sm:$0xf0] }
 0x2fc   : > { %2939 = vst.msk [vmem:[#allocation4 + $0x12] ss:$8 sm:$0x3] %vm8955_vm2, %v2936_v45  ;;  %v7000_v45 = vor.u32 %v8080_v41, %v6997_v43  ;;  %v6893_v41 = vld [vmem:[#allocation16 + $0x18] sm:$0xf0] }
 0x2fd   : > { %3501 = vmatpush.bf16.msrb.mxu2 %v6936_v40  ;;  %v6892_v40 = vor.u32 %v8055_v32, %v6891_v31  ;;  %v8070_v43 = vld [vmem:[#allocation16 + $0x94] sm:$0xf]  ;;  %v6896_v50 = vor.u32 %v8054_v39, %v6893_v41  ;;  %v8160_v39 = vld [vmem:[#allocation16 + $0x364] sm:$0xf]  ;;  %v7037_v13 = vld [vmem:[#allocation16 + $0x338] sm:$0xf0] }
 0x2fe   : > { %3515 = vmatpush.bf16.msrb.mxu3 %v7000_v45  ;;  %v6956_v45 = vor.u32 %v8071_v36, %v6955_v33  ;;  %v6960_v51 = vor.u32 %v8070_v43, %v6957_v44  ;;  %v7136_v36 = vor.u32 %v8178_v21, %v7133_v22  ;;  %v8176_v41 = vld [vmem:[#allocation16 + $0x3e4] sm:$0xf]  ;;  %v7125_v43 = vld [vmem:[#allocation16 + $0x3e8] sm:$0xf0]  ;;  %v7060_v44 = vor.u32 %v8161_v30, %v7059_v29  ;;  %v8170_v42 = vld [vmem:[#allocation16 + $0x3b4] sm:$0xf] }
 0x2ff   : > { %v7027_v22 = vld [vmem:[#allocation16 + $0x320] sm:$0xf]  ;;  %v7029_v29 = vld [vmem:[#allocation16 + $0x328] sm:$0xf0]  ;;  %v8168_v30 = vld [vmem:[#allocation16 + $0x3a4] sm:$0xf] }
 0x300   : > { %3492 = vmatpush.bf16.msrb.mxu1 %v6956_v45 }
 0x301   : > { %3502 = vmatpush.bf16.msrb.mxu2 %v6928_v52  ;;  %v8068_v52 = vld [vmem:[#allocation16 + $0x84] sm:$0xf] }
 0x302   : > { %v2944_v11 = vld [vmem:[#allocation1 + $0x5] ss:$9 sm:$0xff]  ;;  %3516 = vmatpush.bf16.msrb.mxu3 %v6992_v54 }
 0x303   : > { %2949 = vst [vmem:[#allocation1] sm:$0xff] %v9078_v20  ;;  %v6949_v54 = vld [vmem:[#allocation16 + $0x88] sm:$0xf0] }
 0x304   : > { %2950 = vst [vmem:[#allocation1 + $0x9] sm:$0xff] %v9081_v27  ;;  %v6952_v57 = vor.u32 %v8068_v52, %v6949_v54  ;;  %v7052_v52 = vor.u32 %v8159_v60, %v7051_v46  ;;  %v7021_v46 = vld [vmem:[#allocation16 + $0x318] sm:$0xf0]  ;;  %v8166_v60 = vld [vmem:[#allocation16 + $0x394] sm:$0xf] }
 0x305   : > { %2947 = vst.msk [vmem:[#allocation4 + $0x13] ss:$8 sm:$0x3] %vm8955_vm2, %v2944_v11  ;;  %v6908_v11 = vor.u32 %v8059_v5, %v6907_v0  ;;  %3503 = vmatpush.bf16.msrb.mxu2 %v6920_v1 }
 0x306   : > { %3517 = vmatpush.bf16.msrb.mxu3 %v6984_v3 }
 0x307   : > { %3476 = vmatpush.bf16.msrb.mxu0 %v6908_v11  ;;  %v8163_v11 = vld [vmem:[#allocation16 + $0x374] sm:$0xf0] }
 0x309   : > { %3504 = vmatpush.bf16.msrb.mxu2 %v6912_v12 }
 0x30a   : > { %3518 = vmatpush.bf16.msrb.mxu3 %v6976_v25 }
 0x30b   : > { %v2952_v48 = vld [vmem:[#allocation1 + $0x5] ss:$9 sm:$0xff]  ;;  %3477 = vmatpush.bf16.msrb.mxu0 %v6900_v4  ;;  %v7068_v4 = vor.u32 %v8163_v11, %v7067_v10  ;;  %v8171_v10 = vld [vmem:[#allocation16 + $0x3b4] sm:$0xf0] }
 0x30c   : > { %2957 = vst [vmem:[#allocation1] sm:$0xff] %v9065_v23  ;;  %v8154_v11 = vld [vmem:[#allocation16 + $0x334] sm:$0xf] }
 0x30d   : > { %2958 = vst [vmem:[#allocation1 + $0x9] sm:$0xff] %v9068_v61  ;;  %3505 = vmatpush.bf16.msrb.mxu2 %v6904_v37  ;;  %v7123_v37 = vld [vmem:[#allocation16 + $0x3e0] sm:$0xf] }
 0x30e   : > { %2955 = vst.msk [vmem:[#allocation4 + $0x14] ss:$8 sm:$0x3] %vm8955_vm2, %v2952_v48  ;;  %v8069_v48 = vld [vmem:[#allocation16 + $0x84] sm:$0xf0]  ;;  %3519 = vmatpush.bf16.msrb.mxu3 %v6968_v38 }
 0x30f   : > { %3478 = vmatpush.bf16.msrb.mxu0 %v6892_v40  ;;  %v6948_v55 = vor.u32 %v8069_v48, %v6947_v47  ;;  %v8177_v38 = vld [vmem:[#allocation16 + $0x3e4] sm:$0xf0]  ;;  %v7061_v40 = vld [vmem:[#allocation16 + $0x368] sm:$0xf0]  ;;  %v7128_v48 = vor.u32 %v8176_v41, %v7125_v43  ;;  %v7083_v43 = vld [vmem:[#allocation16 + $0x390] sm:$0xf] }
 0x310   : > { %v7124_v45 = vor.u32 %v8177_v38, %v7123_v37  ;;  %v7064_v47 = vor.u32 %v8160_v39, %v7061_v40  ;;  %v7019_v38 = vld [vmem:[#allocation16 + $0x310] sm:$0xf]  ;;  %v8151_v39 = vld [vmem:[#allocation16 + $0x314] sm:$0xf0] }
 0x311   : > { %3506 = vmatpush.bf16.msrb.mxu2 %v6896_v50  ;;  %3493 = vmatpush.bf16.msrb.mxu1 %v6948_v55  ;;  %v8175_v50 = vld [vmem:[#allocation16 + $0x3d4] sm:$0xf0]  ;;  %v7043_v55 = vld [vmem:[#allocation16 + $0x340] sm:$0xf] }
 0x312   : > { %3520 = vmatpush.bf16.msrb.mxu3 %v6960_v51  ;;  %v8158_v51 = vld [vmem:[#allocation16 + $0x354] sm:$0xf] }
 0x313   : > { %3479 = vmatpush.bf16.msrb.mxu0 %v6884_v24  ;;  %v7117_v24 = vld [vmem:[#allocation16 + $0x3d8] sm:$0xf0] }
 0x314   : > { %v2960_v2 = vld [vmem:[#allocation1 + $0x6] ss:$9 sm:$0xff] }
 0x315   : > { %2965 = vst [vmem:[#allocation1] sm:$0xff] %v9078_v20  ;;  %3507 = vmatpush.bf16.msrb.mxu2 %v6888_v56  ;;  %v8157_v56 = vld [vmem:[#allocation16 + $0x344] sm:$0xf0] }
 0x316   : > { %2966 = vst [vmem:[#allocation1 + $0x9] sm:$0xff] %v9081_v27  ;;  %3521 = vmatpush.bf16.msrb.mxu3 %v6952_v57  ;;  %v7056_v57 = vor.u32 %v8158_v51, %v7053_v17  ;;  %v7020_v17 = vor.u32 %v8151_v39, %v7019_v38  ;;  %v7179_v38 = vld [vmem:[#allocation16 + $0x250] sm:$0xf]  ;;  %v8127_v39 = vld [vmem:[#allocation16 + $0x254] sm:$0xf0] }
 0x317   : > { %2963 = vst.msk [vmem:[#allocation4 + $0x15] ss:$8 sm:$0x3] %vm8955_vm2, %v2960_v2  ;;  %v7069_v2 = vld [vmem:[#allocation16 + $0x378] sm:$0xf0] }
 0x318   : > { %v7072_v33 = vor.u32 %v8162_v53, %v7069_v2 }
 0x31d   : > { %v2968_v49 = vld [vmem:[#allocation1 + $0x6] ss:$9 sm:$0xff] }
 0x31e   : > { %2973 = vst [vmem:[#allocation1] sm:$0xff] %v9065_v23 }
 0x31f   : > { %2974 = vst [vmem:[#allocation1 + $0x9] sm:$0xff] %v9068_v61 }
 0x320   : > { %2971 = vst.msk [vmem:[#allocation4 + $0x16] ss:$8 sm:$0x3] %vm8955_vm2, %v2968_v49  ;;  %v7115_v49 = vld [vmem:[#allocation16 + $0x3d0] sm:$0xf] }
 0x321   : > { %v7116_v54 = vor.u32 %v8175_v50, %v7115_v49  ;;  %v7011_v49 = vld [vmem:[#allocation16 + $0x300] sm:$0xf] }
 0x326   : > { %v2976_v23 = vld [vmem:[#allocation1 + $0x7] ss:$9 sm:$0xff] }
 0x327   : > { %2981 = vst [vmem:[#allocation1] sm:$0xff] %v9078_v20 }
 0x328   : > { %2982 = vst [vmem:[#allocation1 + $0x9] sm:$0xff] %v9081_v27 }
 0x329   : > { %2979 = vst.msk [vmem:[#allocation4 + $0x17] ss:$8 sm:$0x3] %vm8955_vm2, %v2976_v23  ;;  %v7120_v23 = vor.u32 %v8174_v18, %v7117_v24  ;;  %v8149_v24 = vld [vmem:[#allocation16 + $0x304] sm:$0xf0] }
 0x32f   : > { %v2984_v61 = vld [vmem:[#allocation1 + $0x7] ss:$9 sm:$0xff] }
 0x330   : > { %2987 = vst.msk [vmem:[#allocation4 + $0x20] ss:$8 sm:$0x3] %vm8955_vm2, %v2984_v61  ;;  %v9139_v34 = vld [vmem:[#allocation4 + $0x10] sm:$0xff]  ;;  %v9141_v62 = vld [vmem:[#allocation4 + $0x18] sm:$0xff] }
 0x331   : > { %v3000_v9 = vpack.c.bf16 %v9139_v34, %v2996_v58  ;;  %v3001_v35 = vpack.c.bf16 %v9141_v62, %v2997_v59  ;;  %v7107_v61 = vld [vmem:[#allocation16 + $0x3c0] sm:$0xf]  ;;  %v8173_v58 = vld [vmem:[#allocation16 + $0x3c4] sm:$0xf0]  ;;  %v8156_v59 = vld [vmem:[#allocation16 + $0x344] sm:$0xf] }
 0x333   : > { %v3073_v20 = vshll.u32 %v3000_v9, 16  ;;  %v3085_v63 = vshll.u32 %v3001_v35, 16  ;;  %v3071_v14 = vshrl.u32 %v3000_v9, 16  ;;  %v3083_v16 = vshrl.u32 %v3001_v35, 16  ;;  %v7045_v9 = vld [vmem:[#allocation16 + $0x348] sm:$0xf0] }
 0x334   : > { %v8172_v35 = vld [vmem:[#allocation16 + $0x3c4] sm:$0xf] }
 0x335   : > { %v3075_v3 = vrot.slane %v3073_v20, 1  ;;  %v3087_v7 = vrot.slane %v3085_v63, 1  ;;  %v7109_v20 = vld [vmem:[#allocation16 + $0x3c8] sm:$0xf0]  ;;  %v7044_v63 = vor.u32 %v8157_v56, %v7043_v55 }
 0x337   : > { %v2998_v27 = vld [vmem:[#allocation4 + $0x20] sm:$0x1]  ;;  %v2999_v0 = vld [vmem:[#allocation4 + $0x28] sm:$0x1]  ;;  %v3076_v12 = vor.u32 %v3075_v3, %v3071_v14  ;;  %v3088_v26 = vor.u32 %v3087_v7, %v3083_v16  ;;  %v7048_v3 = vor.u32 %v8156_v59, %v7045_v9  ;;  %v7099_v7 = vld [vmem:[#allocation16 + $0x3b0] sm:$0xf] }
 0x338   : > { %v3002_v1 = vpack.c.bf16 %v2998_v27, %v2998_v27  ;;  %v3003_v5 = vpack.c.bf16 %v2999_v0, %v2999_v0  ;;  %v7108_v27 = vor.u32 %v8173_v58, %v7107_v61  ;;  %v7035_v0 = vld [vmem:[#allocation16 + $0x330] sm:$0xf]  ;;  %v7101_v14 = vld [vmem:[#allocation16 + $0x3b8] sm:$0xf0]  ;;  %v7100_v21 = vor.u32 %v8171_v10, %v7099_v7  ;;  %v3543_v50 = vld [vmem:[#allocation4 + $0x20] sm:$0x3] }
 0x339   : > { %v2991_v16 = vld [vmem:[#allocation4 + $0x8] sm:$0xff]  ;;  %v8164_v61 = vld [vmem:[#allocation16 + $0x384] sm:$0xf]  ;;  %v7077_v59 = vld [vmem:[#allocation16 + $0x388] sm:$0xf0] }
 0x33a   : > { %v3078_v6 = vshll.u32 %v3002_v1, 16  ;;  %v3090_v19 = vshll.u32 %v3003_v5, 16  ;;  %v8155_v1 = vld [vmem:[#allocation16 + $0x334] sm:$0xf0]  ;;  %v7112_v5 = vor.u32 %v8172_v35, %v7109_v20  ;;  %v2995_v2 = vpack.c.bf16 %v9141_v62, %v2991_v16  ;;  %v3544_v51 = vld [vmem:[#allocation4 + $0x28] sm:$0x3] }
 0x33b   : > { %v7195_v9 = vld [vmem:[#allocation16 + $0x270] sm:$0xf]  ;;  %v8131_v35 = vld [vmem:[#allocation16 + $0x274] sm:$0xf0]  ;;  %v3547_v20 = vpack.c.bf16 %v3543_v50, %v3543_v50  ;;  %v7197_v10 = vld [vmem:[#allocation16 + $0x278] sm:$0xf0] }
 0x33c   : > { %v3080_v25 = vrot.slane %v3078_v6, 1  ;;  %v3092_v15 = vrot.slane %v3090_v19, 1  ;;  %v2990_v6 = vld [vmem:[#allocation4] sm:$0xff]  ;;  %v7036_v19 = vor.u32 %v8155_v1, %v7035_v0  ;;  %v7259_v0 = vld [vmem:[#allocation16 + $0x2f0] sm:$0xf]  ;;  %v7196_v16 = vor.u32 %v8131_v35, %v7195_v9 }
 0x33d   : > { %v2994_v53 = vpack.c.bf16 %v9139_v34, %v2990_v6  ;;  %v8147_v1 = vld [vmem:[#allocation16 + $0x2f4] sm:$0xf0] }
 0x33e   : > { %v9146_v31 = vsel %vm3069_vm3, %v3076_v12, %v3080_v25  ;;  %v9149_v32 = vsel %vm3069_vm3, %v3088_v26, %v3092_v15  ;;  %v8153_v12 = vld [vmem:[#allocation16 + $0x324] sm:$0xf0]  ;;  %v7040_v25 = vor.u32 %v8154_v11, %v7037_v13  ;;  %v7104_v26 = vor.u32 %v8170_v42, %v7101_v14  ;;  %v7091_v15 = vld [vmem:[#allocation16 + $0x3a0] sm:$0xf]  ;;  %v8146_v11 = vld [vmem:[#allocation16 + $0x2f4] sm:$0xf] }
 0x33f   : > { %3264 = vmatmul.bf16.vlgmr.msra.gmra.mxu0 %v9146_v31  ;;  %3278 = vmatmul.bf16.vlgmr.msra.gmra.mxu1 %v9149_v32  ;;  %v7261_v13 = vld [vmem:[#allocation16 + $0x2f8] sm:$0xf0]  ;;  %v8123_v9 = vld [vmem:[#allocation16 + $0x234] sm:$0xf0] }
 0x340   : > { %3292 = vmatmul.bf16.vlgmr.msra.gmra.mxu2 %v9146_v31  ;;  %3306 = vmatmul.bf16.vlgmr.msra.gmra.mxu3 %v9149_v32 }
 0x341   : > { %3788 = vmatpush.bf16.msra.mxu0 %v7068_v4  ;;  %3802 = vmatpush.bf16.msra.mxu1 %v7132_v28  ;;  %v8169_v4 = vld [vmem:[#allocation16 + $0x3a4] sm:$0xf0]  ;;  %v8152_v28 = vld [vmem:[#allocation16 + $0x324] sm:$0xf] }
 0x342   : > { %3816 = vmatpush.bf16.msra.mxu2 %v7072_v33  ;;  %3830 = vmatpush.bf16.msra.mxu3 %v7136_v36  ;;  %v7093_v33 = vld [vmem:[#allocation16 + $0x3a8] sm:$0xf0]  ;;  %v7028_v36 = vor.u32 %v8153_v12, %v7027_v22  ;;  %v7092_v37 = vor.u32 %v8169_v4, %v7091_v15  ;;  %v7032_v40 = vor.u32 %v8152_v28, %v7029_v29  ;;  %v8129_v22 = vld [vmem:[#allocation16 + $0x264] sm:$0xf0]  ;;  %v8128_v4 = vld [vmem:[#allocation16 + $0x264] sm:$0xf] }
 0x343   : > { %v7096_v41 = vor.u32 %v8168_v30, %v7093_v33  ;;  %v8145_v15 = vld [vmem:[#allocation16 + $0x2e4] sm:$0xf0]  ;;  %v7189_v28 = vld [vmem:[#allocation16 + $0x268] sm:$0xf0]  ;;  %v8144_v29 = vld [vmem:[#allocation16 + $0x2e4] sm:$0xf] }
 0x344   : > { %v7253_v30 = vld [vmem:[#allocation16 + $0x2e8] sm:$0xf0] }
 0x345   : > { %3789 = vmatpush.bf16.msra.mxu0 %v7060_v44  ;;  %3803 = vmatpush.bf16.msra.mxu1 %v7124_v45  ;;  %v8167_v44 = vld [vmem:[#allocation16 + $0x394] sm:$0xf0]  ;;  %v8150_v45 = vld [vmem:[#allocation16 + $0x314] sm:$0xf] }
 0x346   : > { %3817 = vmatpush.bf16.msra.mxu2 %v7064_v47  ;;  %3831 = vmatpush.bf16.msra.mxu3 %v7128_v48  ;;  %v7085_v47 = vld [vmem:[#allocation16 + $0x398] sm:$0xf0]  ;;  %v3541_v48 = vld [vmem:[#allocation4] sm:$0xfc]  ;;  %v7084_v18 = vor.u32 %v8167_v44, %v7083_v43  ;;  %v7024_v55 = vor.u32 %v8150_v45, %v7021_v46  ;;  %v7256_v43 = vor.u32 %v8144_v29, %v7253_v30  ;;  %v7243_v44 = vld [vmem:[#allocation16 + $0x2d0] sm:$0xf] }
 0x347   : > { %v7088_v56 = vor.u32 %v8166_v60, %v7085_v47  ;;  %v3545_v58 = vpack.c.bf16 %v9139_v34, %v3541_v48  ;;  %v7080_v34 = vor.u32 %v8164_v61, %v7077_v59  ;;  %v8143_v45 = vld [vmem:[#allocation16 + $0x2d4] sm:$0xf0]  ;;  %v8126_v46 = vld [vmem:[#allocation16 + $0x254] sm:$0xf]  ;;  %v7181_v60 = vld [vmem:[#allocation16 + $0x258] sm:$0xf0] }
 0x348   : > { %v8142_v47 = vld [vmem:[#allocation16 + $0x2d4] sm:$0xf]  ;;  %v7245_v48 = vld [vmem:[#allocation16 + $0x2d8] sm:$0xf0]  ;;  %v7244_v50 = vor.u32 %v8143_v45, %v7243_v44  ;;  %v7163_v59 = vld [vmem:[#allocation16 + $0x230] sm:$0xf] }
 0x349   : > { %3790 = vmatpush.bf16.msra.mxu0 %v7052_v52  ;;  %3804 = vmatpush.bf16.msra.mxu1 %v7116_v54  ;;  %v7075_v52 = vld [vmem:[#allocation16 + $0x380] sm:$0xf]  ;;  %v8165_v54 = vld [vmem:[#allocation16 + $0x384] sm:$0xf0]  ;;  %v3620_v14 = vrot.slane %v3545_v58, 1 }
 0x34a   : > { %3818 = vmatpush.bf16.msra.mxu2 %v7056_v57  ;;  %3832 = vmatpush.bf16.msra.mxu3 %v7120_v23  ;;  %v8148_v57 = vld [vmem:[#allocation16 + $0x304] sm:$0xf]  ;;  %v7013_v23 = vld [vmem:[#allocation16 + $0x308] sm:$0xf0]  ;;  %v7076_v7 = vor.u32 %v8165_v54, %v7075_v52  ;;  %v7235_v52 = vld [vmem:[#allocation16 + $0x2c0] sm:$0xf] }
 0x34b   : > { %v7016_v42 = vor.u32 %v8148_v57, %v7013_v23  ;;  %v8141_v54 = vld [vmem:[#allocation16 + $0x2c4] sm:$0xf0]  ;;  %v8140_v57 = vld [vmem:[#allocation16 + $0x2c4] sm:$0xf]  ;;  %v7237_v23 = vld [vmem:[#allocation16 + $0x2c8] sm:$0xf0] }
 0x34c   : > { %v7236_v58 = vor.u32 %v8141_v54, %v7235_v52  ;;  %v8118_v29 = vld [vmem:[#allocation16 + $0x214] sm:$0xf]  ;;  %v7149_v30 = vld [vmem:[#allocation16 + $0x218] sm:$0xf0]  ;;  %v8133_v44 = vld [vmem:[#allocation16 + $0x284] sm:$0xf0] }
 0x34d   : > { %3791 = vmatpush.bf16.msra.mxu0 %v7044_v63  ;;  %3805 = vmatpush.bf16.msra.mxu1 %v7108_v27  ;;  %v3542_v63 = vld [vmem:[#allocation4 + $0x8] sm:$0xfc]  ;;  %v3548_v27 = vpack.c.bf16 %v3544_v51, %v3544_v51  ;;  %v8116_v45 = vld [vmem:[#allocation16 + $0x204] sm:$0xf] }
 0x34e   : > { %3819 = vmatpush.bf16.msra.mxu2 %v7048_v3  ;;  %3833 = vmatpush.bf16.msra.mxu3 %v7112_v5  ;;  %v8130_v3 = vld [vmem:[#allocation16 + $0x274] sm:$0xf]  ;;  %v7012_v5 = vor.u32 %v8149_v24, %v7011_v49  ;;  %v3546_v6 = vpack.c.bf16 %v9141_v62, %v3542_v63  ;;  %v7180_v49 = vor.u32 %v8127_v39, %v7179_v38  ;;  %v7171_v51 = vld [vmem:[#allocation16 + $0x240] sm:$0xf]  ;;  %v7227_v63 = vld [vmem:[#allocation16 + $0x2b0] sm:$0xf] }
 0x34f   : > { %3480 = vmatmul.bf16.vlgmr.msrb.gmra.mxu0 %v2994_v53  ;;  %3494 = vmatmul.bf16.vlgmr.msrb.gmra.mxu1 %v2995_v2  ;;  %v7200_v12 = vor.u32 %v8130_v3, %v7197_v10  ;;  %v7248_v24 = vor.u32 %v8142_v47, %v7245_v48  ;;  %v8138_v3 = vld [vmem:[#allocation16 + $0x2b4] sm:$0xf]  ;;  %v7139_v38 = vld [vmem:[#allocation16 + $0x200] sm:$0xf]  ;;  %v8117_v39 = vld [vmem:[#allocation16 + $0x204] sm:$0xf0] }
 0x350   : > { %3508 = vmatmul.bf16.vlgmr.msrb.gmra.mxu2 %v2994_v53  ;;  %3522 = vmatmul.bf16.vlgmr.msrb.gmra.mxu3 %v2995_v2  ;;  %v3621_v53 = vrot.slane %v3547_v20, 1  ;;  %v3624_v2 = vrot.slane %v3548_v27, 1  ;;  %v3623_v33 = vrot.slane %v3546_v6, 1  ;;  %v7240_v20 = vor.u32 %v8140_v57, %v7237_v23  ;;  %v8139_v27 = vld [vmem:[#allocation16 + $0x2b4] sm:$0xf0] }
 0x351   : > { %3792 = vmatpush.bf16.msra.mxu0 %v7036_v19  ;;  %3806 = vmatpush.bf16.msra.mxu1 %v7100_v21  ;;  %v7260_v19 = vor.u32 %v8147_v1, %v7259_v0  ;;  %v7187_v21 = vld [vmem:[#allocation16 + $0x260] sm:$0xf]  ;;  %v8122_v0 = vld [vmem:[#allocation16 + $0x234] sm:$0xf]  ;;  %v7165_v1 = vld [vmem:[#allocation16 + $0x238] sm:$0xf0]  ;;  %v7228_v10 = vor.u32 %v8139_v27, %v7227_v63  ;;  %v7140_v48 = vor.u32 %v8117_v39, %v7139_v38 }
 0x352   : > { %3820 = vmatpush.bf16.msra.mxu2 %v7040_v25  ;;  %3834 = vmatpush.bf16.msra.mxu3 %v7104_v26  ;;  %v7264_v25 = vor.u32 %v8146_v11, %v7261_v13  ;;  %v7251_v26 = vld [vmem:[#allocation16 + $0x2e0] sm:$0xf]  ;;  %v3622_v62 = vsel %vm3619_vm4, %v3620_v14, %v3621_v53  ;;  %v8121_v13 = vld [vmem:[#allocation16 + $0x224] sm:$0xf0]  ;;  %v8136_v53 = vld [vmem:[#allocation16 + $0x2a4] sm:$0xf] }
 0x353   : > { %v7155_v11 = vld [vmem:[#allocation16 + $0x220] sm:$0xf]  ;;  %v8137_v6 = vld [vmem:[#allocation16 + $0x2a4] sm:$0xf0]  ;;  %v7205_v47 = vld [vmem:[#allocation16 + $0x288] sm:$0xf0] }
 0x354   : > { %v7219_v14 = vld [vmem:[#allocation16 + $0x2a0] sm:$0xf] }
 0x355   : > { %3793 = vmatpush.bf16.msra.mxu0 %v7028_v36  ;;  %3807 = vmatpush.bf16.msra.mxu1 %v7092_v37  ;;  %v7188_v36 = vor.u32 %v8129_v22, %v7187_v21  ;;  %v7252_v37 = vor.u32 %v8145_v15, %v7251_v26  ;;  %v7156_v21 = vor.u32 %v8121_v13, %v7155_v11 }
 0x356   : > { %3821 = vmatpush.bf16.msra.mxu2 %v7032_v40  ;;  %3835 = vmatpush.bf16.msra.mxu3 %v7096_v41  ;;  %v3625_v40 = vsel %vm3619_vm4, %v3623_v33, %v3624_v2  ;;  %v7192_v41 = vor.u32 %v8128_v4, %v7189_v28  ;;  %v7221_v2 = vld [vmem:[#allocation16 + $0x2a8] sm:$0xf0]  ;;  %v7220_v22 = vor.u32 %v8137_v6, %v7219_v14  ;;  %v7211_v4 = vld [vmem:[#allocation16 + $0x290] sm:$0xf]  ;;  %v8135_v28 = vld [vmem:[#allocation16 + $0x294] sm:$0xf0] }
 0x357   : > { %v7224_v15 = vor.u32 %v8136_v53, %v7221_v2  ;;  %v8134_v33 = vld [vmem:[#allocation16 + $0x294] sm:$0xf] }
 0x359   : > { %3794 = vmatpush.bf16.msra.mxu0 %v7020_v17  ;;  %3808 = vmatpush.bf16.msra.mxu1 %v7084_v18  ;;  %v8125_v17 = vld [vmem:[#allocation16 + $0x244] sm:$0xf0]  ;;  %v7184_v18 = vor.u32 %v8126_v46, %v7181_v60  ;;  %v7141_v46 = vld [vmem:[#allocation16 + $0x208] sm:$0xf0]  ;;  %v8132_v60 = vld [vmem:[#allocation16 + $0x284] sm:$0xf] }
 0x35a   : > { %3822 = vmatpush.bf16.msra.mxu2 %v7024_v55  ;;  %3836 = vmatpush.bf16.msra.mxu3 %v7088_v56  ;;  %v8124_v55 = vld [vmem:[#allocation16 + $0x244] sm:$0xf]  ;;  %v7173_v56 = vld [vmem:[#allocation16 + $0x248] sm:$0xf0]  ;;  %v7172_v61 = vor.u32 %v8125_v17, %v7171_v51  ;;  %v7208_v51 = vor.u32 %v8132_v60, %v7205_v47 }
 0x35b   : > { %v7176_v35 = vor.u32 %v8124_v55, %v7173_v56  ;;  %v2989_v56 = vld [vmem:[#allocation17] sm:$0x3] }
 0x35d   : > { %3795 = vmatpush.bf16.msra.mxu0 %v7012_v5  ;;  %3809 = vmatpush.bf16.msra.mxu1 %v7076_v7  ;;  %v7229_v5 = vld [vmem:[#allocation16 + $0x2b8] sm:$0xf0]  ;;  %v7164_v7 = vor.u32 %v8123_v9, %v7163_v59  ;;  %v9165_v9 = vperm.slane %v2989_v56, 0 }
 0x35e   : > { %3823 = vmatpush.bf16.msra.mxu2 %v7016_v42  ;;  %3837 = vmatpush.bf16.msra.mxu3 %v7080_v34  ;;  %v7168_v42 = vor.u32 %v8122_v0, %v7165_v1  ;;  %v7232_v34 = vor.u32 %v8138_v3, %v7229_v5  ;;  %v9170_v3 = vperm.slane %v2989_v56, 1 }
 0x360   : > { %3796 = vmatmul.bf16.vlgmr.msra.gmra.mxu0 %v3622_v62  ;;  %3810 = vmatmul.bf16.vlgmr.msra.gmra.mxu1 %v3625_v40 }
 0x361   : > { %4004 = vmatpush.bf16.msrb.mxu0 %v7196_v16  ;;  %4018 = vmatpush.bf16.msrb.mxu1 %v7260_v19  ;;  %v8120_v16 = vld [vmem:[#allocation16 + $0x224] sm:$0xf]  ;;  %v7157_v19 = vld [vmem:[#allocation16 + $0x228] sm:$0xf0] }
 0x362   : > { %4032 = vmatpush.bf16.msrb.mxu2 %v7200_v12  ;;  %4046 = vmatpush.bf16.msrb.mxu3 %v7264_v25  ;;  %v7147_v12 = vld [vmem:[#allocation16 + $0x210] sm:$0xf]  ;;  %v8119_v25 = vld [vmem:[#allocation16 + $0x214] sm:$0xf0]  ;;  %v7160_v26 = vor.u32 %v8120_v16, %v7157_v19 }
 0x363   : > { %3824 = vmatmul.bf16.vlgmr.msra.gmra.mxu2 %v3622_v62  ;;  %3838 = vmatmul.bf16.vlgmr.msra.gmra.mxu3 %v3625_v40  ;;  %v7213_v62 = vld [vmem:[#allocation16 + $0x298] sm:$0xf0]  ;;  %v7152_v40 = vor.u32 %v8118_v29, %v7149_v30 }
 0x365   : > { %4005 = vmatpush.bf16.msrb.mxu0 %v7188_v36  ;;  %4019 = vmatpush.bf16.msrb.mxu1 %v7252_v37  ;;  %v7148_v36 = vor.u32 %v8119_v25, %v7147_v12  ;;  %v7212_v37 = vor.u32 %v8135_v28, %v7211_v4 }
 0x366   : > { %4033 = vmatpush.bf16.msrb.mxu2 %v7192_v41  ;;  %4047 = vmatpush.bf16.msrb.mxu3 %v7256_v43  ;;  %v7216_v41 = vor.u32 %v8134_v33, %v7213_v62  ;;  %v7203_v43 = vld [vmem:[#allocation16 + $0x280] sm:$0xf] }
 0x369   : > { %4006 = vmatpush.bf16.msrb.mxu0 %v7180_v49  ;;  %4020 = vmatpush.bf16.msrb.mxu1 %v7244_v50  ;;  %v7204_v49 = vor.u32 %v8133_v44, %v7203_v43  ;;  %v7144_v50 = vor.u32 %v8116_v45, %v7141_v46 }
 0x36a   : > { %4034 = vmatpush.bf16.msrb.mxu2 %v7184_v18  ;;  %4048 = vmatpush.bf16.msrb.mxu3 %v7248_v24 }
 0x36d   : > { %4007 = vmatpush.bf16.msrb.mxu0 %v7172_v61  ;;  %4021 = vmatpush.bf16.msrb.mxu1 %v7236_v58 }
 0x36e   : > { %4035 = vmatpush.bf16.msrb.mxu2 %v7176_v35  ;;  %4049 = vmatpush.bf16.msrb.mxu3 %v7240_v20 }
 0x371   : > { %4008 = vmatpush.bf16.msrb.mxu0 %v7164_v7  ;;  %4022 = vmatpush.bf16.msrb.mxu1 %v7228_v10 }
 0x372   : > { %4036 = vmatpush.bf16.msrb.mxu2 %v7168_v42  ;;  %4050 = vmatpush.bf16.msrb.mxu3 %v7232_v34 }
 0x375   : > { %4009 = vmatpush.bf16.msrb.mxu0 %v7156_v21  ;;  %4023 = vmatpush.bf16.msrb.mxu1 %v7220_v22 }
 0x376   : > { %4037 = vmatpush.bf16.msrb.mxu2 %v7160_v26  ;;  %4051 = vmatpush.bf16.msrb.mxu3 %v7224_v15 }
 0x379   : > { %4010 = vmatpush.bf16.msrb.mxu0 %v7148_v36  ;;  %4024 = vmatpush.bf16.msrb.mxu1 %v7212_v37 }
 0x37a   : > { %4038 = vmatpush.bf16.msrb.mxu2 %v7152_v40  ;;  %4052 = vmatpush.bf16.msrb.mxu3 %v7216_v41 }
 0x37d   : > { %4011 = vmatpush.bf16.msrb.mxu0 %v7140_v48  ;;  %4025 = vmatpush.bf16.msrb.mxu1 %v7204_v49 }
 0x37e   : > { %4039 = vmatpush.bf16.msrb.mxu2 %v7144_v50  ;;  %4053 = vmatpush.bf16.msrb.mxu3 %v7208_v51 }
 0x380   : > { %4012 = vmatmul.bf16.vlgmr.msrb.gmra.mxu0 %v9146_v31  ;;  %4026 = vmatmul.bf16.vlgmr.msrb.gmra.mxu1 %v9149_v32 }
 0x381   : > { %4040 = vmatmul.bf16.vlgmr.msrb.gmra.mxu2 %v9146_v31  ;;  %4054 = vmatmul.bf16.vlgmr.msrb.gmra.mxu3 %v9149_v32 }
 0x3bc   : > { %v3265_v17 = vpop.f32.mrf.mxu0  ;;  %v3279_v18 = vpop.f32.mrf.mxu1 }
 0x3bd   : > { %v3280_v57 = vadd.f32 %v3279_v18, %v3265_v17 }
 0x3c3   : > { %v3293_v24 = vpop.f32.mrf.mxu2  ;;  %v3307_v52 = vpop.f32.mrf.mxu3 }
 0x3c4   : > { %v3267_v54 = vpop.f32.mrf.mxu0  ;;  %v3281_v55 = vpop.f32.mrf.mxu1  ;;  %v3308_v63 = vadd.f32 %v3307_v52, %v3293_v24 }
 0x3c5   : > { %v3282_v7 = vadd.f32 %v3281_v55, %v3267_v54 }
 0x3cb   : > { %v3295_v23 = vpop.f32.mrf.mxu2  ;;  %v3309_v61 = vpop.f32.mrf.mxu3 }
 0x3cc   : > { %v3481_v58 = vpop.f32.mrf.mxu0  ;;  %v3495_v35 = vpop.f32.mrf.mxu1  ;;  %v3310_v42 = vadd.f32 %v3309_v61, %v3295_v23 }
 0x3cd   : > { %v3482_v59 = vadd.f32 %v3481_v58, %v3280_v57 }
 0x3cf   : > { %v3496_v20 = vadd.f32 %v3495_v35, %v3482_v59 }
 0x3d1   : > { %v3533_v31 = vadd.f32 %v9165_v9, %v3496_v20 }
 0x3d3   : > { %v9168_v32 = vmax.f32 %v3533_v31, 0.0  ;;  %v3509_v27 = vpop.f32.mrf.mxu2  ;;  %v3523_v0 = vpop.f32.mrf.mxu3 }
 0x3d4   : > { %v3510_v1 = vadd.f32 %v3509_v27, %v3308_v63  ;;  %v3483_v5 = vpop.f32.mrf.mxu0  ;;  %v3497_v14 = vpop.f32.mrf.mxu1 }
 0x3d5   : > { %4084 = vst [vmem:[#allocation1] sm:$0xff] %v9168_v32  ;;  %v3484_v13 = vadd.f32 %v3483_v5, %v3282_v7 }
 0x3d6   : > { %v3524_v10 = vadd.f32 %v3523_v0, %v3510_v1 }
 0x3d7   : > { %v3498_v19 = vadd.f32 %v3497_v14, %v3484_v13  ;;  %v7387_v13 = vld [vmem:[#allocation19 + $0x1f0] sm:$0xf]  ;;  %v8243_v14 = vld [vmem:[#allocation19 + $0x1f4] sm:$0xf0] }
 0x3d8   : > { %v3534_v11 = vadd.f32 %v9170_v3, %v3524_v10 }
 0x3d9   : > { %v3535_v12 = vadd.f32 %v9165_v9, %v3498_v19 }
 0x3da   : > { %v9174_v34 = vmax.f32 %v3534_v11, 0.0  ;;  %v8227_v11 = vld [vmem:[#allocation19 + $0x174] sm:$0xf0] }
 0x3db   : > { %v3511_v6 = vpop.f32.mrf.mxu2  ;;  %v3525_v2 = vpop.f32.mrf.mxu3  ;;  %v9188_v4 = vmax.f32 %v3535_v12, 0.0 }
 0x3dc   : > { %v4070_v16 = vrot.slane %v9174_v34, 7  ;;  %4085 = vst [vmem:[#allocation1 + $0x9] sm:$0xff] %v9174_v34  ;;  %v3512_v53 = vadd.f32 %v3511_v6, %v3310_v42  ;;  %v8226_v6 = vld [vmem:[#allocation19 + $0x174] sm:$0xf] }
 0x3dd   : > { %v3797_v30 = vpop.f32.mrf.mxu0  ;;  %v3811_v33 = vpop.f32.mrf.mxu1 }
 0x3de   : > { %v4071_v21 = vsel %vm705_vm1, %v9168_v32, %v4070_v16  ;;  %v3526_v22 = vadd.f32 %v3525_v2, %v3512_v53  ;;  %v3812_v39 = vadd.f32 %v3811_v33, %v3797_v30  ;;  %v7325_v16 = vld [vmem:[#allocation19 + $0x178] sm:$0xf0]  ;;  %v7388_v53 = vor.u32 %v8243_v14, %v7387_v13  ;;  %v8241_v30 = vld [vmem:[#allocation19 + $0x1e4] sm:$0xf0] }
 0x3df   : > { %4074 = vst.msk [vmem:[#allocation5 + $0x1] ss:$8 sm:$0x3] %vm8955_vm2, %v4071_v21  ;;  %v7328_v2 = vor.u32 %v8226_v6, %v7325_v16  ;;  %v8242_v21 = vld [vmem:[#allocation19 + $0x1f4] sm:$0xf] }
 0x3e0   : > { %v3536_v25 = vadd.f32 %v9170_v3, %v3526_v22  ;;  %v7389_v22 = vld [vmem:[#allocation19 + $0x1f8] sm:$0xf0]  ;;  %4632 = vmatpush.bf16.msra.mxu1 %v7388_v53  ;;  %v7283_v6 = vld [vmem:[#allocation19 + $0x120] sm:$0xf]  ;;  %v8217_v53 = vld [vmem:[#allocation19 + $0x124] sm:$0xf0] }
 0x3e1   : > { %v7392_v12 = vor.u32 %v8242_v21, %v7389_v22  ;;  %4651 = vmatpush.bf16.msra.mxu2 %v7328_v2  ;;  %v7357_v14 = vld [vmem:[#allocation19 + $0x1b8] sm:$0xf0]  ;;  %v7347_v2 = vld [vmem:[#allocation19 + $0x1a0] sm:$0xf]  ;;  %v8233_v21 = vld [vmem:[#allocation19 + $0x1a4] sm:$0xf0] }
 0x3e2   : > { %v9184_v26 = vmax.f32 %v3536_v25, 0.0  ;;  %v7315_v25 = vld [vmem:[#allocation19 + $0x160] sm:$0xf]  ;;  %v8216_v22 = vld [vmem:[#allocation19 + $0x124] sm:$0xf] }
 0x3e3   : > { %v4087_v15 = vld [vmem:[#allocation1 + $0x1] ss:$9 sm:$0xff]  ;;  %4670 = vmatpush.bf16.msra.mxu3 %v7392_v12 }
 0x3e4   : > { %4090 = vst.msk [vmem:[#allocation5 + $0x3] ss:$8 sm:$0x3] %vm8955_vm2, %v4087_v15  ;;  %v4198_v28 = vrot.slane %v9184_v26, 7  ;;  %v8225_v15 = vld [vmem:[#allocation19 + $0x164] sm:$0xf0] }
 0x3e5   : > { %v3799_v37 = vpop.f32.mrf.mxu0  ;;  %v3813_v38 = vpop.f32.mrf.mxu1  ;;  %v7285_v12 = vld [vmem:[#allocation19 + $0x128] sm:$0xf0] }
 0x3e6   : > { %v4199_v29 = vsel %vm705_vm1, %v9188_v4, %v4198_v28  ;;  %v3825_v62 = vpop.f32.mrf.mxu2  ;;  %v3839_v36 = vpop.f32.mrf.mxu3  ;;  %v3814_v18 = vadd.f32 %v3813_v38, %v3799_v37  ;;  %v7316_v28 = vor.u32 %v8225_v15, %v7315_v25  ;;  %v8240_v37 = vld [vmem:[#allocation19 + $0x1e4] sm:$0xf]  ;;  %v7381_v38 = vld [vmem:[#allocation19 + $0x1e8] sm:$0xf0]  ;;  %v7284_v15 = vor.u32 %v8217_v53, %v7283_v6  ;;  %v7453_v6 = vld [vmem:[#allocation19 + $0x78] sm:$0xf0] }
 0x3e7   : > { %4202 = vst.msk [vmem:[#allocation5 + $0x21] ss:$8 sm:$0x3] %vm8955_vm2, %v4199_v29  ;;  %v3840_v47 = vadd.f32 %v3839_v36, %v3825_v62  ;;  %v7379_v29 = vld [vmem:[#allocation19 + $0x1e0] sm:$0xf] }
 0x3e8   : > { %v7380_v33 = vor.u32 %v8241_v30, %v7379_v29  ;;  %v8224_v62 = vld [vmem:[#allocation19 + $0x164] sm:$0xf]  ;;  %v7317_v36 = vld [vmem:[#allocation19 + $0x168] sm:$0xf0]  ;;  %v7275_v29 = vld [vmem:[#allocation19 + $0x110] sm:$0xf] }
 0x3e9   : > { %v8232_v25 = vld [vmem:[#allocation19 + $0x1a4] sm:$0xf]  ;;  %v8215_v30 = vld [vmem:[#allocation19 + $0x114] sm:$0xf0] }
 0x3ea   : > { %4633 = vmatpush.bf16.msra.mxu1 %v7380_v33  ;;  %v8195_v53 = vld [vmem:[#allocation19 + $0x74] sm:$0xf0] }
 0x3ee   : > { %v3827_v40 = vpop.f32.mrf.mxu2  ;;  %v3841_v41 = vpop.f32.mrf.mxu3 }
 0x3ef   : > { %v3842_v55 = vadd.f32 %v3841_v41, %v3827_v40  ;;  %v7384_v40 = vor.u32 %v8240_v37, %v7381_v38  ;;  %v7307_v41 = vld [vmem:[#allocation19 + $0x150] sm:$0xf]  ;;  %v8231_v37 = vld [vmem:[#allocation19 + $0x194] sm:$0xf0]  ;;  %v7288_v38 = vor.u32 %v8216_v22, %v7285_v12 }
 0x3f1   : > { %4671 = vmatpush.bf16.msra.mxu3 %v7384_v40  ;;  %v8214_v40 = vld [vmem:[#allocation19 + $0x114] sm:$0xf] }
 0x3fd   : > { %v4013_v43 = vpop.f32.mrf.mxu0  ;;  %v4027_v45 = vpop.f32.mrf.mxu1 }
 0x3fe   : > { %v4014_v44 = vadd.f32 %v4013_v43, %v3812_v39  ;;  %v7320_v39 = vor.u32 %v8224_v62, %v7317_v36  ;;  %v8223_v43 = vld [vmem:[#allocation19 + $0x154] sm:$0xf0]  ;;  %v7348_v62 = vor.u32 %v8233_v21, %v7347_v2  ;;  %v7339_v36 = vld [vmem:[#allocation19 + $0x190] sm:$0xf] }
 0x3ff   : > { %v7515_v2 = vld [vmem:[#allocation19 + $0xf0] sm:$0xf]  ;;  %v8211_v21 = vld [vmem:[#allocation19 + $0xf4] sm:$0xf0] }
 0x400   : > { %v4028_v46 = vadd.f32 %v4027_v45, %v4014_v44  ;;  %v7371_v44 = vld [vmem:[#allocation19 + $0x1d0] sm:$0xf]  ;;  %v7308_v45 = vor.u32 %v8223_v43, %v7307_v41  ;;  %4652 = vmatpush.bf16.msra.mxu2 %v7320_v39  ;;  %v7277_v41 = vld [vmem:[#allocation19 + $0x118] sm:$0xf0]  ;;  %v8230_v43 = vld [vmem:[#allocation19 + $0x194] sm:$0xf]  ;;  %v7516_v12 = vor.u32 %v8211_v21, %v7515_v2 }
 0x401   : > { %v8203_v2 = vld [vmem:[#allocation19 + $0xb4] sm:$0xf0]  ;;  %v8202_v21 = vld [vmem:[#allocation19 + $0xb4] sm:$0xf] }
 0x402   : > { %v4060_v60 = vadd.f32 %v4028_v46, %v9165_v9  ;;  %v8239_v46 = vld [vmem:[#allocation19 + $0x1d4] sm:$0xf0] }
 0x404   : > { %v9196_v48 = vmax.f32 %v4060_v60, 0.0  ;;  %v4041_v49 = vpop.f32.mrf.mxu2  ;;  %v4055_v50 = vpop.f32.mrf.mxu3  ;;  %v8222_v60 = vld [vmem:[#allocation19 + $0x154] sm:$0xf] }
 0x405   : > { %v4042_v51 = vadd.f32 %v4041_v49, %v3840_v47  ;;  %v4015_v17 = vpop.f32.mrf.mxu0  ;;  %v4029_v57 = vpop.f32.mrf.mxu1  ;;  %v7309_v47 = vld [vmem:[#allocation19 + $0x158] sm:$0xf0]  ;;  %v7372_v49 = vor.u32 %v8239_v46, %v7371_v44  ;;  %v7340_v46 = vor.u32 %v8231_v37, %v7339_v36 }
 0x406   : > { %4092 = vst [vmem:[#allocation1] sm:$0xff] %v9196_v48  ;;  %v4016_v54 = vadd.f32 %v4015_v17, %v3814_v18  ;;  %v7373_v17 = vld [vmem:[#allocation19 + $0x1d8] sm:$0xf0]  ;;  %v7299_v18 = vld [vmem:[#allocation19 + $0x140] sm:$0xf] }
 0x407   : > { %v4056_v24 = vadd.f32 %v4055_v50, %v4042_v51  ;;  %v7312_v50 = vor.u32 %v8222_v60, %v7309_v47  ;;  %v8238_v51 = vld [vmem:[#allocation19 + $0x1d4] sm:$0xf]  ;;  %4634 = vmatpush.bf16.msra.mxu1 %v7372_v49  ;;  %v7341_v44 = vld [vmem:[#allocation19 + $0x198] sm:$0xf0]  ;;  %v7267_v60 = vld [vmem:[#allocation19 + $0x100] sm:$0xf]  ;;  %v7280_v49 = vor.u32 %v8214_v40, %v7277_v41 }
 0x408   : > { %v4030_v58 = vadd.f32 %v4029_v57, %v4016_v54  ;;  %v7363_v54 = vld [vmem:[#allocation19 + $0x1c0] sm:$0xf]  ;;  %v8213_v47 = vld [vmem:[#allocation19 + $0x104] sm:$0xf0]  ;;  %v8208_v40 = vld [vmem:[#allocation19 + $0xe4] sm:$0xf] }
 0x409   : > { %v4061_v52 = vadd.f32 %v4056_v24, %v9170_v3  ;;  %v7376_v24 = vor.u32 %v8238_v51, %v7373_v17  ;;  %4653 = vmatpush.bf16.msra.mxu2 %v7312_v50  ;;  %v7344_v50 = vor.u32 %v8230_v43, %v7341_v44  ;;  %v7331_v51 = vld [vmem:[#allocation19 + $0x180] sm:$0xf]  ;;  %v8229_v17 = vld [vmem:[#allocation19 + $0x184] sm:$0xf0]  ;;  %v7509_v43 = vld [vmem:[#allocation19 + $0xe8] sm:$0xf0] }
 0x40a   : > { %v4062_v63 = vadd.f32 %v4030_v58, %v9165_v9  ;;  %v7301_v58 = vld [vmem:[#allocation19 + $0x148] sm:$0xf0]  ;;  %v8190_v44 = vld [vmem:[#allocation19 + $0x54] sm:$0xf] }
 0x40b   : > { %v9200_v56 = vmax.f32 %v4061_v52, 0.0  ;;  %v8221_v52 = vld [vmem:[#allocation19 + $0x144] sm:$0xf0]  ;;  %4672 = vmatpush.bf16.msra.mxu3 %v7376_v24  ;;  %v7269_v24 = vld [vmem:[#allocation19 + $0x108] sm:$0xf0] }
 0x40c   : > { %v4043_v23 = vpop.f32.mrf.mxu2  ;;  %v4057_v35 = vpop.f32.mrf.mxu3  ;;  %v9213_v5 = vmax.f32 %v4062_v63, 0.0 }
 0x40d   : > { %v4078_v61 = vrot.slane %v9200_v56, 7  ;;  %4093 = vst [vmem:[#allocation1 + $0x9] sm:$0xff] %v9200_v56  ;;  %v4044_v59 = vadd.f32 %v4043_v23, %v3842_v55  ;;  %v8237_v55 = vld [vmem:[#allocation19 + $0x1c4] sm:$0xf0]  ;;  %v7300_v23 = vor.u32 %v8221_v52, %v7299_v18  ;;  %v8212_v18 = vld [vmem:[#allocation19 + $0x104] sm:$0xf] }
 0x40e   : > { %v8228_v52 = vld [vmem:[#allocation19 + $0x184] sm:$0xf] }
 0x40f   : > { %v4079_v20 = vsel %vm705_vm1, %v9196_v48, %v4078_v61  ;;  %v4058_v31 = vadd.f32 %v4057_v35, %v4044_v59  ;;  %v8220_v61 = vld [vmem:[#allocation19 + $0x144] sm:$0xf]  ;;  %v7364_v59 = vor.u32 %v8237_v55, %v7363_v54  ;;  %v7333_v54 = vld [vmem:[#allocation19 + $0x188] sm:$0xf0]  ;;  %v7268_v55 = vor.u32 %v8213_v47, %v7267_v60  ;;  %v7435_v47 = vld [vmem:[#allocation19 + $0x50] sm:$0xf] }
 0x410   : > { %4082 = vst.msk [vmem:[#allocation5 + $0x2] ss:$8 sm:$0x3] %vm8955_vm2, %v4079_v20  ;;  %v8236_v35 = vld [vmem:[#allocation19 + $0x1c4] sm:$0xf]  ;;  %v7512_v60 = vor.u32 %v8208_v40, %v7509_v43 }
 0x411   : > { %v4063_v27 = vadd.f32 %v4058_v31, %v9170_v3  ;;  %v7323_v3 = vld [vmem:[#allocation19 + $0x170] sm:$0xf]  ;;  %v7365_v20 = vld [vmem:[#allocation19 + $0x1c8] sm:$0xf0]  ;;  %v7304_v31 = vor.u32 %v8220_v61, %v7301_v58  ;;  %4635 = vmatpush.bf16.msra.mxu1 %v7364_v59  ;;  %v7272_v61 = vor.u32 %v8212_v18, %v7269_v24  ;;  %v7336_v58 = vor.u32 %v8228_v52, %v7333_v54  ;;  %v8207_v18 = vld [vmem:[#allocation19 + $0xd4] sm:$0xf0] }
 0x412   : > { %v7324_v42 = vor.u32 %v8227_v11, %v7323_v3  ;;  %v7368_v63 = vor.u32 %v8236_v35, %v7365_v20  ;;  %v8218_v3 = vld [vmem:[#allocation19 + $0x134] sm:$0xf]  ;;  %v7293_v11 = vld [vmem:[#allocation19 + $0x138] sm:$0xf0]  ;;  %v7477_v40 = vld [vmem:[#allocation19 + $0xa8] sm:$0xf0] }
 0x413   : > { %v9210_v0 = vmax.f32 %v4063_v27, 0.0  ;;  %v7291_v27 = vld [vmem:[#allocation19 + $0x130] sm:$0xf]  ;;  %4654 = vmatpush.bf16.msra.mxu2 %v7304_v31  ;;  %v7296_v16 = vor.u32 %v8218_v3, %v7293_v11  ;;  %v8206_v24 = vld [vmem:[#allocation19 + $0xd4] sm:$0xf] }
 0x414   : > { %v4095_v1 = vld [vmem:[#allocation1 + $0x1] ss:$9 sm:$0xff]  ;;  %4613 = vmatpush.bf16.msra.mxu0 %v7324_v42  ;;  %4673 = vmatpush.bf16.msra.mxu3 %v7368_v63 }
 0x415   : > { %4100 = vst [vmem:[#allocation1] sm:$0xff] %v9168_v32  ;;  %v4206_v7 = vrot.slane %v9210_v0, 7  ;;  %v8234_v42 = vld [vmem:[#allocation19 + $0x1b4] sm:$0xf] }
 0x416   : > { %4101 = vst [vmem:[#allocation1 + $0x9] sm:$0xff] %v9174_v34 }
 0x417   : > { %4098 = vst.msk [vmem:[#allocation5 + $0x4] ss:$8 sm:$0x3] %vm8955_vm2, %v4095_v1  ;;  %v4207_v10 = vsel %vm705_vm1, %v9213_v5, %v4206_v7  ;;  %v8219_v1 = vld [vmem:[#allocation19 + $0x134] sm:$0xf0]  ;;  %4655 = vmatpush.bf16.msra.mxu2 %v7296_v16 }
 0x418   : > { %4210 = vst.msk [vmem:[#allocation5 + $0x22] ss:$8 sm:$0x3] %vm8955_vm2, %v4207_v10  ;;  %4614 = vmatpush.bf16.msra.mxu0 %v7316_v28  ;;  %v7355_v7 = vld [vmem:[#allocation19 + $0x1b0] sm:$0xf]  ;;  %v7292_v10 = vor.u32 %v8219_v1, %v7291_v27 }
 0x419   : > { %v7349_v28 = vld [vmem:[#allocation19 + $0x1a8] sm:$0xf0]  ;;  %v7451_v16 = vld [vmem:[#allocation19 + $0x70] sm:$0xf] }
 0x41a   : > { %v7352_v39 = vor.u32 %v8232_v25, %v7349_v28  ;;  %v7452_v22 = vor.u32 %v8195_v53, %v7451_v16  ;;  %v8210_v25 = vld [vmem:[#allocation19 + $0xf4] sm:$0xf]  ;;  %v8192_v28 = vld [vmem:[#allocation19 + $0x64] sm:$0xf]  ;;  %v7483_v16 = vld [vmem:[#allocation19 + $0xb0] sm:$0xf] }
 0x41b   : > { %4656 = vmatpush.bf16.msra.mxu2 %v7288_v38  ;;  %v7507_v38 = vld [vmem:[#allocation19 + $0xe0] sm:$0xf] }
 0x41c   : > { %4615 = vmatpush.bf16.msra.mxu0 %v7308_v45  ;;  %v7276_v45 = vor.u32 %v8215_v30, %v7275_v29  ;;  %v7445_v30 = vld [vmem:[#allocation19 + $0x68] sm:$0xf0] }
 0x41d   : > { %v4103_v9 = vld [vmem:[#allocation1 + $0x2] ss:$9 sm:$0xff]  ;;  %v7448_v36 = vor.u32 %v8192_v28, %v7445_v30 }
 0x41e   : > { %4108 = vst [vmem:[#allocation1] sm:$0xff] %v9196_v48  ;;  %v7411_v30 = vld [vmem:[#allocation19 + $0x20] sm:$0xf] }
 0x41f   : > { %4109 = vst [vmem:[#allocation1 + $0x9] sm:$0xff] %v9200_v56  ;;  %4657 = vmatpush.bf16.msra.mxu2 %v7280_v49  ;;  %v8191_v49 = vld [vmem:[#allocation19 + $0x54] sm:$0xf0] }
 0x420   : > { %4106 = vst.msk [vmem:[#allocation5 + $0x5] ss:$8 sm:$0x3] %vm8955_vm2, %v4103_v9  ;;  %4616 = vmatpush.bf16.msra.mxu0 %v7300_v23  ;;  %v8235_v9 = vld [vmem:[#allocation19 + $0x1b4] sm:$0xf0] }
 0x421   : > { %v7356_v13 = vor.u32 %v8235_v9, %v7355_v7 }
 0x423   : > { %4636 = vmatpush.bf16.msra.mxu1 %v7356_v13  ;;  %4658 = vmatpush.bf16.msra.mxu2 %v7272_v61  ;;  %v7429_v61 = vld [vmem:[#allocation19 + $0x48] sm:$0xf0] }
 0x424   : > { %4617 = vmatpush.bf16.msra.mxu0 %v7292_v10 }
 0x426   : > { %v4111_v19 = vld [vmem:[#allocation1 + $0x2] ss:$9 sm:$0xff] }
 0x427   : > { %4116 = vst [vmem:[#allocation1] sm:$0xff] %v9168_v32  ;;  %4637 = vmatpush.bf16.msra.mxu1 %v7348_v62  ;;  %v8193_v62 = vld [vmem:[#allocation19 + $0x64] sm:$0xf0] }
 0x428   : > { %4117 = vst [vmem:[#allocation1 + $0x9] sm:$0xff] %v9174_v34  ;;  %4618 = vmatpush.bf16.msra.mxu0 %v7284_v15  ;;  %v7517_v15 = vld [vmem:[#allocation19 + $0xf8] sm:$0xf0] }
 0x429   : > { %4114 = vst.msk [vmem:[#allocation5 + $0x6] ss:$8 sm:$0x3] %vm8955_vm2, %v4111_v19  ;;  %v7360_v19 = vor.u32 %v8234_v42, %v7357_v14  ;;  %v8194_v14 = vld [vmem:[#allocation19 + $0x74] sm:$0xf]  ;;  %v7520_v29 = vor.u32 %v8210_v25, %v7517_v15 }
 0x42a   : > { %v8184_v25 = vld [vmem:[#allocation19 + $0x24] sm:$0xf]  ;;  %v7413_v15 = vld [vmem:[#allocation19 + $0x28] sm:$0xf0] }
 0x42b   : > { %4674 = vmatpush.bf16.msra.mxu3 %v7360_v19  ;;  %4638 = vmatpush.bf16.msra.mxu1 %v7340_v46  ;;  %v7456_v19 = vor.u32 %v8194_v14, %v7453_v6  ;;  %v8187_v6 = vld [vmem:[#allocation19 + $0x34] sm:$0xf0] }
 0x42c   : > { %4619 = vmatpush.bf16.msra.mxu0 %v7276_v45  ;;  %v7437_v45 = vld [vmem:[#allocation19 + $0x58] sm:$0xf0] }
 0x42d   : > { %4887 = vmatpush.bf16.msrb.mxu2 %v7456_v19 }
 0x42f   : > { %v4119_v57 = vld [vmem:[#allocation1 + $0x3] ss:$9 sm:$0xff]  ;;  %4675 = vmatpush.bf16.msra.mxu3 %v7352_v39 }
 0x430   : > { %4124 = vst [vmem:[#allocation1] sm:$0xff] %v9196_v48  ;;  %4620 = vmatpush.bf16.msra.mxu0 %v7268_v55  ;;  %v8209_v39 = vld [vmem:[#allocation19 + $0xe4] sm:$0xf0]  ;;  %v7501_v55 = vld [vmem:[#allocation19 + $0xd8] sm:$0xf0] }
 0x431   : > { %4125 = vst [vmem:[#allocation1 + $0x9] sm:$0xff] %v9200_v56  ;;  %v7508_v41 = vor.u32 %v8209_v39, %v7507_v38  ;;  %4888 = vmatpush.bf16.msrb.mxu2 %v7448_v36  ;;  %v8201_v38 = vld [vmem:[#allocation19 + $0xa4] sm:$0xf0]  ;;  %v8200_v39 = vld [vmem:[#allocation19 + $0xa4] sm:$0xf] }
 0x432   : > { %4122 = vst.msk [vmem:[#allocation5 + $0x7] ss:$8 sm:$0x3] %vm8955_vm2, %v4119_v57  ;;  %v7332_v57 = vor.u32 %v8229_v17, %v7331_v51  ;;  %v7499_v51 = vld [vmem:[#allocation19 + $0xd0] sm:$0xf]  ;;  %v7436_v17 = vor.u32 %v8191_v49, %v7435_v47  ;;  %v7480_v43 = vor.u32 %v8200_v39, %v7477_v40 }
 0x433   : > { %4676 = vmatpush.bf16.msra.mxu3 %v7344_v50  ;;  %v7440_v50 = vor.u32 %v8190_v44, %v7437_v45  ;;  %v7500_v54 = vor.u32 %v8207_v18, %v7499_v51  ;;  %v8182_v44 = vld [vmem:[#allocation19 + $0x14] sm:$0xf]  ;;  %v7405_v45 = vld [vmem:[#allocation19 + $0x18] sm:$0xf0]  ;;  %v8288_v40 = vld [vmem:[#allocation19 + $0x364] sm:$0xf] }
 0x434   : > { %4639 = vmatpush.bf16.msra.mxu1 %v7332_v57  ;;  %4849 = vmatpush.bf16.msrb.mxu0 %v7452_v22  ;;  %v8188_v57 = vld [vmem:[#allocation19 + $0x44] sm:$0xf]  ;;  %v7484_v22 = vor.u32 %v8203_v2, %v7483_v16  ;;  %v7408_v51 = vor.u32 %v8182_v44, %v7405_v45  ;;  %v7645_v39 = vld [vmem:[#allocation19 + $0x3f8] sm:$0xf0]  ;;  %v7571_v45 = vld [vmem:[#allocation19 + $0x360] sm:$0xf] }
 0x435   : > { %4889 = vmatpush.bf16.msrb.mxu2 %v7440_v50  ;;  %v8196_v16 = vld [vmem:[#allocation19 + $0x84] sm:$0xf] }
 0x437   : > { %4677 = vmatpush.bf16.msra.mxu3 %v7336_v58  ;;  %v7427_v58 = vld [vmem:[#allocation19 + $0x40] sm:$0xf] }
 0x438   : > { %v4127_v33 = vld [vmem:[#allocation1 + $0x3] ss:$9 sm:$0xff]  ;;  %4868 = vmatpush.bf16.msrb.mxu1 %v7516_v12 }
 0x439   : > { %4132 = vst [vmem:[#allocation1] sm:$0xff] %v9168_v32  ;;  %v7485_v12 = vld [vmem:[#allocation19 + $0xb8] sm:$0xf0] }
 0x43a   : > { %4133 = vst [vmem:[#allocation1 + $0x9] sm:$0xff] %v9174_v34  ;;  %v7488_v28 = vor.u32 %v8202_v21, %v7485_v12  ;;  %v7581_v12 = vld [vmem:[#allocation19 + $0x378] sm:$0xf0] }
 0x43b   : > { %4130 = vst.msk [vmem:[#allocation5 + $0x10] ss:$8 sm:$0x3] %vm8955_vm2, %v4127_v33  ;;  %v7443_v33 = vld [vmem:[#allocation19 + $0x60] sm:$0xf]  ;;  %4906 = vmatpush.bf16.msrb.mxu3 %v7520_v29  ;;  %v7416_v29 = vor.u32 %v8184_v25, %v7413_v15 }
 0x43c   : > { %v7444_v37 = vor.u32 %v8193_v62, %v7443_v33  ;;  %4869 = vmatpush.bf16.msrb.mxu1 %v7508_v41  ;;  %v8185_v33 = vld [vmem:[#allocation19 + $0x24] sm:$0xf0]  ;;  %v7579_v25 = vld [vmem:[#allocation19 + $0x370] sm:$0xf] }
 0x43d   : > { %v4933_v62 = vld [vmem:[#allocation5] sm:$0xfc] }
 0x43e   : > { %4850 = vmatpush.bf16.msrb.mxu0 %v7444_v37 }
 0x43f   : > { %4907 = vmatpush.bf16.msrb.mxu3 %v7512_v60 }
 0x440   : > { %4870 = vmatpush.bf16.msrb.mxu1 %v7500_v54 }
 0x441   : > { %v4135_v23 = vld [vmem:[#allocation1 + $0x4] ss:$9 sm:$0xff] }
 0x442   : > { %4141 = vst [vmem:[#allocation1 + $0x9] sm:$0xff] %v9200_v56  ;;  %4851 = vmatpush.bf16.msrb.mxu0 %v7436_v17  ;;  %v8183_v17 = vld [vmem:[#allocation19 + $0x14] sm:$0xf0] }
 0x443   : > { %4138 = vst.msk [vmem:[#allocation5 + $0x11] ss:$8 sm:$0x3] %vm8955_vm2, %v4135_v23  ;;  %v7504_v23 = vor.u32 %v8206_v24, %v7501_v55 }
 0x444   : > { %4140 = vst [vmem:[#allocation1] sm:$0xff] %v9196_v48 }
 0x445   : > { %4908 = vmatpush.bf16.msrb.mxu3 %v7504_v23  ;;  %v8199_v23 = vld [vmem:[#allocation19 + $0x94] sm:$0xf0] }
 0x44b   : > { %v4143_v59 = vld [vmem:[#allocation1 + $0x4] ss:$9 sm:$0xff] }
 0x44c   : > { %4146 = vst.msk [vmem:[#allocation5 + $0x12] ss:$8 sm:$0x3] %vm8955_vm2, %v4143_v59  ;;  %v8189_v59 = vld [vmem:[#allocation19 + $0x44] sm:$0xf0] }
 0x44d   : > { %4148 = vst [vmem:[#allocation1] sm:$0xff] %v9168_v32 }
 0x44e   : > { %4149 = vst [vmem:[#allocation1 + $0x9] sm:$0xff] %v9174_v34 }
 0x455   : > { %v4151_v35 = vld [vmem:[#allocation1 + $0x5] ss:$9 sm:$0xff] }
 0x456   : > { %4154 = vst.msk [vmem:[#allocation5 + $0x13] ss:$8 sm:$0x3] %vm8955_vm2, %v4151_v35  ;;  %v7432_v35 = vor.u32 %v8188_v57, %v7429_v61  ;;  %v7467_v57 = vld [vmem:[#allocation19 + $0x90] sm:$0xf] }
 0x457   : > { %4156 = vst [vmem:[#allocation1] sm:$0xff] %v9196_v48  ;;  %v8198_v61 = vld [vmem:[#allocation19 + $0x94] sm:$0xf] }
 0x458   : > { %4157 = vst [vmem:[#allocation1 + $0x9] sm:$0xff] %v9200_v56  ;;  %4890 = vmatpush.bf16.msrb.mxu2 %v7432_v35  ;;  %v7469_v35 = vld [vmem:[#allocation19 + $0x98] sm:$0xf0] }
 0x45f   : > { %v4159_v20 = vld [vmem:[#allocation1 + $0x5] ss:$9 sm:$0xff] }
 0x460   : > { %4162 = vst.msk [vmem:[#allocation5 + $0x14] ss:$8 sm:$0x3] %vm8955_vm2, %v4159_v20  ;;  %v8205_v20 = vld [vmem:[#allocation19 + $0xc4] sm:$0xf0] }
 0x461   : > { %4164 = vst [vmem:[#allocation1] sm:$0xff] %v9168_v32 }
 0x462   : > { %4165 = vst [vmem:[#allocation1 + $0x9] sm:$0xff] %v9174_v34 }
 0x469   : > { %v4167_v31 = vld [vmem:[#allocation1 + $0x6] ss:$9 sm:$0xff] }
 0x46a   : > { %4170 = vst.msk [vmem:[#allocation5 + $0x15] ss:$8 sm:$0x3] %vm8955_vm2, %v4167_v31  ;;  %v8204_v31 = vld [vmem:[#allocation19 + $0xc4] sm:$0xf] }
 0x46b   : > { %4172 = vst [vmem:[#allocation1] sm:$0xff] %v9196_v48 }
 0x46c   : > { %4173 = vst [vmem:[#allocation1 + $0x9] sm:$0xff] %v9200_v56 }
 0x473   : > { %v4175_v63 = vld [vmem:[#allocation1 + $0x6] ss:$9 sm:$0xff] }
 0x474   : > { %4178 = vst.msk [vmem:[#allocation5 + $0x16] ss:$8 sm:$0x3] %vm8955_vm2, %v4175_v63  ;;  %v4336_v63 = vld [vmem:[#allocation5] sm:$0xfe] }
 0x475   : > { %4180 = vst [vmem:[#allocation1] sm:$0xff] %v9168_v32 }
 0x476   : > { %4181 = vst [vmem:[#allocation1 + $0x9] sm:$0xff] %v9174_v34 }
 0x47d   : > { %v4183_v27 = vld [vmem:[#allocation1 + $0x7] ss:$9 sm:$0xff] }
 0x47e   : > { %4186 = vst.msk [vmem:[#allocation5 + $0x17] ss:$8 sm:$0x3] %vm8955_vm2, %v4183_v27 }
 0x47f   : > { %4188 = vst [vmem:[#allocation1] sm:$0xff] %v9196_v48 }
 0x480   : > { %4189 = vst [vmem:[#allocation1 + $0x9] sm:$0xff] %v9200_v56 }
 0x485   : > { %v9319_v52 = vld [vmem:[#allocation5 + $0x10] sm:$0xff]  ;;  %v9321_v27 = vld [vmem:[#allocation5 + $0x18] sm:$0xff] }
 0x486   : > { %v4937_v18 = vpack.c.bf16 %v9319_v52, %v4933_v62 }
 0x487   : > { %v4191_v1 = vld [vmem:[#allocation1 + $0x7] ss:$9 sm:$0xff] }
 0x488   : > { %4194 = vst.msk [vmem:[#allocation5 + $0x20] ss:$8 sm:$0x3] %vm8955_vm2, %v4191_v1 }
 0x489   : > { %4212 = vst [vmem:[#allocation1] sm:$0xff] %v9188_v4 }
 0x48a   : > { %4213 = vst [vmem:[#allocation1 + $0x9] sm:$0xff] %v9184_v26 }
 0x491   : > { %v4215_v7 = vld [vmem:[#allocation1 + $0x1] ss:$9 sm:$0xff] }
 0x492   : > { %4218 = vst.msk [vmem:[#allocation5 + $0x23] ss:$8 sm:$0x3] %vm8955_vm2, %v4215_v7  ;;  %v7493_v7 = vld [vmem:[#allocation19 + $0xc8] sm:$0xf0] }
 0x493   : > { %4220 = vst [vmem:[#allocation1] sm:$0xff] %v9213_v5 }
 0x494   : > { %4221 = vst [vmem:[#allocation1 + $0x9] sm:$0xff] %v9210_v0 }
 0x49b   : > { %v4223_v32 = vld [vmem:[#allocation1 + $0x1] ss:$9 sm:$0xff] }
 0x49c   : > { %4226 = vst.msk [vmem:[#allocation5 + $0x24] ss:$8 sm:$0x3] %vm8955_vm2, %v4223_v32  ;;  %v9324_v32 = vpack.c.bf16 %v9319_v52, %v4336_v63 }
 0x49d   : > { %4228 = vst [vmem:[#allocation1] sm:$0xff] %v9188_v4 }
 0x49e   : > { %4229 = vst [vmem:[#allocation1 + $0x9] sm:$0xff] %v9184_v26  ;;  %v4412_v14 = vshll.u32 %v9324_v32, 16 }
 0x4a0   : > { %v4414_v47 = vrot.slane %v4412_v14, 1 }
 0x4a5   : > { %v4231_v34 = vld [vmem:[#allocation1 + $0x2] ss:$9 sm:$0xff] }
 0x4a6   : > { %4234 = vst.msk [vmem:[#allocation5 + $0x25] ss:$8 sm:$0x3] %vm8955_vm2, %v4231_v34  ;;  %v7496_v34 = vor.u32 %v8204_v31, %v7493_v7  ;;  %v7395_v7 = vld [vmem:[#allocation19] sm:$0xf] }
 0x4a7   : > { %4236 = vst [vmem:[#allocation1] sm:$0xff] %v9213_v5 }
 0x4a8   : > { %4237 = vst [vmem:[#allocation1 + $0x9] sm:$0xff] %v9210_v0  ;;  %4909 = vmatpush.bf16.msrb.mxu3 %v7496_v34  ;;  %v5013_v34 = vrot.slane %v4937_v18, 1  ;;  %v4934_v18 = vld [vmem:[#allocation5 + $0x8] sm:$0xfc] }
 0x4ac   : > { %4910 = vmatpush.bf16.msrb.mxu3 %v7488_v28  ;;  %v8291_v28 = vld [vmem:[#allocation19 + $0x374] sm:$0xf0] }
 0x4ad   : > { %v7580_v62 = vor.u32 %v8291_v28, %v7579_v25 }
 0x4af   : > { %v4239_v48 = vld [vmem:[#allocation1 + $0x2] ss:$9 sm:$0xff] }
 0x4b0   : > { %4242 = vst.msk [vmem:[#allocation5 + $0x26] ss:$8 sm:$0x3] %vm8955_vm2, %v4239_v48  ;;  %v4337_v48 = vld [vmem:[#allocation5 + $0x8] sm:$0xfe]  ;;  %4911 = vmatpush.bf16.msrb.mxu3 %v7480_v43 }
 0x4b1   : > { %4244 = vst [vmem:[#allocation1] sm:$0xff] %v9188_v4 }
 0x4b2   : > { %4245 = vst [vmem:[#allocation1 + $0x9] sm:$0xff] %v9184_v26 }
 0x4b9   : > { %v4247_v56 = vld [vmem:[#allocation1 + $0x3] ss:$9 sm:$0xff] }
 0x4ba   : > { %4250 = vst.msk [vmem:[#allocation5 + $0x27] ss:$8 sm:$0x3] %vm8955_vm2, %v4247_v56  ;;  %v9327_v56 = vpack.c.bf16 %v9321_v27, %v4337_v48 }
 0x4bb   : > { %4252 = vst [vmem:[#allocation1] sm:$0xff] %v9213_v5 }
 0x4bc   : > { %4253 = vst [vmem:[#allocation1 + $0x9] sm:$0xff] %v9210_v0  ;;  %v4424_v19 = vshll.u32 %v9327_v56, 16  ;;  %v4422_v31 = vshrl.u32 %v9327_v56, 16 }
 0x4be   : > { %v4426_v50 = vrot.slane %v4424_v19, 1  ;;  %v7461_v19 = vld [vmem:[#allocation19 + $0x88] sm:$0xf0] }
 0x4bf   : > { %v7464_v21 = vor.u32 %v8196_v16, %v7461_v19  ;;  %v7555_v16 = vld [vmem:[#allocation19 + $0x340] sm:$0xf]  ;;  %v8285_v19 = vld [vmem:[#allocation19 + $0x344] sm:$0xf0] }
 0x4c1   : > { %v4328_v36 = vld [vmem:[#allocation5 + $0x20] sm:$0xff]  ;;  %v4329_v37 = vld [vmem:[#allocation5 + $0x28] sm:$0xff] }
 0x4c3   : > { %v4255_v10 = vld [vmem:[#allocation1 + $0x3] ss:$9 sm:$0xff] }
 0x4c4   : > { %4258 = vst.msk [vmem:[#allocation5 + $0x30] ss:$8 sm:$0x3] %vm8955_vm2, %v4255_v10 }
 0x4c5   : > { %4260 = vst [vmem:[#allocation1] sm:$0xff] %v9188_v4 }
 0x4c6   : > { %4261 = vst [vmem:[#allocation1 + $0x9] sm:$0xff] %v9184_v26 }
 0x4cd   : > { %v4263_v9 = vld [vmem:[#allocation1 + $0x4] ss:$9 sm:$0xff] }
 0x4ce   : > { %4266 = vst.msk [vmem:[#allocation5 + $0x31] ss:$8 sm:$0x3] %vm8955_vm2, %v4263_v9  ;;  %v8186_v9 = vld [vmem:[#allocation19 + $0x34] sm:$0xf] }
 0x4cf   : > { %4268 = vst [vmem:[#allocation1] sm:$0xff] %v9213_v5 }
 0x4d0   : > { %4269 = vst [vmem:[#allocation1 + $0x9] sm:$0xff] %v9210_v0 }
 0x4d7   : > { %v4271_v3 = vld [vmem:[#allocation1 + $0x4] ss:$9 sm:$0xff] }
 0x4d8   : > { %4274 = vst.msk [vmem:[#allocation5 + $0x32] ss:$8 sm:$0x3] %vm8955_vm2, %v4271_v3  ;;  %v7421_v3 = vld [vmem:[#allocation19 + $0x38] sm:$0xf0] }
 0x4d9   : > { %4276 = vst [vmem:[#allocation1] sm:$0xff] %v9188_v4 }
 0x4da   : > { %4277 = vst [vmem:[#allocation1 + $0x9] sm:$0xff] %v9184_v26 }
 0x4e1   : > { %v4279_v11 = vld [vmem:[#allocation1 + $0x5] ss:$9 sm:$0xff] }
 0x4e2   : > { %4282 = vst.msk [vmem:[#allocation5 + $0x33] ss:$8 sm:$0x3] %vm8955_vm2, %v4279_v11  ;;  %v4410_v11 = vshrl.u32 %v9324_v32, 16 }
 0x4e3   : > { %4284 = vst [vmem:[#allocation1] sm:$0xff] %v9213_v5 }
 0x4e4   : > { %4285 = vst [vmem:[#allocation1 + $0x9] sm:$0xff] %v9210_v0 }
 0x4eb   : > { %v4287_v13 = vld [vmem:[#allocation1 + $0x5] ss:$9 sm:$0xff] }
 0x4ec   : > { %4290 = vst.msk [vmem:[#allocation5 + $0x34] ss:$8 sm:$0x3] %vm8955_vm2, %v4287_v13  ;;  %v7424_v13 = vor.u32 %v8186_v9, %v7421_v3  ;;  %v4427_v3 = vor.u32 %v4426_v50, %v4422_v31 }
 0x4ed   : > { %4292 = vst [vmem:[#allocation1] sm:$0xff] %v9188_v4 }
 0x4ee   : > { %4293 = vst [vmem:[#allocation1 + $0x9] sm:$0xff] %v9184_v26  ;;  %4891 = vmatpush.bf16.msrb.mxu2 %v7424_v13  ;;  %v8181_v13 = vld [vmem:[#allocation19 + $0x4] sm:$0xf0] }
 0x4ef   : > { %v7396_v14 = vor.u32 %v8181_v13, %v7395_v7  ;;  %v4938_v7 = vpack.c.bf16 %v9321_v27, %v4934_v18  ;;  %v7603_v18 = vld [vmem:[#allocation19 + $0x3a0] sm:$0xf] }
 0x4f1   : > { %v5016_v25 = vrot.slane %v4938_v7, 1  ;;  %v8294_v7 = vld [vmem:[#allocation19 + $0x394] sm:$0xf] }
 0x4f2   : > { %4892 = vmatpush.bf16.msrb.mxu2 %v7416_v29  ;;  %v7643_v29 = vld [vmem:[#allocation19 + $0x3f0] sm:$0xf] }
 0x4f5   : > { %v4295_v42 = vld [vmem:[#allocation1 + $0x6] ss:$9 sm:$0xff] }
 0x4f6   : > { %4298 = vst.msk [vmem:[#allocation5 + $0x35] ss:$8 sm:$0x3] %vm8955_vm2, %v4295_v42  ;;  %v7419_v42 = vld [vmem:[#allocation19 + $0x30] sm:$0xf]  ;;  %4893 = vmatpush.bf16.msrb.mxu2 %v7408_v51 }
 0x4f7   : > { %4300 = vst [vmem:[#allocation1] sm:$0xff] %v9213_v5  ;;  %v7420_v53 = vor.u32 %v8187_v6, %v7419_v42  ;;  %v8197_v6 = vld [vmem:[#allocation19 + $0x84] sm:$0xf0] }
 0x4f8   : > { %4301 = vst [vmem:[#allocation1 + $0x9] sm:$0xff] %v9210_v0  ;;  %v7460_v2 = vor.u32 %v8197_v6, %v7459_v8  ;;  %v8305_v51 = vld [vmem:[#allocation19 + $0x3e4] sm:$0xf0]  ;;  %v7629_v8 = vld [vmem:[#allocation19 + $0x3d8] sm:$0xf0] }
 0x4f9   : > { %v7557_v6 = vld [vmem:[#allocation19 + $0x348] sm:$0xf0] }
 0x4ff   : > { %v4303_v46 = vld [vmem:[#allocation1 + $0x6] ss:$9 sm:$0xff] }
 0x500   : > { %4306 = vst.msk [vmem:[#allocation5 + $0x36] ss:$8 sm:$0x3] %vm8955_vm2, %v4303_v46  ;;  %v7403_v46 = vld [vmem:[#allocation19 + $0x10] sm:$0xf] }
 0x501   : > { %4308 = vst [vmem:[#allocation1] sm:$0xff] %v9188_v4  ;;  %v7491_v4 = vld [vmem:[#allocation19 + $0xc0] sm:$0xf]  ;;  %v7404_v55 = vor.u32 %v8183_v17, %v7403_v46  ;;  %v8289_v46 = vld [vmem:[#allocation19 + $0x364] sm:$0xf0] }
 0x502   : > { %4309 = vst [vmem:[#allocation1 + $0x9] sm:$0xff] %v9184_v26  ;;  %v7428_v26 = vor.u32 %v8189_v59, %v7427_v58  ;;  %v7492_v1 = vor.u32 %v8205_v20, %v7491_v4  ;;  %v7468_v59 = vor.u32 %v8199_v23, %v7467_v57  ;;  %v8180_v4 = vld [vmem:[#allocation19 + $0x4] sm:$0xf]  ;;  %v7572_v50 = vor.u32 %v8289_v46, %v7571_v45  ;;  %v7637_v57 = vld [vmem:[#allocation19 + $0x3e8] sm:$0xf0] }
 0x503   : > { %v8304_v17 = vld [vmem:[#allocation19 + $0x3e4] sm:$0xf]  ;;  %v8286_v23 = vld [vmem:[#allocation19 + $0x354] sm:$0xf]  ;;  %v7613_v46 = vld [vmem:[#allocation19 + $0x3b8] sm:$0xf0] }
 0x504   : > { %4852 = vmatpush.bf16.msrb.mxu0 %v7428_v26  ;;  %4871 = vmatpush.bf16.msrb.mxu1 %v7492_v1  ;;  %v7472_v26 = vor.u32 %v8198_v61, %v7469_v35  ;;  %v7397_v1 = vld [vmem:[#allocation19 + $0x8] sm:$0xf0]  ;;  %v7565_v61 = vld [vmem:[#allocation19 + $0x358] sm:$0xf0]  ;;  %v7563_v35 = vld [vmem:[#allocation19 + $0x350] sm:$0xf] }
 0x505   : > { %v7400_v42 = vor.u32 %v8180_v4, %v7397_v1  ;;  %v8287_v4 = vld [vmem:[#allocation19 + $0x354] sm:$0xf0]  ;;  %v8302_v1 = vld [vmem:[#allocation19 + $0x3d4] sm:$0xf] }
 0x506   : > { %4912 = vmatpush.bf16.msrb.mxu3 %v7472_v26  ;;  %v7564_v31 = vor.u32 %v8287_v4, %v7563_v35  ;;  %v8303_v26 = vld [vmem:[#allocation19 + $0x3d4] sm:$0xf0]  ;;  %v8298_v45 = vld [vmem:[#allocation19 + $0x3b4] sm:$0xf]  ;;  %v7533_v35 = vld [vmem:[#allocation19 + $0x318] sm:$0xf0] }
 0x507   : > { %4894 = vmatpush.bf16.msrb.mxu2 %v7400_v42  ;;  %v7632_v42 = vor.u32 %v8302_v1, %v7629_v8  ;;  %v8295_v1 = vld [vmem:[#allocation19 + $0x394] sm:$0xf0]  ;;  %v8276_v8 = vld [vmem:[#allocation19 + $0x304] sm:$0xf] }
 0x508   : > { %4853 = vmatpush.bf16.msrb.mxu0 %v7420_v53  ;;  %4872 = vmatpush.bf16.msrb.mxu1 %v7484_v22  ;;  %v8290_v22 = vld [vmem:[#allocation19 + $0x374] sm:$0xf] }
 0x509   : > { %v4311_v10 = vld [vmem:[#allocation1 + $0x7] ss:$9 sm:$0xff]  ;;  %v7584_v15 = vor.u32 %v8290_v22, %v7581_v12 }
 0x50a   : > { %4314 = vst.msk [vmem:[#allocation5 + $0x37] ss:$8 sm:$0x3] %vm8955_vm2, %v4311_v10  ;;  %v4415_v10 = vor.u32 %v4414_v47, %v4410_v11  ;;  %4913 = vmatpush.bf16.msrb.mxu3 %v7464_v21  ;;  %v8301_v21 = vld [vmem:[#allocation19 + $0x3c4] sm:$0xf0] }
 0x50b   : > { %4316 = vst [vmem:[#allocation1] sm:$0xff] %v9213_v5  ;;  %v7475_v5 = vld [vmem:[#allocation19 + $0xa0] sm:$0xf]  ;;  %v8300_v22 = vld [vmem:[#allocation19 + $0x3c4] sm:$0xf] }
 0x50c   : > { %4317 = vst [vmem:[#allocation1 + $0x9] sm:$0xff] %v9210_v0  ;;  %v7412_v0 = vor.u32 %v8185_v33, %v7411_v30  ;;  %v7476_v41 = vor.u32 %v8201_v38, %v7475_v5  ;;  %v8307_v30 = vld [vmem:[#allocation19 + $0x3f4] sm:$0xf0]  ;;  %v7621_v12 = vld [vmem:[#allocation19 + $0x3c8] sm:$0xf0] }
 0x50e   : > { %4854 = vmatpush.bf16.msrb.mxu0 %v7412_v0  ;;  %4873 = vmatpush.bf16.msrb.mxu1 %v7476_v41  ;;  %v7573_v41 = vld [vmem:[#allocation19 + $0x368] sm:$0xf0] }
 0x50f   : > { %v7576_v44 = vor.u32 %v8288_v40, %v7573_v41  ;;  %v7611_v40 = vld [vmem:[#allocation19 + $0x3b0] sm:$0xf]  ;;  %v8299_v41 = vld [vmem:[#allocation19 + $0x3b4] sm:$0xf0] }
 0x511   : > { %v4330_v60 = vld [vmem:[#allocation5 + $0x30] sm:$0xff]  ;;  %v4331_v49 = vld [vmem:[#allocation5 + $0x38] sm:$0xff] }
 0x512   : > { %v9337_v24 = vpack.c.bf16 %v4330_v60, %v4328_v36  ;;  %v9339_v54 = vpack.c.bf16 %v4331_v49, %v4329_v37  ;;  %4855 = vmatpush.bf16.msrb.mxu0 %v7404_v55  ;;  %4874 = vmatpush.bf16.msrb.mxu1 %v7468_v59  ;;  %v7644_v36 = vor.u32 %v8307_v30, %v7643_v29  ;;  %v8306_v37 = vld [vmem:[#allocation19 + $0x3f4] sm:$0xf]  ;;  %v7635_v60 = vld [vmem:[#allocation19 + $0x3e0] sm:$0xf] }
 0x513   : > { %v4319_v58 = vld [vmem:[#allocation1 + $0x7] ss:$9 sm:$0xff]  ;;  %v7648_v43 = vor.u32 %v8306_v37, %v7645_v39  ;;  %v7636_v55 = vor.u32 %v8305_v51, %v7635_v60  ;;  %v7640_v59 = vor.u32 %v8304_v17, %v7637_v57  ;;  %v8283_v39 = vld [vmem:[#allocation19 + $0x334] sm:$0xf0] }
 0x514   : > { %v4417_v20 = vshll.u32 %v9337_v24, 16  ;;  %v4429_v63 = vshll.u32 %v9339_v54, 16  ;;  %4322 = vst.msk [vmem:[#allocation5 + $0x40] ss:$8 sm:$0x3] %vm8955_vm2, %v4319_v58  ;;  %v5014_v48 = vrot.slane %v9337_v24, 1 }
 0x515   : > { %v4433_v58 = vshrl.u32 %v9337_v24, 16  ;;  %v8280_v60 = vld [vmem:[#allocation19 + $0x324] sm:$0xf]  ;;  %v7539_v51 = vld [vmem:[#allocation19 + $0x320] sm:$0xf] }
 0x516   : > { %v9349_v9 = vrot.slane %v4417_v20, 1  ;;  %v9351_v56 = vrot.slane %v4429_v63, 1  ;;  %v9356_v53 = vsel %vm3619_vm4, %v5013_v34, %v5014_v48  ;;  %4856 = vmatpush.bf16.msrb.mxu0 %v7396_v14  ;;  %4875 = vmatpush.bf16.msrb.mxu1 %v7460_v2  ;;  %v7568_v20 = vor.u32 %v8286_v23, %v7565_v61  ;;  %v7627_v63 = vld [vmem:[#allocation19 + $0x3d0] sm:$0xf]  ;;  %v8284_v14 = vld [vmem:[#allocation19 + $0x344] sm:$0xf] }
 0x517   : > { %v7628_v13 = vor.u32 %v8303_v26, %v7627_v63  ;;  %v7619_v2 = vld [vmem:[#allocation19 + $0x3c0] sm:$0xf]  ;;  %v7560_v30 = vor.u32 %v8284_v14, %v7557_v6  ;;  %v8281_v17 = vld [vmem:[#allocation19 + $0x324] sm:$0xf0]  ;;  %v8296_v57 = vld [vmem:[#allocation19 + $0x3a4] sm:$0xf] }
 0x518   : > { %v9360_v32 = vsel %vm3069_vm3, %v4415_v10, %v9349_v9  ;;  %v9364_v11 = vsel %vm3069_vm3, %v4427_v3, %v9351_v56  ;;  %v4441_v10 = vshrl.u32 %v9339_v54, 16  ;;  %v4435_v28 = vor.u32 %v4433_v58, %v9349_v9  ;;  %v8282_v9 = vld [vmem:[#allocation19 + $0x334] sm:$0xf]  ;;  %v7605_v23 = vld [vmem:[#allocation19 + $0x3a8] sm:$0xf0] }
 0x519   : > { %4621 = vmatmul.bf16.vlgmr.msra.gmra.mxu0 %v9360_v32  ;;  %4640 = vmatmul.bf16.vlgmr.msra.gmra.mxu1 %v9364_v11  ;;  %v7620_v37 = vor.u32 %v8301_v21, %v7619_v2  ;;  %v7540_v58 = vor.u32 %v8281_v17, %v7539_v51  ;;  %v8279_v63 = vld [vmem:[#allocation19 + $0x314] sm:$0xf0]  ;;  %v7595_v26 = vld [vmem:[#allocation19 + $0x390] sm:$0xf]  ;;  %v7587_v2 = vld [vmem:[#allocation19 + $0x380] sm:$0xf] }
 0x51a   : > { %4659 = vmatmul.bf16.vlgmr.msra.gmra.mxu2 %v9360_v32  ;;  %4678 = vmatmul.bf16.vlgmr.msra.gmra.mxu3 %v9364_v11  ;;  %v4443_v29 = vor.u32 %v4441_v10, %v9351_v56  ;;  %v7549_v56 = vld [vmem:[#allocation19 + $0x338] sm:$0xf0]  ;;  %v4324_v10 = vld [vmem:[#allocation5] sm:$0xff]  ;;  %v7596_v14 = vor.u32 %v8295_v1, %v7595_v26  ;;  %v8271_v26 = vld [vmem:[#allocation19 + $0x2d4] sm:$0xf0] }
 0x51b   : > { %v4338_v33 = vld [vmem:[#allocation5 + $0x40] sm:$0x1]  ;;  %v4339_v5 = vld [vmem:[#allocation5 + $0x48] sm:$0x1]  ;;  %5225 = vmatpush.bf16.msra.mxu2 %v7584_v15  ;;  %5187 = vmatpush.bf16.msra.mxu0 %v7580_v62  ;;  %v5017_v15 = vrot.slane %v9339_v54, 1 }
 0x51c   : > { %v4342_v0 = vpack.c.bf16 %v4338_v33, %v4338_v33  ;;  %v4343_v38 = vpack.c.bf16 %v4339_v5, %v4339_v5  ;;  %5206 = vmatpush.bf16.msra.mxu1 %v7644_v36  ;;  %5244 = vmatpush.bf16.msra.mxu3 %v7648_v43  ;;  %v7556_v33 = vor.u32 %v8285_v19, %v7555_v16  ;;  %v7523_v16 = vld [vmem:[#allocation19 + $0x300] sm:$0xf]  ;;  %v8277_v19 = vld [vmem:[#allocation19 + $0x304] sm:$0xf0]  ;;  %v8270_v1 = vld [vmem:[#allocation19 + $0x2d4] sm:$0xf] }
 0x51d   : > { %v9379_v5 = vsel %vm3619_vm4, %v5016_v25, %v5017_v15  ;;  %v7552_v43 = vor.u32 %v8282_v9, %v7549_v56  ;;  %v8293_v21 = vld [vmem:[#allocation19 + $0x384] sm:$0xf0]  ;;  %v4332_v25 = vpack.c.bf16 %v9319_v52, %v4324_v10  ;;  %v8258_v9 = vld [vmem:[#allocation19 + $0x274] sm:$0xf]  ;;  %v7709_v56 = vld [vmem:[#allocation19 + $0x278] sm:$0xf0] }
 0x51e   : > { %v4437_v47 = vshll.u32 %v4342_v0, 16  ;;  %v4445_v49 = vshll.u32 %v4343_v38, 16  ;;  %v7624_v0 = vor.u32 %v8300_v22, %v7621_v12  ;;  %v7547_v38 = vld [vmem:[#allocation19 + $0x330] sm:$0xf]  ;;  %v8292_v22 = vld [vmem:[#allocation19 + $0x384] sm:$0xf]  ;;  %v7712_v52 = vor.u32 %v8258_v9, %v7709_v56 }
 0x51f   : > { %5226 = vmatpush.bf16.msra.mxu2 %v7576_v44  ;;  %5188 = vmatpush.bf16.msra.mxu0 %v7572_v50  ;;  %v7548_v44 = vor.u32 %v8283_v39, %v7547_v38  ;;  %v7541_v50 = vld [vmem:[#allocation19 + $0x328] sm:$0xf0]  ;;  %v7707_v38 = vld [vmem:[#allocation19 + $0x270] sm:$0xf]  ;;  %v8259_v39 = vld [vmem:[#allocation19 + $0x274] sm:$0xf0] }
 0x520   : > { %v4439_v34 = vrot.slane %v4437_v47, 1  ;;  %v4447_v3 = vrot.slane %v4445_v49, 1  ;;  %5207 = vmatpush.bf16.msra.mxu1 %v7636_v55  ;;  %5245 = vmatpush.bf16.msra.mxu3 %v7640_v59  ;;  %v7612_v47 = vor.u32 %v8299_v41, %v7611_v40  ;;  %v7616_v49 = vor.u32 %v8298_v45, %v7613_v46  ;;  %v8297_v55 = vld [vmem:[#allocation19 + $0x3a4] sm:$0xf0]  ;;  %v8278_v59 = vld [vmem:[#allocation19 + $0x314] sm:$0xf] }
 0x521   : > { %v7544_v61 = vor.u32 %v8280_v60, %v7541_v50  ;;  %v7604_v4 = vor.u32 %v8297_v55, %v7603_v18  ;;  %v7589_v12 = vld [vmem:[#allocation19 + $0x388] sm:$0xf0]  ;;  %v8275_v40 = vld [vmem:[#allocation19 + $0x2f4] sm:$0xf0]  ;;  %v7708_v41 = vor.u32 %v8259_v39, %v7707_v38  ;;  %v7773_v45 = vld [vmem:[#allocation19 + $0x2f8] sm:$0xf0] }
 0x522   : > { %v9382_v62 = vsel %vm3069_vm3, %v4435_v28, %v4439_v34  ;;  %v9385_v36 = vsel %vm3069_vm3, %v4443_v29, %v4447_v3  ;;  %v7597_v34 = vld [vmem:[#allocation19 + $0x398] sm:$0xf0]  ;;  %v7536_v3 = vor.u32 %v8278_v59, %v7533_v35  ;;  %v4325_v28 = vld [vmem:[#allocation5 + $0x8] sm:$0xff]  ;;  %v8256_v46 = vld [vmem:[#allocation19 + $0x264] sm:$0xf] }
 0x523   : > { %5227 = vmatpush.bf16.msra.mxu2 %v7568_v20  ;;  %5189 = vmatpush.bf16.msra.mxu0 %v7564_v31  ;;  %v7608_v20 = vor.u32 %v8296_v57, %v7605_v23  ;;  %v7531_v31 = vld [vmem:[#allocation19 + $0x310] sm:$0xf]  ;;  %v7600_v6 = vor.u32 %v8294_v7, %v7597_v34  ;;  %v4333_v29 = vpack.c.bf16 %v9321_v27, %v4325_v28  ;;  %v8257_v50 = vld [vmem:[#allocation19 + $0x264] sm:$0xf0]  ;;  %v7763_v18 = vld [vmem:[#allocation19 + $0x2e0] sm:$0xf] }
 0x524   : > { %5208 = vmatpush.bf16.msra.mxu1 %v7628_v13  ;;  %5246 = vmatpush.bf16.msra.mxu3 %v7632_v42  ;;  %v7532_v13 = vor.u32 %v8279_v63, %v7531_v31  ;;  %v7525_v42 = vld [vmem:[#allocation19 + $0x308] sm:$0xf0]  ;;  %v7771_v27 = vld [vmem:[#allocation19 + $0x2f0] sm:$0xf]  ;;  %v8273_v55 = vld [vmem:[#allocation19 + $0x2e4] sm:$0xf0] }
 0x525   : > { %v8272_v57 = vld [vmem:[#allocation19 + $0x2e4] sm:$0xf]  ;;  %v7764_v23 = vor.u32 %v8273_v55, %v7763_v18  ;;  %v7693_v59 = vld [vmem:[#allocation19 + $0x258] sm:$0xf0]  ;;  %v7755_v31 = vld [vmem:[#allocation19 + $0x2d0] sm:$0xf] }
 0x526   : > { %v7757_v7 = vld [vmem:[#allocation19 + $0x2d8] sm:$0xf0]  ;;  %v7756_v10 = vor.u32 %v8271_v26, %v7755_v31  ;;  %v8250_v28 = vld [vmem:[#allocation19 + $0x234] sm:$0xf]  ;;  %v8267_v9 = vld [vmem:[#allocation19 + $0x2b4] sm:$0xf0] }
 0x527   : > { %5228 = vmatpush.bf16.msra.mxu2 %v7560_v30  ;;  %5190 = vmatpush.bf16.msra.mxu0 %v7556_v33  ;;  %v7528_v30 = vor.u32 %v8276_v8, %v7525_v42  ;;  %v7524_v33 = vor.u32 %v8277_v19, %v7523_v16  ;;  %v7685_v8 = vld [vmem:[#allocation19 + $0x248] sm:$0xf0]  ;;  %v7683_v42 = vld [vmem:[#allocation19 + $0x240] sm:$0xf]  ;;  %v8269_v16 = vld [vmem:[#allocation19 + $0x2c4] sm:$0xf0] }
 0x528   : > { %5209 = vmatpush.bf16.msra.mxu1 %v7620_v37  ;;  %5247 = vmatpush.bf16.msra.mxu3 %v7624_v0  ;;  %v7588_v37 = vor.u32 %v8293_v21, %v7587_v2  ;;  %v7592_v0 = vor.u32 %v8292_v22, %v7589_v12  ;;  %v8268_v19 = vld [vmem:[#allocation19 + $0x2c4] sm:$0xf]  ;;  %v7749_v2 = vld [vmem:[#allocation19 + $0x2c8] sm:$0xf0]  ;;  %v7741_v39 = vld [vmem:[#allocation19 + $0x2b8] sm:$0xf0] }
 0x529   : > { %4626 = vmatmul.bf16.gmra.mxu0 %v9382_v62  ;;  %4645 = vmatmul.bf16.gmra.mxu1 %v9385_v36  ;;  %v8244_v31 = vld [vmem:[#allocation19 + $0x204] sm:$0xf] }
 0x52a   : > { %4664 = vmatmul.bf16.gmra.mxu2 %v9382_v62  ;;  %4683 = vmatmul.bf16.gmra.mxu3 %v9385_v36 }
 0x52b   : > { %5229 = vmatpush.bf16.msra.mxu2 %v7552_v43  ;;  %5191 = vmatpush.bf16.msra.mxu0 %v7548_v44  ;;  %v7772_v43 = vor.u32 %v8275_v40, %v7771_v27  ;;  %v8274_v44 = vld [vmem:[#allocation19 + $0x2f4] sm:$0xf]  ;;  %v8248_v27 = vld [vmem:[#allocation19 + $0x224] sm:$0xf] }
 0x52c   : > { %5210 = vmatpush.bf16.msra.mxu1 %v7612_v47  ;;  %5248 = vmatpush.bf16.msra.mxu3 %v7616_v49  ;;  %v7776_v60 = vor.u32 %v8274_v44, %v7773_v45  ;;  %v7701_v47 = vld [vmem:[#allocation19 + $0x268] sm:$0xf0]  ;;  %v7699_v49 = vld [vmem:[#allocation19 + $0x260] sm:$0xf]  ;;  %v8249_v44 = vld [vmem:[#allocation19 + $0x224] sm:$0xf0] }
 0x52d   : > { %v7704_v51 = vor.u32 %v8256_v46, %v7701_v47  ;;  %v7700_v17 = vor.u32 %v8257_v50, %v7699_v49  ;;  %v7731_v45 = vld [vmem:[#allocation19 + $0x2a0] sm:$0xf]  ;;  %v8265_v46 = vld [vmem:[#allocation19 + $0x2a4] sm:$0xf0]  ;;  %v7733_v50 = vld [vmem:[#allocation19 + $0x2a8] sm:$0xf0] }
 0x52e   : > { %v7732_v18 = vor.u32 %v8265_v46, %v7731_v45 }
 0x52f   : > { %5230 = vmatpush.bf16.msra.mxu2 %v7544_v61  ;;  %5192 = vmatpush.bf16.msra.mxu0 %v7540_v58  ;;  %v7765_v61 = vld [vmem:[#allocation19 + $0x2e8] sm:$0xf0]  ;;  %v8254_v58 = vld [vmem:[#allocation19 + $0x254] sm:$0xf] }
 0x530   : > { %5211 = vmatpush.bf16.msra.mxu1 %v7604_v4  ;;  %5249 = vmatpush.bf16.msra.mxu3 %v7608_v20  ;;  %v7768_v35 = vor.u32 %v8272_v57, %v7765_v61  ;;  %v7691_v4 = vld [vmem:[#allocation19 + $0x250] sm:$0xf]  ;;  %v8255_v20 = vld [vmem:[#allocation19 + $0x254] sm:$0xf0]  ;;  %v7696_v63 = vor.u32 %v8254_v58, %v7693_v59  ;;  %v8262_v59 = vld [vmem:[#allocation19 + $0x294] sm:$0xf] }
 0x531   : > { %v7692_v34 = vor.u32 %v8255_v20, %v7691_v4  ;;  %v7659_v57 = vld [vmem:[#allocation19 + $0x210] sm:$0xf]  ;;  %v8263_v58 = vld [vmem:[#allocation19 + $0x294] sm:$0xf0] }
 0x532   : > { %v7723_v61 = vld [vmem:[#allocation19 + $0x290] sm:$0xf] }
 0x533   : > { %5231 = vmatpush.bf16.msra.mxu2 %v7536_v3  ;;  %5193 = vmatpush.bf16.msra.mxu0 %v7532_v13  ;;  %v7760_v3 = vor.u32 %v8270_v1, %v7757_v7  ;;  %v8252_v13 = vld [vmem:[#allocation19 + $0x244] sm:$0xf]  ;;  %v7724_v26 = vor.u32 %v8263_v58, %v7723_v61  ;;  %v7651_v7 = vld [vmem:[#allocation19 + $0x200] sm:$0xf] }
 0x534   : > { %5212 = vmatpush.bf16.msra.mxu1 %v7596_v14  ;;  %5250 = vmatpush.bf16.msra.mxu3 %v7600_v6  ;;  %v8253_v14 = vld [vmem:[#allocation19 + $0x244] sm:$0xf0]  ;;  %v7747_v6 = vld [vmem:[#allocation19 + $0x2c0] sm:$0xf]  ;;  %v7688_v21 = vor.u32 %v8252_v13, %v7685_v8  ;;  %v8260_v13 = vld [vmem:[#allocation19 + $0x284] sm:$0xf] }
 0x535   : > { %v7684_v22 = vor.u32 %v8253_v14, %v7683_v42  ;;  %v7748_v12 = vor.u32 %v8269_v16, %v7747_v6  ;;  %v7717_v8 = vld [vmem:[#allocation19 + $0x288] sm:$0xf0] }
 0x536   : > { %v7720_v16 = vor.u32 %v8260_v13, %v7717_v8 }
 0x537   : > { %5232 = vmatpush.bf16.msra.mxu2 %v7528_v30  ;;  %5194 = vmatpush.bf16.msra.mxu0 %v7524_v33  ;;  %v7675_v30 = vld [vmem:[#allocation19 + $0x230] sm:$0xf] }
 0x538   : > { %5213 = vmatpush.bf16.msra.mxu1 %v7588_v37  ;;  %5251 = vmatpush.bf16.msra.mxu3 %v7592_v0  ;;  %v8251_v37 = vld [vmem:[#allocation19 + $0x234] sm:$0xf0]  ;;  %v7739_v0 = vld [vmem:[#allocation19 + $0x2b0] sm:$0xf] }
 0x539   : > { %4857 = vmatmul.bf16.vlgmr.msrb.gmra.mxu0 %v4332_v25  ;;  %4876 = vmatmul.bf16.vlgmr.msrb.gmra.mxu1 %v4333_v29  ;;  %v7676_v56 = vor.u32 %v8251_v37, %v7675_v30  ;;  %v7740_v38 = vor.u32 %v8267_v9, %v7739_v0 }
 0x53a   : > { %4895 = vmatmul.bf16.vlgmr.msrb.gmra.mxu2 %v4332_v25  ;;  %4914 = vmatmul.bf16.vlgmr.msrb.gmra.mxu3 %v4333_v29  ;;  %v7752_v25 = vor.u32 %v8268_v19, %v7749_v2  ;;  %v7677_v29 = vld [vmem:[#allocation19 + $0x238] sm:$0xf0]  ;;  %v4935_v19 = vld [vmem:[#allocation5 + $0x40] sm:$0x3]  ;;  %v4936_v2 = vld [vmem:[#allocation5 + $0x48] sm:$0x3] }
 0x53b   : > { %5461 = vmatpush.bf16.msrb.mxu2 %v7712_v52  ;;  %5423 = vmatpush.bf16.msrb.mxu0 %v7708_v41  ;;  %v7680_v33 = vor.u32 %v8250_v28, %v7677_v29  ;;  %v8266_v52 = vld [vmem:[#allocation19 + $0x2b4] sm:$0xf]  ;;  %v7669_v41 = vld [vmem:[#allocation19 + $0x228] sm:$0xf0] }
 0x53c   : > { %5442 = vmatpush.bf16.msrb.mxu1 %v7772_v43  ;;  %5480 = vmatpush.bf16.msrb.mxu3 %v7776_v60  ;;  %v7744_v40 = vor.u32 %v8266_v52, %v7741_v39  ;;  %v7667_v43 = vld [vmem:[#allocation19 + $0x220] sm:$0xf]  ;;  %v8264_v60 = vld [vmem:[#allocation19 + $0x2a4] sm:$0xf]  ;;  %v7672_v47 = vor.u32 %v8248_v27, %v7669_v41 }
 0x53d   : > { %v7668_v49 = vor.u32 %v8249_v44, %v7667_v43  ;;  %v7736_v55 = vor.u32 %v8264_v60, %v7733_v50 }
 0x53f   : > { %5462 = vmatpush.bf16.msrb.mxu2 %v7704_v51  ;;  %5424 = vmatpush.bf16.msrb.mxu0 %v7700_v17  ;;  %v8246_v51 = vld [vmem:[#allocation19 + $0x214] sm:$0xf]  ;;  %v7661_v17 = vld [vmem:[#allocation19 + $0x218] sm:$0xf0] }
 0x540   : > { %5443 = vmatpush.bf16.msrb.mxu1 %v7764_v23  ;;  %5481 = vmatpush.bf16.msrb.mxu3 %v7768_v35  ;;  %v8247_v23 = vld [vmem:[#allocation19 + $0x214] sm:$0xf0]  ;;  %v7725_v35 = vld [vmem:[#allocation19 + $0x298] sm:$0xf0]  ;;  %v7664_v4 = vor.u32 %v8246_v51, %v7661_v17 }
 0x541   : > { %v7660_v20 = vor.u32 %v8247_v23, %v7659_v57  ;;  %v7728_v1 = vor.u32 %v8262_v59, %v7725_v35 }
 0x543   : > { %5463 = vmatpush.bf16.msrb.mxu2 %v7696_v63  ;;  %5425 = vmatpush.bf16.msrb.mxu0 %v7692_v34  ;;  %v7653_v63 = vld [vmem:[#allocation19 + $0x208] sm:$0xf0]  ;;  %v8245_v34 = vld [vmem:[#allocation19 + $0x204] sm:$0xf0] }
 0x544   : > { %5444 = vmatpush.bf16.msrb.mxu1 %v7756_v10  ;;  %5482 = vmatpush.bf16.msrb.mxu3 %v7760_v3  ;;  %v7715_v10 = vld [vmem:[#allocation19 + $0x280] sm:$0xf]  ;;  %v8261_v3 = vld [vmem:[#allocation19 + $0x284] sm:$0xf0]  ;;  %v7656_v42 = vor.u32 %v8244_v31, %v7653_v63  ;;  %v7652_v14 = vor.u32 %v8245_v34, %v7651_v7 }
 0x545   : > { %v7716_v6 = vor.u32 %v8261_v3, %v7715_v10 }
 0x547   : > { %5464 = vmatpush.bf16.msrb.mxu2 %v7688_v21  ;;  %5426 = vmatpush.bf16.msrb.mxu0 %v7684_v22  ;;  %v4939_v21 = vpack.c.bf16 %v4935_v19, %v4935_v19  ;;  %v4940_v22 = vpack.c.bf16 %v4936_v2, %v4936_v2 }
 0x548   : > { %5445 = vmatpush.bf16.msrb.mxu1 %v7748_v12  ;;  %5483 = vmatpush.bf16.msrb.mxu3 %v7752_v25 }
 0x549   : > { %4862 = vmatmul.bf16.gmra.mxu0 %v9337_v24  ;;  %4881 = vmatmul.bf16.gmra.mxu1 %v9339_v54  ;;  %v5019_v12 = vrot.slane %v4939_v21, 1  ;;  %v5021_v25 = vrot.slane %v4940_v22, 1 }
 0x54a   : > { %4900 = vmatmul.bf16.gmra.mxu2 %v9337_v24  ;;  %4919 = vmatmul.bf16.gmra.mxu3 %v9339_v54 }
 0x54b   : > { %5465 = vmatpush.bf16.msrb.mxu2 %v7680_v33  ;;  %5427 = vmatpush.bf16.msrb.mxu0 %v7676_v56  ;;  %v5020_v28 = vsel %vm3619_vm4, %v5014_v48, %v5019_v12 }
 0x54c   : > { %5446 = vmatpush.bf16.msrb.mxu1 %v7740_v38  ;;  %5484 = vmatpush.bf16.msrb.mxu3 %v7744_v40 }
 0x54f   : > { %5466 = vmatpush.bf16.msrb.mxu2 %v7672_v47  ;;  %5428 = vmatpush.bf16.msrb.mxu0 %v7668_v49 }
 0x550   : > { %5447 = vmatpush.bf16.msrb.mxu1 %v7732_v18  ;;  %5485 = vmatpush.bf16.msrb.mxu3 %v7736_v55 }
 0x553   : > { %5467 = vmatpush.bf16.msrb.mxu2 %v7664_v4  ;;  %5429 = vmatpush.bf16.msrb.mxu0 %v7660_v20 }
 0x554   : > { %5448 = vmatpush.bf16.msrb.mxu1 %v7724_v26  ;;  %5486 = vmatpush.bf16.msrb.mxu3 %v7728_v1 }
 0x557   : > { %5468 = vmatpush.bf16.msrb.mxu2 %v7656_v42  ;;  %5430 = vmatpush.bf16.msrb.mxu0 %v7652_v14 }
 0x558   : > { %5449 = vmatpush.bf16.msrb.mxu1 %v7716_v6  ;;  %5487 = vmatpush.bf16.msrb.mxu3 %v7720_v16 }
 0x559   : > { %5195 = vmatmul.bf16.vlgmr.msra.gmra.mxu0 %v9356_v53  ;;  %5214 = vmatmul.bf16.vlgmr.msra.gmra.mxu1 %v9379_v5 }
 0x55a   : > { %5233 = vmatmul.bf16.vlgmr.msra.gmra.mxu2 %v9356_v53  ;;  %5252 = vmatmul.bf16.vlgmr.msra.gmra.mxu3 %v9379_v5  ;;  %v5022_v53 = vsel %vm3619_vm4, %v5017_v15, %v5021_v25 }
 0x569   : > { %5200 = vmatmul.bf16.gmra.mxu0 %v5020_v28  ;;  %5219 = vmatmul.bf16.gmra.mxu1 %v5022_v53 }
 0x56a   : > { %5238 = vmatmul.bf16.gmra.mxu2 %v5020_v28  ;;  %5257 = vmatmul.bf16.gmra.mxu3 %v5022_v53 }
 0x579   : > { %5431 = vmatmul.bf16.vlgmr.msrb.gmra.mxu0 %v9360_v32  ;;  %5450 = vmatmul.bf16.vlgmr.msrb.gmra.mxu1 %v9364_v11 }
 0x57a   : > { %5469 = vmatmul.bf16.vlgmr.msrb.gmra.mxu2 %v9360_v32  ;;  %5488 = vmatmul.bf16.vlgmr.msrb.gmra.mxu3 %v9364_v11 }
 0x589   : > { %5436 = vmatmul.bf16.gmra.mxu0 %v9382_v62  ;;  %5455 = vmatmul.bf16.gmra.mxu1 %v9385_v36 }
 0x58a   : > { %5474 = vmatmul.bf16.gmra.mxu2 %v9382_v62  ;;  %5493 = vmatmul.bf16.gmra.mxu3 %v9385_v36 }
 0x596   : > { %v4622_v24 = vpop.f32.mrf.mxu0  ;;  %v4641_v54 = vpop.f32.mrf.mxu1 }
 0x597   : > { %v4642_v38 = vadd.f32 %v4641_v54, %v4622_v24 }
 0x59d   : > { %v4660_v48 = vpop.f32.mrf.mxu2  ;;  %v4679_v15 = vpop.f32.mrf.mxu3 }
 0x59e   : > { %v4624_v5 = vpop.f32.mrf.mxu0  ;;  %v4643_v29 = vpop.f32.mrf.mxu1  ;;  %v4680_v41 = vadd.f32 %v4679_v15, %v4660_v48 }
 0x59f   : > { %v4644_v43 = vadd.f32 %v4643_v29, %v4624_v5 }
 0x5a5   : > { %v4662_v30 = vpop.f32.mrf.mxu2  ;;  %v4681_v33 = vpop.f32.mrf.mxu3 }
 0x5a6   : > { %v4627_v32 = vpop.f32.mrf.mxu0  ;;  %v4646_v37 = vpop.f32.mrf.mxu1  ;;  %v4682_v18 = vadd.f32 %v4681_v33, %v4662_v30 }
 0x5a7   : > { %v4647_v55 = vadd.f32 %v4646_v37, %v4627_v32 }
 0x5ad   : > { %v4665_v11 = vpop.f32.mrf.mxu2  ;;  %v4684_v0 = vpop.f32.mrf.mxu3 }
 0x5ae   : > { %v4629_v9 = vpop.f32.mrf.mxu0  ;;  %v4648_v56 = vpop.f32.mrf.mxu1  ;;  %v4685_v26 = vadd.f32 %v4684_v0, %v4665_v11 }
 0x5af   : > { %v4649_v1 = vadd.f32 %v4648_v56, %v4629_v9 }
 0x5b5   : > { %v4667_v52 = vpop.f32.mrf.mxu2  ;;  %v4686_v62 = vpop.f32.mrf.mxu3 }
 0x5b6   : > { %v4858_v39 = vpop.f32.mrf.mxu0  ;;  %v4877_v36 = vpop.f32.mrf.mxu1  ;;  %v4687_v19 = vadd.f32 %v4686_v62, %v4667_v52 }
 0x5b7   : > { %v4859_v27 = vadd.f32 %v4858_v39, %v4642_v38 }
 0x5b9   : > { %v4878_v40 = vadd.f32 %v4877_v36, %v4859_v27 }
 0x5bb   : > { %8412 = vtanh.f32 %v4878_v40 }
 0x5bd   : > { %v4896_v44 = vpop.f32.mrf.mxu2  ;;  %v4915_v45 = vpop.f32.mrf.mxu3 }
 0x5be   : > { %v4897_v46 = vadd.f32 %v4896_v44, %v4680_v41  ;;  %v4860_v60 = vpop.f32.mrf.mxu0  ;;  %v4879_v47 = vpop.f32.mrf.mxu1 }
 0x5bf   : > { %v4861_v49 = vadd.f32 %v4860_v60, %v4644_v43 }
 0x5c0   : > { %v4916_v50 = vadd.f32 %v4915_v45, %v4897_v46 }
 0x5c1   : > { %v8413_v51 = vpop.eup %8412  ;;  %v4880_v17 = vadd.f32 %v4879_v47, %v4861_v49 }
 0x5c2   : > { %5507 = vst [vmem:[%s9419_s22] sm:$0xff] %v8413_v51  ;;  %8414 = vtanh.f32 %v4916_v50 }
 0x5c3   : > { %8416 = vtanh.f32 %v4880_v17 }
 0x5c5   : > { %v4898_v57 = vpop.f32.mrf.mxu2  ;;  %v4917_v23 = vpop.f32.mrf.mxu3 }
 0x5c6   : > { %v4899_v61 = vadd.f32 %v4898_v57, %v4682_v18  ;;  %v4863_v58 = vpop.f32.mrf.mxu0  ;;  %v4882_v59 = vpop.f32.mrf.mxu1 }
 0x5c7   : > { %v4864_v35 = vadd.f32 %v4863_v58, %v4647_v55 }
 0x5c8   : > { %v8415_v4 = vpop.eup %8414  ;;  %v4918_v20 = vadd.f32 %v4917_v23, %v4899_v61 }
 0x5c9   : > { %v8417_v31 = vpop.eup %8416  ;;  %5508 = vst [vmem:[%s9419_s22 + $0x8] sm:$0xff] %v8415_v4  ;;  %v4883_v63 = vadd.f32 %v4882_v59, %v4864_v35 }
 0x5ca   : > { %5509 = vst [vmem:[%s9419_s22 + $0x10] sm:$0xff] %v8417_v31  ;;  %8418 = vtanh.f32 %v4918_v20 }
 0x5cb   : > { %8420 = vtanh.f32 %v4883_v63 }
 0x5cd   : > { %v4901_v7 = vpop.f32.mrf.mxu2  ;;  %v4920_v34 = vpop.f32.mrf.mxu3 }
 0x5ce   : > { %v4902_v10 = vadd.f32 %v4901_v7, %v4685_v26  ;;  %v4865_v3 = vpop.f32.mrf.mxu0  ;;  %v4884_v13 = vpop.f32.mrf.mxu1 }
 0x5cf   : > { %v4866_v8 = vadd.f32 %v4865_v3, %v4649_v1 }
 0x5d0   : > { %v8419_v42 = vpop.eup %8418  ;;  %v4921_v14 = vadd.f32 %v4920_v34, %v4902_v10 }
 0x5d1   : > { %v8421_v6 = vpop.eup %8420  ;;  %5510 = vst [vmem:[%s9419_s22 + $0x18] sm:$0xff] %v8419_v42  ;;  %v4885_v16 = vadd.f32 %v4884_v13, %v4866_v8 }
 0x5d2   : > { %5511 = vst [vmem:[%s9419_s22 + $0x20] sm:$0xff] %v8421_v6  ;;  %8422 = vtanh.f32 %v4921_v14 }
 0x5d3   : > { %8424 = vtanh.f32 %v4885_v16 }
 0x5d5   : > { %v4903_v2 = vpop.f32.mrf.mxu2  ;;  %v4922_v21 = vpop.f32.mrf.mxu3 }
 0x5d6   : > { %v4904_v22 = vadd.f32 %v4903_v2, %v4687_v19  ;;  %v5196_v12 = vpop.f32.mrf.mxu0  ;;  %v5215_v25 = vpop.f32.mrf.mxu1 }
 0x5d7   : > { %v5216_v38 = vadd.f32 %v5215_v25, %v5196_v12 }
 0x5d8   : > { %v8423_v28 = vpop.eup %8422  ;;  %v4923_v53 = vadd.f32 %v4922_v21, %v4904_v22 }
 0x5d9   : > { %v8425_v24 = vpop.eup %8424  ;;  %5512 = vst [vmem:[%s9419_s22 + $0x28] sm:$0xff] %v8423_v28 }
 0x5da   : > { %5513 = vst [vmem:[%s9419_s22 + $0x30] sm:$0xff] %v8425_v24  ;;  %8426 = vtanh.f32 %v4923_v53 }
 0x5dd   : > { %v5234_v54 = vpop.f32.mrf.mxu2  ;;  %v5253_v48 = vpop.f32.mrf.mxu3 }
 0x5de   : > { %v5198_v15 = vpop.f32.mrf.mxu0  ;;  %v5217_v5 = vpop.f32.mrf.mxu1  ;;  %v5254_v41 = vadd.f32 %v5253_v48, %v5234_v54 }
 0x5df   : > { %v5218_v43 = vadd.f32 %v5217_v5, %v5198_v15 }
 0x5e0   : > { %v8427_v29 = vpop.eup %8426 }
 0x5e1   : > { %5514 = vst [vmem:[%s9419_s22 + $0x38] sm:$0xff] %v8427_v29 }
 0x5e5   : > { %v5236_v30 = vpop.f32.mrf.mxu2  ;;  %v5255_v33 = vpop.f32.mrf.mxu3 }
 0x5e6   : > { %v5201_v32 = vpop.f32.mrf.mxu0  ;;  %v5220_v37 = vpop.f32.mrf.mxu1  ;;  %v5256_v18 = vadd.f32 %v5255_v33, %v5236_v30 }
 0x5e7   : > { %v5221_v55 = vadd.f32 %v5220_v37, %v5201_v32 }
 0x5ed   : > { %v5239_v11 = vpop.f32.mrf.mxu2  ;;  %v5258_v0 = vpop.f32.mrf.mxu3 }
 0x5ee   : > { %v5203_v9 = vpop.f32.mrf.mxu0  ;;  %v5222_v56 = vpop.f32.mrf.mxu1  ;;  %v5259_v26 = vadd.f32 %v5258_v0, %v5239_v11 }
 0x5ef   : > { %v5223_v1 = vadd.f32 %v5222_v56, %v5203_v9 }
 0x5f5   : > { %v5241_v52 = vpop.f32.mrf.mxu2  ;;  %v5260_v62 = vpop.f32.mrf.mxu3 }
 0x5f6   : > { %v5432_v39 = vpop.f32.mrf.mxu0  ;;  %v5451_v36 = vpop.f32.mrf.mxu1  ;;  %v5261_v19 = vadd.f32 %v5260_v62, %v5241_v52 }
 0x5f7   : > { %v5433_v27 = vadd.f32 %v5432_v39, %v5216_v38 }
 0x5f9   : > { %v5452_v40 = vadd.f32 %v5451_v36, %v5433_v27 }
 0x5fb   : > { %8428 = vtanh.f32 %v5452_v40 }
 0x5fd   : > { %v5470_v44 = vpop.f32.mrf.mxu2  ;;  %v5489_v45 = vpop.f32.mrf.mxu3 }
 0x5fe   : > { %v5471_v46 = vadd.f32 %v5470_v44, %v5254_v41  ;;  %v5434_v60 = vpop.f32.mrf.mxu0  ;;  %v5453_v47 = vpop.f32.mrf.mxu1 }
 0x5ff   : > { %v5435_v49 = vadd.f32 %v5434_v60, %v5218_v43 }
 0x600   : > { %v5490_v50 = vadd.f32 %v5489_v45, %v5471_v46 }
 0x601   : > { %v8429_v51 = vpop.eup %8428  ;;  %v5454_v17 = vadd.f32 %v5453_v47, %v5435_v49 }
 0x602   : > { %7777 = vst [vmem:[%s9419_s22 + $0x40] sm:$0xff] %v8429_v51  ;;  %8430 = vtanh.f32 %v5490_v50 }
 0x603   : > { %8432 = vtanh.f32 %v5454_v17 }
 0x605   : > { %v5472_v57 = vpop.f32.mrf.mxu2  ;;  %v5491_v23 = vpop.f32.mrf.mxu3 }
 0x606   : > { %v5473_v61 = vadd.f32 %v5472_v57, %v5256_v18  ;;  %v5437_v58 = vpop.f32.mrf.mxu0  ;;  %v5456_v59 = vpop.f32.mrf.mxu1 }
 0x607   : > { %v5438_v35 = vadd.f32 %v5437_v58, %v5221_v55 }
 0x608   : > { %v8431_v4 = vpop.eup %8430  ;;  %v5492_v20 = vadd.f32 %v5491_v23, %v5473_v61 }
 0x609   : > { %v8433_v31 = vpop.eup %8432  ;;  %7778 = vst [vmem:[%s9419_s22 + $0x48] sm:$0xff] %v8431_v4  ;;  %v5457_v63 = vadd.f32 %v5456_v59, %v5438_v35 }
 0x60a   : > { %7779 = vst [vmem:[%s9419_s22 + $0x50] sm:$0xff] %v8433_v31  ;;  %8434 = vtanh.f32 %v5492_v20 }
 0x60b   : > { %8436 = vtanh.f32 %v5457_v63 }
 0x60d   : > { %v5475_v7 = vpop.f32.mrf.mxu2  ;;  %v5494_v34 = vpop.f32.mrf.mxu3 }
 0x60e   : > { %v5476_v10 = vadd.f32 %v5475_v7, %v5259_v26  ;;  %v5439_v3 = vpop.f32.mrf.mxu0  ;;  %v5458_v14 = vpop.f32.mrf.mxu1 }
 0x60f   : > { %v5440_v13 = vadd.f32 %v5439_v3, %v5223_v1 }
 0x610   : > { %v8435_v8 = vpop.eup %8434  ;;  %v5495_v42 = vadd.f32 %v5494_v34, %v5476_v10 }
 0x611   : > { %v8437_v6 = vpop.eup %8436  ;;  %7780 = vst [vmem:[%s9419_s22 + $0x58] sm:$0xff] %v8435_v8  ;;  %v5459_v16 = vadd.f32 %v5458_v14, %v5440_v13 }
 0x612   : > { %7781 = vst [vmem:[%s9419_s22 + $0x60] sm:$0xff] %v8437_v6  ;;  %8438 = vtanh.f32 %v5495_v42 }
 0x613   : > { %8440 = vtanh.f32 %v5459_v16 }
 0x615   : > { %v5477_v2 = vpop.f32.mrf.mxu2  ;;  %v5496_v22 = vpop.f32.mrf.mxu3 }
 0x616   : > { %v5478_v21 = vadd.f32 %v5477_v2, %v5261_v19 }
 0x618   : > { %v8439_v12 = vpop.eup %8438  ;;  %v5497_v25 = vadd.f32 %v5496_v22, %v5478_v21 }
 0x619   : > { %v8441_v28 = vpop.eup %8440  ;;  %7782 = vst [vmem:[%s9419_s22 + $0x68] sm:$0xff] %v8439_v12 }
 0x61a   : > { %7783 = vst [vmem:[%s9419_s22 + $0x70] sm:$0xff] %v8441_v28  ;;  %8442 = vtanh.f32 %v5497_v25 }
 0x620   : > { %v8443_v53 = vpop.eup %8442 }
 0x621   : > { %7784 = vst [vmem:[%s9419_s22 + $0x78] sm:$0xff] %v8443_v53 }
 0x622 PF: > { %s25_s13 = sadd.s32 1, %s8740_s13  }
 0x623   : > { %p22_p7 = scmp.ge.s32.totalorder %s25_s13, 4  }
 0x625   :  { %24 = sbr.rel (!%p22_p7) target bundleno = 5 (0x5), region = 248 }
 0x62a   :  { %5545 = vsyncpa [#allocation7], 1 }
 0x62b   :  { %5547 = vsyncpa [#allocation7 + $0x1], 1 }
 0x62c   :  { %5548 = vsyncpa [#allocation9], 1 }
 0x62d   :  { %5549 = vsyncpa [#allocation12], 1 }
 0x62e   :  { %5550 = vsyncpa [#allocation15], 1 }
 0x62f   :  { %5551 = vsyncpa [#allocation18], 1 }

</bundles_post_ra>
